<compile_context>
chip_gen: v5e
topology: v5e:2x2
jax: 0.10.0
libtpu: 0.0.40
codegen_flags: <defaults>
</compile_context>

<pallas_src>
import jax
import jax.numpy as jnp
from jax.experimental import pallas as pl
from jax.experimental.pallas import tpu as pltpu

H1 = 15              # hidden width of layer 1
H2 = 5               # hidden width of layer 2
COLS = 512           # lane-dense tile width (multiple of 128)
MIN_ROWS = 8         # minimal sublane tile height
FAST_PATH_ELEMS = MIN_ROWS * COLS   # below this, pure-JAX is strictly faster


def _round_up(n, m):
    return ((n + m - 1) // m) * m


def _cdiv(a, b):
    return -(-a // b)


def _max_block_rows():
    """Per-generation block height: bigger tiles where VMEM allows.

    v5e/v6e (128 MiB VMEM): 512 rows -> 1 MiB f32 tiles (better DMA
    amortization).  v7x (64 MiB VMEM) or unknown: stay at 256 rows.
    """
    try:
        info = pltpu.get_tpu_info()
        vmem = getattr(info, "vmem_capacity_bytes", 0) or 0
        if vmem >= 96 * 1024 * 1024:
            return 512
    except Exception:
        pass
    return 256


def mlp_kernel(x_ref, w1_ref, b1_ref, w2_ref, b2_ref, w3_ref, b3_ref, o_ref):
    """Elementwise scalar MLP applied to one dense (block_rows, COLS) tile.

    Weights/biases live in SMEM; all arithmetic is fully unrolled VPU
    scalar-broadcast multiply-adds in f32 (no MXU)."""
    x = x_ref[...]                                        # (BR, COLS) f32

    # Fused layer 1 + layer 2 accumulation: compute each hidden-1 unit once,
    # then scatter-accumulate into the 5 hidden-2 accumulators.
    acc = [None] * H2
    for k in range(H1):
        h1k = jnp.maximum(x * w1_ref[k] + b1_ref[k], 0.0)
        for j in range(H2):
            t = h1k * w2_ref[j, k]
            acc[j] = t if acc[j] is None else acc[j] + t

    # Layer 3.
    out = None
    for j in range(H2):
        h2j = jnp.maximum(acc[j] + b2_ref[j], 0.0)
        t = h2j * w3_ref[j]
        out = t if out is None else out + t

    o_ref[...] = out + b3_ref[0]


def mlp_slab(x2d, params, *, block_rows):
    """Apply the MLP elementwise to a dense (rows, COLS) f32 slab.

    `rows` must be a multiple of `block_rows`.  Exactly one HBM round trip
    (input read + output write); use this entry point directly if your data
    already lives in slab layout."""
    w1, b1, w2, b2, w3, b3 = params
    rows, cols = x2d.shape
    assert cols == COLS and rows % block_rows == 0

    grid = (rows // block_rows,)
    tile_spec = pl.BlockSpec((block_rows, COLS), lambda i: (i, 0))
    smem_spec = pl.BlockSpec(memory_space=pltpu.MemorySpace.SMEM)
    vmem_limit = 64 * 1024 * 1024 if block_rows > 256 else 32 * 1024 * 1024

    return pl.pallas_call(
        mlp_kernel,
        out_shape=jax.ShapeDtypeStruct((rows, COLS), jnp.float32),
        grid_spec=pltpu.PrefetchScalarGridSpec(
            num_scalar_prefetch=0,
            grid=grid,
            in_specs=[tile_spec] + [smem_spec] * 6,
            out_specs=tile_spec,
        ),
        compiler_params=pltpu.CompilerParams(
            dimension_semantics=("parallel",),
            vmem_limit_bytes=vmem_limit,
        ),
    )(x2d, w1, b1, w2, b2, w3, b3)


def neural_network_forward(x, params):
    """x: (B, 1) float32 -> (B, 1) float32 (matches the PyTorch module)."""
    assert x.ndim == 2 and x.shape[-1] == 1
    batch = x.shape[0]

    # Small-batch fast path: a single fused XLA elementwise chain beats the
    # Pallas launch + tile padding below one minimal (8, 512) tile of data.
    if batch < FAST_PATH_ELEMS:
        return reference_forward(x, params)

    max_block_rows = _max_block_rows()

    # Balanced block sizing (minimizes tail-padding waste in this
    # VALU-bound kernel) + >=2 grid steps for v7x's two TensorCores.
    rows = _cdiv(batch, COLS)
    n_blocks = max(_cdiv(rows, max_block_rows), 1)
    if rows >= 2 * MIN_ROWS:
        n_blocks = max(n_blocks, 2)
    block_rows = _round_up(_cdiv(rows, n_blocks), MIN_ROWS)
    rows_padded = block_rows * n_blocks
    padded = rows_padded * COLS

    flat = x.reshape(-1)
    if padded == batch:
        # Slab-aligned batch: reshapes are free metadata ops, no extra HBM
        # round trips on either side of the kernel.
        xp = flat.reshape(rows_padded, COLS)
        out2d = mlp_slab(xp, params, block_rows=block_rows)
        return out2d.reshape(batch, 1)

    xp = jnp.pad(flat, (0, padded - batch)).reshape(rows_padded, COLS)
    out2d = mlp_slab(xp, params, block_rows=block_rows)
    return out2d.reshape(-1)[:batch].reshape(batch, 1)


def init_params(key):
    """PyTorch nn.Linear default init: U(-1/sqrt(fan_in), +1/sqrt(fan_in)).

    Stored in the shapes the kernel consumes:
      w1: (15,)   b1: (15,)   -- Linear(1, 15) weight, flattened
      w2: (5, 15) b2: (5,)    -- Linear(15, 5) weight in (out, in) layout
      w3: (5,)    b3: (1,)    -- Linear(5, 1) weight, flattened
    """
    specs = [((H1,), (H1,), 1), ((H2, H1), (H2,), H1), ((H2,), (1,), H2)]
    params = []
    for w_shape, b_shape, fan_in in specs:
        key, kw, kb = jax.random.split(key, 3)
        bound = 1.0 / (fan_in ** 0.5)
        params.append(jax.random.uniform(kw, w_shape, jnp.float32, -bound, bound))
        params.append(jax.random.uniform(kb, b_shape, jnp.float32, -bound, bound))
    return tuple(params)


def reference_forward(x, params):
    w1, b1, w2, b2, w3, b3 = params
    h1 = jnp.maximum(x * w1[None, :] + b1[None, :], 0.0)   # (B, 15)
    h2 = jnp.maximum(h1 @ w2.T + b2[None, :], 0.0)          # (B, 5)
    return h2 @ w3[:, None] + b3[None, :]                   # (B, 1)


if __name__ == "__main__":
    key = jax.random.PRNGKey(0)
    key, k1, k2, k3 = jax.random.split(key, 4)
    params = init_params(key)

    cases = [
        ("fast-path small batch", jax.random.uniform(k1, (100, 1), jnp.float32, -50.0, 150.0)),
        ("pallas ragged batch", jax.random.uniform(k2, (6000, 1), jnp.float32, -50.0, 150.0)),
        ("pallas slab-aligned batch", jax.random.uniform(k3, (8192, 1), jnp.float32, -50.0, 150.0)),
    ]

    for name, x in cases:
        out = jax.block_until_ready(neural_network_forward(x, params))
        ref = reference_forward(x, params)
        assert out.shape == x.shape, (name, out.shape)
        err = float(jnp.max(jnp.abs(out - ref)))
        assert jnp.allclose(out, ref, rtol=1e-4, atol=1e-3), (name, err)

    print("KERNEL_OK")
</pallas_src>

<mosaic_0001>
module attributes {stable_mosaic.version = 11 : i64} {
  func.func @mlp_kernel(%arg0: i32, %arg1: memref<16x512xf32, #tpu.memory_space<vmem>>, %arg2: memref<15xf32, #tpu.memory_space<smem>>, %arg3: memref<15xf32, #tpu.memory_space<smem>>, %arg4: memref<5x15xf32, #tpu.memory_space<smem>>, %arg5: memref<5xf32, #tpu.memory_space<smem>>, %arg6: memref<5xf32, #tpu.memory_space<smem>>, %arg7: memref<1xf32, #tpu.memory_space<smem>>, %arg8: memref<16x512xf32, #tpu.memory_space<vmem>>) attributes {dimension_semantics = [#tpu.dimension_semantics<parallel>], iteration_bounds = array<i64: 1>, scalar_prefetch = 0 : i64, scratch_operands = 0 : i64, tpu.core_type = #tpu.core_type<tc>, window_params = [{transform_indices = @transform_0, window_bounds = array<i64: 16, 512>}, {transform_indices = @transform_1, window_bounds = array<i64: 15>}, {transform_indices = @transform_2, window_bounds = array<i64: 15>}, {transform_indices = @transform_3, window_bounds = array<i64: 5, 15>}, {transform_indices = @transform_4, window_bounds = array<i64: 5>}, {transform_indices = @transform_5, window_bounds = array<i64: 5>}, {transform_indices = @transform_6, window_bounds = array<i64: 1>}, {transform_indices = @transform_7, window_bounds = array<i64: 16, 512>}]} {
    %c0 = arith.constant 0 : index
    %c0_0 = arith.constant 0 : index
    %0 = vector.load %arg1[%c0, %c0_0] : memref<16x512xf32, #tpu.memory_space<vmem>>, vector<16x512xf32>
    %c0_1 = arith.constant 0 : index
    %1 = memref.load %arg2[%c0_1] : memref<15xf32, #tpu.memory_space<smem>>
    %2 = vector.broadcast %1 : f32 to vector<16x512xf32>
    %3 = arith.mulf %0, %2 : vector<16x512xf32>
    %c0_2 = arith.constant 0 : index
    %4 = memref.load %arg3[%c0_2] : memref<15xf32, #tpu.memory_space<smem>>
    %5 = vector.broadcast %4 : f32 to vector<16x512xf32>
    %6 = arith.addf %3, %5 : vector<16x512xf32>
    %cst = arith.constant 0.000000e+00 : f32
    %7 = vector.broadcast %cst : f32 to vector<16x512xf32>
    %8 = arith.maximumf %6, %7 : vector<16x512xf32>
    %c0_3 = arith.constant 0 : index
    %c0_4 = arith.constant 0 : index
    %9 = memref.load %arg4[%c0_3, %c0_4] : memref<5x15xf32, #tpu.memory_space<smem>>
    %10 = vector.broadcast %9 : f32 to vector<16x512xf32>
    %11 = arith.mulf %8, %10 : vector<16x512xf32>
    %c1 = arith.constant 1 : index
    %c0_5 = arith.constant 0 : index
    %12 = memref.load %arg4[%c1, %c0_5] : memref<5x15xf32, #tpu.memory_space<smem>>
    %13 = vector.broadcast %12 : f32 to vector<16x512xf32>
    %14 = arith.mulf %8, %13 : vector<16x512xf32>
    %c2 = arith.constant 2 : index
    %c0_6 = arith.constant 0 : index
    %15 = memref.load %arg4[%c2, %c0_6] : memref<5x15xf32, #tpu.memory_space<smem>>
    %16 = vector.broadcast %15 : f32 to vector<16x512xf32>
    %17 = arith.mulf %8, %16 : vector<16x512xf32>
    %c3 = arith.constant 3 : index
    %c0_7 = arith.constant 0 : index
    %18 = memref.load %arg4[%c3, %c0_7] : memref<5x15xf32, #tpu.memory_space<smem>>
    %19 = vector.broadcast %18 : f32 to vector<16x512xf32>
    %20 = arith.mulf %8, %19 : vector<16x512xf32>
    %c4 = arith.constant 4 : index
    %c0_8 = arith.constant 0 : index
    %21 = memref.load %arg4[%c4, %c0_8] : memref<5x15xf32, #tpu.memory_space<smem>>
    %22 = vector.broadcast %21 : f32 to vector<16x512xf32>
    %23 = arith.mulf %8, %22 : vector<16x512xf32>
    %c1_9 = arith.constant 1 : index
    %24 = memref.load %arg2[%c1_9] : memref<15xf32, #tpu.memory_space<smem>>
    %25 = vector.broadcast %24 : f32 to vector<16x512xf32>
    %26 = arith.mulf %0, %25 : vector<16x512xf32>
    %c1_10 = arith.constant 1 : index
    %27 = memref.load %arg3[%c1_10] : memref<15xf32, #tpu.memory_space<smem>>
    %28 = vector.broadcast %27 : f32 to vector<16x512xf32>
    %29 = arith.addf %26, %28 : vector<16x512xf32>
    %cst_11 = arith.constant 0.000000e+00 : f32
    %30 = vector.broadcast %cst_11 : f32 to vector<16x512xf32>
    %31 = arith.maximumf %29, %30 : vector<16x512xf32>
    %c0_12 = arith.constant 0 : index
    %c1_13 = arith.constant 1 : index
    %32 = memref.load %arg4[%c0_12, %c1_13] : memref<5x15xf32, #tpu.memory_space<smem>>
    %33 = vector.broadcast %32 : f32 to vector<16x512xf32>
    %34 = arith.mulf %31, %33 : vector<16x512xf32>
    %35 = arith.addf %11, %34 : vector<16x512xf32>
    %c1_14 = arith.constant 1 : index
    %c1_15 = arith.constant 1 : index
    %36 = memref.load %arg4[%c1_14, %c1_15] : memref<5x15xf32, #tpu.memory_space<smem>>
    %37 = vector.broadcast %36 : f32 to vector<16x512xf32>
    %38 = arith.mulf %31, %37 : vector<16x512xf32>
    %39 = arith.addf %14, %38 : vector<16x512xf32>
    %c2_16 = arith.constant 2 : index
    %c1_17 = arith.constant 1 : index
    %40 = memref.load %arg4[%c2_16, %c1_17] : memref<5x15xf32, #tpu.memory_space<smem>>
    %41 = vector.broadcast %40 : f32 to vector<16x512xf32>
    %42 = arith.mulf %31, %41 : vector<16x512xf32>
    %43 = arith.addf %17, %42 : vector<16x512xf32>
    %c3_18 = arith.constant 3 : index
    %c1_19 = arith.constant 1 : index
    %44 = memref.load %arg4[%c3_18, %c1_19] : memref<5x15xf32, #tpu.memory_space<smem>>
    %45 = vector.broadcast %44 : f32 to vector<16x512xf32>
    %46 = arith.mulf %31, %45 : vector<16x512xf32>
    %47 = arith.addf %20, %46 : vector<16x512xf32>
    %c4_20 = arith.constant 4 : index
    %c1_21 = arith.constant 1 : index
    %48 = memref.load %arg4[%c4_20, %c1_21] : memref<5x15xf32, #tpu.memory_space<smem>>
    %49 = vector.broadcast %48 : f32 to vector<16x512xf32>
    %50 = arith.mulf %31, %49 : vector<16x512xf32>
    %51 = arith.addf %23, %50 : vector<16x512xf32>
    %c2_22 = arith.constant 2 : index
    %52 = memref.load %arg2[%c2_22] : memref<15xf32, #tpu.memory_space<smem>>
    %53 = vector.broadcast %52 : f32 to vector<16x512xf32>
    %54 = arith.mulf %0, %53 : vector<16x512xf32>
    %c2_23 = arith.constant 2 : index
    %55 = memref.load %arg3[%c2_23] : memref<15xf32, #tpu.memory_space<smem>>
    %56 = vector.broadcast %55 : f32 to vector<16x512xf32>
    %57 = arith.addf %54, %56 : vector<16x512xf32>
    %cst_24 = arith.constant 0.000000e+00 : f32
    %58 = vector.broadcast %cst_24 : f32 to vector<16x512xf32>
    %59 = arith.maximumf %57, %58 : vector<16x512xf32>
    %c0_25 = arith.constant 0 : index
    %c2_26 = arith.constant 2 : index
    %60 = memref.load %arg4[%c0_25, %c2_26] : memref<5x15xf32, #tpu.memory_space<smem>>
    %61 = vector.broadcast %60 : f32 to vector<16x512xf32>
    %62 = arith.mulf %59, %61 : vector<16x512xf32>
    %63 = arith.addf %35, %62 : vector<16x512xf32>
    %c1_27 = arith.constant 1 : index
    %c2_28 = arith.constant 2 : index
    %64 = memref.load %arg4[%c1_27, %c2_28] : memref<5x15xf32, #tpu.memory_space<smem>>
    %65 = vector.broadcast %64 : f32 to vector<16x512xf32>
    %66 = arith.mulf %59, %65 : vector<16x512xf32>
    %67 = arith.addf %39, %66 : vector<16x512xf32>
    %c2_29 = arith.constant 2 : index
    %c2_30 = arith.constant 2 : index
    %68 = memref.load %arg4[%c2_29, %c2_30] : memref<5x15xf32, #tpu.memory_space<smem>>
    %69 = vector.broadcast %68 : f32 to vector<16x512xf32>
    %70 = arith.mulf %59, %69 : vector<16x512xf32>
    %71 = arith.addf %43, %70 : vector<16x512xf32>
    %c3_31 = arith.constant 3 : index
    %c2_32 = arith.constant 2 : index
    %72 = memref.load %arg4[%c3_31, %c2_32] : memref<5x15xf32, #tpu.memory_space<smem>>
    %73 = vector.broadcast %72 : f32 to vector<16x512xf32>
    %74 = arith.mulf %59, %73 : vector<16x512xf32>
    %75 = arith.addf %47, %74 : vector<16x512xf32>
    %c4_33 = arith.constant 4 : index
    %c2_34 = arith.constant 2 : index
    %76 = memref.load %arg4[%c4_33, %c2_34] : memref<5x15xf32, #tpu.memory_space<smem>>
    %77 = vector.broadcast %76 : f32 to vector<16x512xf32>
    %78 = arith.mulf %59, %77 : vector<16x512xf32>
    %79 = arith.addf %51, %78 : vector<16x512xf32>
    %c3_35 = arith.constant 3 : index
    %80 = memref.load %arg2[%c3_35] : memref<15xf32, #tpu.memory_space<smem>>
    %81 = vector.broadcast %80 : f32 to vector<16x512xf32>
    %82 = arith.mulf %0, %81 : vector<16x512xf32>
    %c3_36 = arith.constant 3 : index
    %83 = memref.load %arg3[%c3_36] : memref<15xf32, #tpu.memory_space<smem>>
    %84 = vector.broadcast %83 : f32 to vector<16x512xf32>
    %85 = arith.addf %82, %84 : vector<16x512xf32>
    %cst_37 = arith.constant 0.000000e+00 : f32
    %86 = vector.broadcast %cst_37 : f32 to vector<16x512xf32>
    %87 = arith.maximumf %85, %86 : vector<16x512xf32>
    %c0_38 = arith.constant 0 : index
    %c3_39 = arith.constant 3 : index
    %88 = memref.load %arg4[%c0_38, %c3_39] : memref<5x15xf32, #tpu.memory_space<smem>>
    %89 = vector.broadcast %88 : f32 to vector<16x512xf32>
    %90 = arith.mulf %87, %89 : vector<16x512xf32>
    %91 = arith.addf %63, %90 : vector<16x512xf32>
    %c1_40 = arith.constant 1 : index
    %c3_41 = arith.constant 3 : index
    %92 = memref.load %arg4[%c1_40, %c3_41] : memref<5x15xf32, #tpu.memory_space<smem>>
    %93 = vector.broadcast %92 : f32 to vector<16x512xf32>
    %94 = arith.mulf %87, %93 : vector<16x512xf32>
    %95 = arith.addf %67, %94 : vector<16x512xf32>
    %c2_42 = arith.constant 2 : index
    %c3_43 = arith.constant 3 : index
    %96 = memref.load %arg4[%c2_42, %c3_43] : memref<5x15xf32, #tpu.memory_space<smem>>
    %97 = vector.broadcast %96 : f32 to vector<16x512xf32>
    %98 = arith.mulf %87, %97 : vector<16x512xf32>
    %99 = arith.addf %71, %98 : vector<16x512xf32>
    %c3_44 = arith.constant 3 : index
    %c3_45 = arith.constant 3 : index
    %100 = memref.load %arg4[%c3_44, %c3_45] : memref<5x15xf32, #tpu.memory_space<smem>>
    %101 = vector.broadcast %100 : f32 to vector<16x512xf32>
    %102 = arith.mulf %87, %101 : vector<16x512xf32>
    %103 = arith.addf %75, %102 : vector<16x512xf32>
    %c4_46 = arith.constant 4 : index
    %c3_47 = arith.constant 3 : index
    %104 = memref.load %arg4[%c4_46, %c3_47] : memref<5x15xf32, #tpu.memory_space<smem>>
    %105 = vector.broadcast %104 : f32 to vector<16x512xf32>
    %106 = arith.mulf %87, %105 : vector<16x512xf32>
    %107 = arith.addf %79, %106 : vector<16x512xf32>
    %c4_48 = arith.constant 4 : index
    %108 = memref.load %arg2[%c4_48] : memref<15xf32, #tpu.memory_space<smem>>
    %109 = vector.broadcast %108 : f32 to vector<16x512xf32>
    %110 = arith.mulf %0, %109 : vector<16x512xf32>
    %c4_49 = arith.constant 4 : index
    %111 = memref.load %arg3[%c4_49] : memref<15xf32, #tpu.memory_space<smem>>
    %112 = vector.broadcast %111 : f32 to vector<16x512xf32>
    %113 = arith.addf %110, %112 : vector<16x512xf32>
    %cst_50 = arith.constant 0.000000e+00 : f32
    %114 = vector.broadcast %cst_50 : f32 to vector<16x512xf32>
    %115 = arith.maximumf %113, %114 : vector<16x512xf32>
    %c0_51 = arith.constant 0 : index
    %c4_52 = arith.constant 4 : index
    %116 = memref.load %arg4[%c0_51, %c4_52] : memref<5x15xf32, #tpu.memory_space<smem>>
    %117 = vector.broadcast %116 : f32 to vector<16x512xf32>
    %118 = arith.mulf %115, %117 : vector<16x512xf32>
    %119 = arith.addf %91, %118 : vector<16x512xf32>
    %c1_53 = arith.constant 1 : index
    %c4_54 = arith.constant 4 : index
    %120 = memref.load %arg4[%c1_53, %c4_54] : memref<5x15xf32, #tpu.memory_space<smem>>
    %121 = vector.broadcast %120 : f32 to vector<16x512xf32>
    %122 = arith.mulf %115, %121 : vector<16x512xf32>
    %123 = arith.addf %95, %122 : vector<16x512xf32>
    %c2_55 = arith.constant 2 : index
    %c4_56 = arith.constant 4 : index
    %124 = memref.load %arg4[%c2_55, %c4_56] : memref<5x15xf32, #tpu.memory_space<smem>>
    %125 = vector.broadcast %124 : f32 to vector<16x512xf32>
    %126 = arith.mulf %115, %125 : vector<16x512xf32>
    %127 = arith.addf %99, %126 : vector<16x512xf32>
    %c3_57 = arith.constant 3 : index
    %c4_58 = arith.constant 4 : index
    %128 = memref.load %arg4[%c3_57, %c4_58] : memref<5x15xf32, #tpu.memory_space<smem>>
    %129 = vector.broadcast %128 : f32 to vector<16x512xf32>
    %130 = arith.mulf %115, %129 : vector<16x512xf32>
    %131 = arith.addf %103, %130 : vector<16x512xf32>
    %c4_59 = arith.constant 4 : index
    %c4_60 = arith.constant 4 : index
    %132 = memref.load %arg4[%c4_59, %c4_60] : memref<5x15xf32, #tpu.memory_space<smem>>
    %133 = vector.broadcast %132 : f32 to vector<16x512xf32>
    %134 = arith.mulf %115, %133 : vector<16x512xf32>
    %135 = arith.addf %107, %134 : vector<16x512xf32>
    %c5 = arith.constant 5 : index
    %136 = memref.load %arg2[%c5] : memref<15xf32, #tpu.memory_space<smem>>
    %137 = vector.broadcast %136 : f32 to vector<16x512xf32>
    %138 = arith.mulf %0, %137 : vector<16x512xf32>
    %c5_61 = arith.constant 5 : index
    %139 = memref.load %arg3[%c5_61] : memref<15xf32, #tpu.memory_space<smem>>
    %140 = vector.broadcast %139 : f32 to vector<16x512xf32>
    %141 = arith.addf %138, %140 : vector<16x512xf32>
    %cst_62 = arith.constant 0.000000e+00 : f32
    %142 = vector.broadcast %cst_62 : f32 to vector<16x512xf32>
    %143 = arith.maximumf %141, %142 : vector<16x512xf32>
    %c0_63 = arith.constant 0 : index
    %c5_64 = arith.constant 5 : index
    %144 = memref.load %arg4[%c0_63, %c5_64] : memref<5x15xf32, #tpu.memory_space<smem>>
    %145 = vector.broadcast %144 : f32 to vector<16x512xf32>
    %146 = arith.mulf %143, %145 : vector<16x512xf32>
    %147 = arith.addf %119, %146 : vector<16x512xf32>
    %c1_65 = arith.constant 1 : index
    %c5_66 = arith.constant 5 : index
    %148 = memref.load %arg4[%c1_65, %c5_66] : memref<5x15xf32, #tpu.memory_space<smem>>
    %149 = vector.broadcast %148 : f32 to vector<16x512xf32>
    %150 = arith.mulf %143, %149 : vector<16x512xf32>
    %151 = arith.addf %123, %150 : vector<16x512xf32>
    %c2_67 = arith.constant 2 : index
    %c5_68 = arith.constant 5 : index
    %152 = memref.load %arg4[%c2_67, %c5_68] : memref<5x15xf32, #tpu.memory_space<smem>>
    %153 = vector.broadcast %152 : f32 to vector<16x512xf32>
    %154 = arith.mulf %143, %153 : vector<16x512xf32>
    %155 = arith.addf %127, %154 : vector<16x512xf32>
    %c3_69 = arith.constant 3 : index
    %c5_70 = arith.constant 5 : index
    %156 = memref.load %arg4[%c3_69, %c5_70] : memref<5x15xf32, #tpu.memory_space<smem>>
    %157 = vector.broadcast %156 : f32 to vector<16x512xf32>
    %158 = arith.mulf %143, %157 : vector<16x512xf32>
    %159 = arith.addf %131, %158 : vector<16x512xf32>
    %c4_71 = arith.constant 4 : index
    %c5_72 = arith.constant 5 : index
    %160 = memref.load %arg4[%c4_71, %c5_72] : memref<5x15xf32, #tpu.memory_space<smem>>
    %161 = vector.broadcast %160 : f32 to vector<16x512xf32>
    %162 = arith.mulf %143, %161 : vector<16x512xf32>
    %163 = arith.addf %135, %162 : vector<16x512xf32>
    %c6 = arith.constant 6 : index
    %164 = memref.load %arg2[%c6] : memref<15xf32, #tpu.memory_space<smem>>
    %165 = vector.broadcast %164 : f32 to vector<16x512xf32>
    %166 = arith.mulf %0, %165 : vector<16x512xf32>
    %c6_73 = arith.constant 6 : index
    %167 = memref.load %arg3[%c6_73] : memref<15xf32, #tpu.memory_space<smem>>
    %168 = vector.broadcast %167 : f32 to vector<16x512xf32>
    %169 = arith.addf %166, %168 : vector<16x512xf32>
    %cst_74 = arith.constant 0.000000e+00 : f32
    %170 = vector.broadcast %cst_74 : f32 to vector<16x512xf32>
    %171 = arith.maximumf %169, %170 : vector<16x512xf32>
    %c0_75 = arith.constant 0 : index
    %c6_76 = arith.constant 6 : index
    %172 = memref.load %arg4[%c0_75, %c6_76] : memref<5x15xf32, #tpu.memory_space<smem>>
    %173 = vector.broadcast %172 : f32 to vector<16x512xf32>
    %174 = arith.mulf %171, %173 : vector<16x512xf32>
    %175 = arith.addf %147, %174 : vector<16x512xf32>
    %c1_77 = arith.constant 1 : index
    %c6_78 = arith.constant 6 : index
    %176 = memref.load %arg4[%c1_77, %c6_78] : memref<5x15xf32, #tpu.memory_space<smem>>
    %177 = vector.broadcast %176 : f32 to vector<16x512xf32>
    %178 = arith.mulf %171, %177 : vector<16x512xf32>
    %179 = arith.addf %151, %178 : vector<16x512xf32>
    %c2_79 = arith.constant 2 : index
    %c6_80 = arith.constant 6 : index
    %180 = memref.load %arg4[%c2_79, %c6_80] : memref<5x15xf32, #tpu.memory_space<smem>>
    %181 = vector.broadcast %180 : f32 to vector<16x512xf32>
    %182 = arith.mulf %171, %181 : vector<16x512xf32>
    %183 = arith.addf %155, %182 : vector<16x512xf32>
    %c3_81 = arith.constant 3 : index
    %c6_82 = arith.constant 6 : index
    %184 = memref.load %arg4[%c3_81, %c6_82] : memref<5x15xf32, #tpu.memory_space<smem>>
    %185 = vector.broadcast %184 : f32 to vector<16x512xf32>
    %186 = arith.mulf %171, %185 : vector<16x512xf32>
    %187 = arith.addf %159, %186 : vector<16x512xf32>
    %c4_83 = arith.constant 4 : index
    %c6_84 = arith.constant 6 : index
    %188 = memref.load %arg4[%c4_83, %c6_84] : memref<5x15xf32, #tpu.memory_space<smem>>
    %189 = vector.broadcast %188 : f32 to vector<16x512xf32>
    %190 = arith.mulf %171, %189 : vector<16x512xf32>
    %191 = arith.addf %163, %190 : vector<16x512xf32>
    %c7 = arith.constant 7 : index
    %192 = memref.load %arg2[%c7] : memref<15xf32, #tpu.memory_space<smem>>
    %193 = vector.broadcast %192 : f32 to vector<16x512xf32>
    %194 = arith.mulf %0, %193 : vector<16x512xf32>
    %c7_85 = arith.constant 7 : index
    %195 = memref.load %arg3[%c7_85] : memref<15xf32, #tpu.memory_space<smem>>
    %196 = vector.broadcast %195 : f32 to vector<16x512xf32>
    %197 = arith.addf %194, %196 : vector<16x512xf32>
    %cst_86 = arith.constant 0.000000e+00 : f32
    %198 = vector.broadcast %cst_86 : f32 to vector<16x512xf32>
    %199 = arith.maximumf %197, %198 : vector<16x512xf32>
    %c0_87 = arith.constant 0 : index
    %c7_88 = arith.constant 7 : index
    %200 = memref.load %arg4[%c0_87, %c7_88] : memref<5x15xf32, #tpu.memory_space<smem>>
    %201 = vector.broadcast %200 : f32 to vector<16x512xf32>
    %202 = arith.mulf %199, %201 : vector<16x512xf32>
    %203 = arith.addf %175, %202 : vector<16x512xf32>
    %c1_89 = arith.constant 1 : index
    %c7_90 = arith.constant 7 : index
    %204 = memref.load %arg4[%c1_89, %c7_90] : memref<5x15xf32, #tpu.memory_space<smem>>
    %205 = vector.broadcast %204 : f32 to vector<16x512xf32>
    %206 = arith.mulf %199, %205 : vector<16x512xf32>
    %207 = arith.addf %179, %206 : vector<16x512xf32>
    %c2_91 = arith.constant 2 : index
    %c7_92 = arith.constant 7 : index
    %208 = memref.load %arg4[%c2_91, %c7_92] : memref<5x15xf32, #tpu.memory_space<smem>>
    %209 = vector.broadcast %208 : f32 to vector<16x512xf32>
    %210 = arith.mulf %199, %209 : vector<16x512xf32>
    %211 = arith.addf %183, %210 : vector<16x512xf32>
    %c3_93 = arith.constant 3 : index
    %c7_94 = arith.constant 7 : index
    %212 = memref.load %arg4[%c3_93, %c7_94] : memref<5x15xf32, #tpu.memory_space<smem>>
    %213 = vector.broadcast %212 : f32 to vector<16x512xf32>
    %214 = arith.mulf %199, %213 : vector<16x512xf32>
    %215 = arith.addf %187, %214 : vector<16x512xf32>
    %c4_95 = arith.constant 4 : index
    %c7_96 = arith.constant 7 : index
    %216 = memref.load %arg4[%c4_95, %c7_96] : memref<5x15xf32, #tpu.memory_space<smem>>
    %217 = vector.broadcast %216 : f32 to vector<16x512xf32>
    %218 = arith.mulf %199, %217 : vector<16x512xf32>
    %219 = arith.addf %191, %218 : vector<16x512xf32>
    %c8 = arith.constant 8 : index
    %220 = memref.load %arg2[%c8] : memref<15xf32, #tpu.memory_space<smem>>
    %221 = vector.broadcast %220 : f32 to vector<16x512xf32>
    %222 = arith.mulf %0, %221 : vector<16x512xf32>
    %c8_97 = arith.constant 8 : index
    %223 = memref.load %arg3[%c8_97] : memref<15xf32, #tpu.memory_space<smem>>
    %224 = vector.broadcast %223 : f32 to vector<16x512xf32>
    %225 = arith.addf %222, %224 : vector<16x512xf32>
    %cst_98 = arith.constant 0.000000e+00 : f32
    %226 = vector.broadcast %cst_98 : f32 to vector<16x512xf32>
    %227 = arith.maximumf %225, %226 : vector<16x512xf32>
    %c0_99 = arith.constant 0 : index
    %c8_100 = arith.constant 8 : index
    %228 = memref.load %arg4[%c0_99, %c8_100] : memref<5x15xf32, #tpu.memory_space<smem>>
    %229 = vector.broadcast %228 : f32 to vector<16x512xf32>
    %230 = arith.mulf %227, %229 : vector<16x512xf32>
    %231 = arith.addf %203, %230 : vector<16x512xf32>
    %c1_101 = arith.constant 1 : index
    %c8_102 = arith.constant 8 : index
    %232 = memref.load %arg4[%c1_101, %c8_102] : memref<5x15xf32, #tpu.memory_space<smem>>
    %233 = vector.broadcast %232 : f32 to vector<16x512xf32>
    %234 = arith.mulf %227, %233 : vector<16x512xf32>
    %235 = arith.addf %207, %234 : vector<16x512xf32>
    %c2_103 = arith.constant 2 : index
    %c8_104 = arith.constant 8 : index
    %236 = memref.load %arg4[%c2_103, %c8_104] : memref<5x15xf32, #tpu.memory_space<smem>>
    %237 = vector.broadcast %236 : f32 to vector<16x512xf32>
    %238 = arith.mulf %227, %237 : vector<16x512xf32>
    %239 = arith.addf %211, %238 : vector<16x512xf32>
    %c3_105 = arith.constant 3 : index
    %c8_106 = arith.constant 8 : index
    %240 = memref.load %arg4[%c3_105, %c8_106] : memref<5x15xf32, #tpu.memory_space<smem>>
    %241 = vector.broadcast %240 : f32 to vector<16x512xf32>
    %242 = arith.mulf %227, %241 : vector<16x512xf32>
    %243 = arith.addf %215, %242 : vector<16x512xf32>
    %c4_107 = arith.constant 4 : index
    %c8_108 = arith.constant 8 : index
    %244 = memref.load %arg4[%c4_107, %c8_108] : memref<5x15xf32, #tpu.memory_space<smem>>
    %245 = vector.broadcast %244 : f32 to vector<16x512xf32>
    %246 = arith.mulf %227, %245 : vector<16x512xf32>
    %247 = arith.addf %219, %246 : vector<16x512xf32>
    %c9 = arith.constant 9 : index
    %248 = memref.load %arg2[%c9] : memref<15xf32, #tpu.memory_space<smem>>
    %249 = vector.broadcast %248 : f32 to vector<16x512xf32>
    %250 = arith.mulf %0, %249 : vector<16x512xf32>
    %c9_109 = arith.constant 9 : index
    %251 = memref.load %arg3[%c9_109] : memref<15xf32, #tpu.memory_space<smem>>
    %252 = vector.broadcast %251 : f32 to vector<16x512xf32>
    %253 = arith.addf %250, %252 : vector<16x512xf32>
    %cst_110 = arith.constant 0.000000e+00 : f32
    %254 = vector.broadcast %cst_110 : f32 to vector<16x512xf32>
    %255 = arith.maximumf %253, %254 : vector<16x512xf32>
    %c0_111 = arith.constant 0 : index
    %c9_112 = arith.constant 9 : index
    %256 = memref.load %arg4[%c0_111, %c9_112] : memref<5x15xf32, #tpu.memory_space<smem>>
    %257 = vector.broadcast %256 : f32 to vector<16x512xf32>
    %258 = arith.mulf %255, %257 : vector<16x512xf32>
    %259 = arith.addf %231, %258 : vector<16x512xf32>
    %c1_113 = arith.constant 1 : index
    %c9_114 = arith.constant 9 : index
    %260 = memref.load %arg4[%c1_113, %c9_114] : memref<5x15xf32, #tpu.memory_space<smem>>
    %261 = vector.broadcast %260 : f32 to vector<16x512xf32>
    %262 = arith.mulf %255, %261 : vector<16x512xf32>
    %263 = arith.addf %235, %262 : vector<16x512xf32>
    %c2_115 = arith.constant 2 : index
    %c9_116 = arith.constant 9 : index
    %264 = memref.load %arg4[%c2_115, %c9_116] : memref<5x15xf32, #tpu.memory_space<smem>>
    %265 = vector.broadcast %264 : f32 to vector<16x512xf32>
    %266 = arith.mulf %255, %265 : vector<16x512xf32>
    %267 = arith.addf %239, %266 : vector<16x512xf32>
    %c3_117 = arith.constant 3 : index
    %c9_118 = arith.constant 9 : index
    %268 = memref.load %arg4[%c3_117, %c9_118] : memref<5x15xf32, #tpu.memory_space<smem>>
    %269 = vector.broadcast %268 : f32 to vector<16x512xf32>
    %270 = arith.mulf %255, %269 : vector<16x512xf32>
    %271 = arith.addf %243, %270 : vector<16x512xf32>
    %c4_119 = arith.constant 4 : index
    %c9_120 = arith.constant 9 : index
    %272 = memref.load %arg4[%c4_119, %c9_120] : memref<5x15xf32, #tpu.memory_space<smem>>
    %273 = vector.broadcast %272 : f32 to vector<16x512xf32>
    %274 = arith.mulf %255, %273 : vector<16x512xf32>
    %275 = arith.addf %247, %274 : vector<16x512xf32>
    %c10 = arith.constant 10 : index
    %276 = memref.load %arg2[%c10] : memref<15xf32, #tpu.memory_space<smem>>
    %277 = vector.broadcast %276 : f32 to vector<16x512xf32>
    %278 = arith.mulf %0, %277 : vector<16x512xf32>
    %c10_121 = arith.constant 10 : index
    %279 = memref.load %arg3[%c10_121] : memref<15xf32, #tpu.memory_space<smem>>
    %280 = vector.broadcast %279 : f32 to vector<16x512xf32>
    %281 = arith.addf %278, %280 : vector<16x512xf32>
    %cst_122 = arith.constant 0.000000e+00 : f32
    %282 = vector.broadcast %cst_122 : f32 to vector<16x512xf32>
    %283 = arith.maximumf %281, %282 : vector<16x512xf32>
    %c0_123 = arith.constant 0 : index
    %c10_124 = arith.constant 10 : index
    %284 = memref.load %arg4[%c0_123, %c10_124] : memref<5x15xf32, #tpu.memory_space<smem>>
    %285 = vector.broadcast %284 : f32 to vector<16x512xf32>
    %286 = arith.mulf %283, %285 : vector<16x512xf32>
    %287 = arith.addf %259, %286 : vector<16x512xf32>
    %c1_125 = arith.constant 1 : index
    %c10_126 = arith.constant 10 : index
    %288 = memref.load %arg4[%c1_125, %c10_126] : memref<5x15xf32, #tpu.memory_space<smem>>
    %289 = vector.broadcast %288 : f32 to vector<16x512xf32>
    %290 = arith.mulf %283, %289 : vector<16x512xf32>
    %291 = arith.addf %263, %290 : vector<16x512xf32>
    %c2_127 = arith.constant 2 : index
    %c10_128 = arith.constant 10 : index
    %292 = memref.load %arg4[%c2_127, %c10_128] : memref<5x15xf32, #tpu.memory_space<smem>>
    %293 = vector.broadcast %292 : f32 to vector<16x512xf32>
    %294 = arith.mulf %283, %293 : vector<16x512xf32>
    %295 = arith.addf %267, %294 : vector<16x512xf32>
    %c3_129 = arith.constant 3 : index
    %c10_130 = arith.constant 10 : index
    %296 = memref.load %arg4[%c3_129, %c10_130] : memref<5x15xf32, #tpu.memory_space<smem>>
    %297 = vector.broadcast %296 : f32 to vector<16x512xf32>
    %298 = arith.mulf %283, %297 : vector<16x512xf32>
    %299 = arith.addf %271, %298 : vector<16x512xf32>
    %c4_131 = arith.constant 4 : index
    %c10_132 = arith.constant 10 : index
    %300 = memref.load %arg4[%c4_131, %c10_132] : memref<5x15xf32, #tpu.memory_space<smem>>
    %301 = vector.broadcast %300 : f32 to vector<16x512xf32>
    %302 = arith.mulf %283, %301 : vector<16x512xf32>
    %303 = arith.addf %275, %302 : vector<16x512xf32>
    %c11 = arith.constant 11 : index
    %304 = memref.load %arg2[%c11] : memref<15xf32, #tpu.memory_space<smem>>
    %305 = vector.broadcast %304 : f32 to vector<16x512xf32>
    %306 = arith.mulf %0, %305 : vector<16x512xf32>
    %c11_133 = arith.constant 11 : index
    %307 = memref.load %arg3[%c11_133] : memref<15xf32, #tpu.memory_space<smem>>
    %308 = vector.broadcast %307 : f32 to vector<16x512xf32>
    %309 = arith.addf %306, %308 : vector<16x512xf32>
    %cst_134 = arith.constant 0.000000e+00 : f32
    %310 = vector.broadcast %cst_134 : f32 to vector<16x512xf32>
    %311 = arith.maximumf %309, %310 : vector<16x512xf32>
    %c0_135 = arith.constant 0 : index
    %c11_136 = arith.constant 11 : index
    %312 = memref.load %arg4[%c0_135, %c11_136] : memref<5x15xf32, #tpu.memory_space<smem>>
    %313 = vector.broadcast %312 : f32 to vector<16x512xf32>
    %314 = arith.mulf %311, %313 : vector<16x512xf32>
    %315 = arith.addf %287, %314 : vector<16x512xf32>
    %c1_137 = arith.constant 1 : index
    %c11_138 = arith.constant 11 : index
    %316 = memref.load %arg4[%c1_137, %c11_138] : memref<5x15xf32, #tpu.memory_space<smem>>
    %317 = vector.broadcast %316 : f32 to vector<16x512xf32>
    %318 = arith.mulf %311, %317 : vector<16x512xf32>
    %319 = arith.addf %291, %318 : vector<16x512xf32>
    %c2_139 = arith.constant 2 : index
    %c11_140 = arith.constant 11 : index
    %320 = memref.load %arg4[%c2_139, %c11_140] : memref<5x15xf32, #tpu.memory_space<smem>>
    %321 = vector.broadcast %320 : f32 to vector<16x512xf32>
    %322 = arith.mulf %311, %321 : vector<16x512xf32>
    %323 = arith.addf %295, %322 : vector<16x512xf32>
    %c3_141 = arith.constant 3 : index
    %c11_142 = arith.constant 11 : index
    %324 = memref.load %arg4[%c3_141, %c11_142] : memref<5x15xf32, #tpu.memory_space<smem>>
    %325 = vector.broadcast %324 : f32 to vector<16x512xf32>
    %326 = arith.mulf %311, %325 : vector<16x512xf32>
    %327 = arith.addf %299, %326 : vector<16x512xf32>
    %c4_143 = arith.constant 4 : index
    %c11_144 = arith.constant 11 : index
    %328 = memref.load %arg4[%c4_143, %c11_144] : memref<5x15xf32, #tpu.memory_space<smem>>
    %329 = vector.broadcast %328 : f32 to vector<16x512xf32>
    %330 = arith.mulf %311, %329 : vector<16x512xf32>
    %331 = arith.addf %303, %330 : vector<16x512xf32>
    %c12 = arith.constant 12 : index
    %332 = memref.load %arg2[%c12] : memref<15xf32, #tpu.memory_space<smem>>
    %333 = vector.broadcast %332 : f32 to vector<16x512xf32>
    %334 = arith.mulf %0, %333 : vector<16x512xf32>
    %c12_145 = arith.constant 12 : index
    %335 = memref.load %arg3[%c12_145] : memref<15xf32, #tpu.memory_space<smem>>
    %336 = vector.broadcast %335 : f32 to vector<16x512xf32>
    %337 = arith.addf %334, %336 : vector<16x512xf32>
    %cst_146 = arith.constant 0.000000e+00 : f32
    %338 = vector.broadcast %cst_146 : f32 to vector<16x512xf32>
    %339 = arith.maximumf %337, %338 : vector<16x512xf32>
    %c0_147 = arith.constant 0 : index
    %c12_148 = arith.constant 12 : index
    %340 = memref.load %arg4[%c0_147, %c12_148] : memref<5x15xf32, #tpu.memory_space<smem>>
    %341 = vector.broadcast %340 : f32 to vector<16x512xf32>
    %342 = arith.mulf %339, %341 : vector<16x512xf32>
    %343 = arith.addf %315, %342 : vector<16x512xf32>
    %c1_149 = arith.constant 1 : index
    %c12_150 = arith.constant 12 : index
    %344 = memref.load %arg4[%c1_149, %c12_150] : memref<5x15xf32, #tpu.memory_space<smem>>
    %345 = vector.broadcast %344 : f32 to vector<16x512xf32>
    %346 = arith.mulf %339, %345 : vector<16x512xf32>
    %347 = arith.addf %319, %346 : vector<16x512xf32>
    %c2_151 = arith.constant 2 : index
    %c12_152 = arith.constant 12 : index
    %348 = memref.load %arg4[%c2_151, %c12_152] : memref<5x15xf32, #tpu.memory_space<smem>>
    %349 = vector.broadcast %348 : f32 to vector<16x512xf32>
    %350 = arith.mulf %339, %349 : vector<16x512xf32>
    %351 = arith.addf %323, %350 : vector<16x512xf32>
    %c3_153 = arith.constant 3 : index
    %c12_154 = arith.constant 12 : index
    %352 = memref.load %arg4[%c3_153, %c12_154] : memref<5x15xf32, #tpu.memory_space<smem>>
    %353 = vector.broadcast %352 : f32 to vector<16x512xf32>
    %354 = arith.mulf %339, %353 : vector<16x512xf32>
    %355 = arith.addf %327, %354 : vector<16x512xf32>
    %c4_155 = arith.constant 4 : index
    %c12_156 = arith.constant 12 : index
    %356 = memref.load %arg4[%c4_155, %c12_156] : memref<5x15xf32, #tpu.memory_space<smem>>
    %357 = vector.broadcast %356 : f32 to vector<16x512xf32>
    %358 = arith.mulf %339, %357 : vector<16x512xf32>
    %359 = arith.addf %331, %358 : vector<16x512xf32>
    %c13 = arith.constant 13 : index
    %360 = memref.load %arg2[%c13] : memref<15xf32, #tpu.memory_space<smem>>
    %361 = vector.broadcast %360 : f32 to vector<16x512xf32>
    %362 = arith.mulf %0, %361 : vector<16x512xf32>
    %c13_157 = arith.constant 13 : index
    %363 = memref.load %arg3[%c13_157] : memref<15xf32, #tpu.memory_space<smem>>
    %364 = vector.broadcast %363 : f32 to vector<16x512xf32>
    %365 = arith.addf %362, %364 : vector<16x512xf32>
    %cst_158 = arith.constant 0.000000e+00 : f32
    %366 = vector.broadcast %cst_158 : f32 to vector<16x512xf32>
    %367 = arith.maximumf %365, %366 : vector<16x512xf32>
    %c0_159 = arith.constant 0 : index
    %c13_160 = arith.constant 13 : index
    %368 = memref.load %arg4[%c0_159, %c13_160] : memref<5x15xf32, #tpu.memory_space<smem>>
    %369 = vector.broadcast %368 : f32 to vector<16x512xf32>
    %370 = arith.mulf %367, %369 : vector<16x512xf32>
    %371 = arith.addf %343, %370 : vector<16x512xf32>
    %c1_161 = arith.constant 1 : index
    %c13_162 = arith.constant 13 : index
    %372 = memref.load %arg4[%c1_161, %c13_162] : memref<5x15xf32, #tpu.memory_space<smem>>
    %373 = vector.broadcast %372 : f32 to vector<16x512xf32>
    %374 = arith.mulf %367, %373 : vector<16x512xf32>
    %375 = arith.addf %347, %374 : vector<16x512xf32>
    %c2_163 = arith.constant 2 : index
    %c13_164 = arith.constant 13 : index
    %376 = memref.load %arg4[%c2_163, %c13_164] : memref<5x15xf32, #tpu.memory_space<smem>>
    %377 = vector.broadcast %376 : f32 to vector<16x512xf32>
    %378 = arith.mulf %367, %377 : vector<16x512xf32>
    %379 = arith.addf %351, %378 : vector<16x512xf32>
    %c3_165 = arith.constant 3 : index
    %c13_166 = arith.constant 13 : index
    %380 = memref.load %arg4[%c3_165, %c13_166] : memref<5x15xf32, #tpu.memory_space<smem>>
    %381 = vector.broadcast %380 : f32 to vector<16x512xf32>
    %382 = arith.mulf %367, %381 : vector<16x512xf32>
    %383 = arith.addf %355, %382 : vector<16x512xf32>
    %c4_167 = arith.constant 4 : index
    %c13_168 = arith.constant 13 : index
    %384 = memref.load %arg4[%c4_167, %c13_168] : memref<5x15xf32, #tpu.memory_space<smem>>
    %385 = vector.broadcast %384 : f32 to vector<16x512xf32>
    %386 = arith.mulf %367, %385 : vector<16x512xf32>
    %387 = arith.addf %359, %386 : vector<16x512xf32>
    %c14 = arith.constant 14 : index
    %388 = memref.load %arg2[%c14] : memref<15xf32, #tpu.memory_space<smem>>
    %389 = vector.broadcast %388 : f32 to vector<16x512xf32>
    %390 = arith.mulf %0, %389 : vector<16x512xf32>
    %c14_169 = arith.constant 14 : index
    %391 = memref.load %arg3[%c14_169] : memref<15xf32, #tpu.memory_space<smem>>
    %392 = vector.broadcast %391 : f32 to vector<16x512xf32>
    %393 = arith.addf %390, %392 : vector<16x512xf32>
    %cst_170 = arith.constant 0.000000e+00 : f32
    %394 = vector.broadcast %cst_170 : f32 to vector<16x512xf32>
    %395 = arith.maximumf %393, %394 : vector<16x512xf32>
    %c0_171 = arith.constant 0 : index
    %c14_172 = arith.constant 14 : index
    %396 = memref.load %arg4[%c0_171, %c14_172] : memref<5x15xf32, #tpu.memory_space<smem>>
    %397 = vector.broadcast %396 : f32 to vector<16x512xf32>
    %398 = arith.mulf %395, %397 : vector<16x512xf32>
    %399 = arith.addf %371, %398 : vector<16x512xf32>
    %c1_173 = arith.constant 1 : index
    %c14_174 = arith.constant 14 : index
    %400 = memref.load %arg4[%c1_173, %c14_174] : memref<5x15xf32, #tpu.memory_space<smem>>
    %401 = vector.broadcast %400 : f32 to vector<16x512xf32>
    %402 = arith.mulf %395, %401 : vector<16x512xf32>
    %403 = arith.addf %375, %402 : vector<16x512xf32>
    %c2_175 = arith.constant 2 : index
    %c14_176 = arith.constant 14 : index
    %404 = memref.load %arg4[%c2_175, %c14_176] : memref<5x15xf32, #tpu.memory_space<smem>>
    %405 = vector.broadcast %404 : f32 to vector<16x512xf32>
    %406 = arith.mulf %395, %405 : vector<16x512xf32>
    %407 = arith.addf %379, %406 : vector<16x512xf32>
    %c3_177 = arith.constant 3 : index
    %c14_178 = arith.constant 14 : index
    %408 = memref.load %arg4[%c3_177, %c14_178] : memref<5x15xf32, #tpu.memory_space<smem>>
    %409 = vector.broadcast %408 : f32 to vector<16x512xf32>
    %410 = arith.mulf %395, %409 : vector<16x512xf32>
    %411 = arith.addf %383, %410 : vector<16x512xf32>
    %c4_179 = arith.constant 4 : index
    %c14_180 = arith.constant 14 : index
    %412 = memref.load %arg4[%c4_179, %c14_180] : memref<5x15xf32, #tpu.memory_space<smem>>
    %413 = vector.broadcast %412 : f32 to vector<16x512xf32>
    %414 = arith.mulf %395, %413 : vector<16x512xf32>
    %415 = arith.addf %387, %414 : vector<16x512xf32>
    %c0_181 = arith.constant 0 : index
    %416 = memref.load %arg5[%c0_181] : memref<5xf32, #tpu.memory_space<smem>>
    %417 = vector.broadcast %416 : f32 to vector<16x512xf32>
    %418 = arith.addf %399, %417 : vector<16x512xf32>
    %cst_182 = arith.constant 0.000000e+00 : f32
    %419 = vector.broadcast %cst_182 : f32 to vector<16x512xf32>
    %420 = arith.maximumf %418, %419 : vector<16x512xf32>
    %c0_183 = arith.constant 0 : index
    %421 = memref.load %arg6[%c0_183] : memref<5xf32, #tpu.memory_space<smem>>
    %422 = vector.broadcast %421 : f32 to vector<16x512xf32>
    %423 = arith.mulf %420, %422 : vector<16x512xf32>
    %c1_184 = arith.constant 1 : index
    %424 = memref.load %arg5[%c1_184] : memref<5xf32, #tpu.memory_space<smem>>
    %425 = vector.broadcast %424 : f32 to vector<16x512xf32>
    %426 = arith.addf %403, %425 : vector<16x512xf32>
    %cst_185 = arith.constant 0.000000e+00 : f32
    %427 = vector.broadcast %cst_185 : f32 to vector<16x512xf32>
    %428 = arith.maximumf %426, %427 : vector<16x512xf32>
    %c1_186 = arith.constant 1 : index
    %429 = memref.load %arg6[%c1_186] : memref<5xf32, #tpu.memory_space<smem>>
    %430 = vector.broadcast %429 : f32 to vector<16x512xf32>
    %431 = arith.mulf %428, %430 : vector<16x512xf32>
    %432 = arith.addf %423, %431 : vector<16x512xf32>
    %c2_187 = arith.constant 2 : index
    %433 = memref.load %arg5[%c2_187] : memref<5xf32, #tpu.memory_space<smem>>
    %434 = vector.broadcast %433 : f32 to vector<16x512xf32>
    %435 = arith.addf %407, %434 : vector<16x512xf32>
    %cst_188 = arith.constant 0.000000e+00 : f32
    %436 = vector.broadcast %cst_188 : f32 to vector<16x512xf32>
    %437 = arith.maximumf %435, %436 : vector<16x512xf32>
    %c2_189 = arith.constant 2 : index
    %438 = memref.load %arg6[%c2_189] : memref<5xf32, #tpu.memory_space<smem>>
    %439 = vector.broadcast %438 : f32 to vector<16x512xf32>
    %440 = arith.mulf %437, %439 : vector<16x512xf32>
    %441 = arith.addf %432, %440 : vector<16x512xf32>
    %c3_190 = arith.constant 3 : index
    %442 = memref.load %arg5[%c3_190] : memref<5xf32, #tpu.memory_space<smem>>
    %443 = vector.broadcast %442 : f32 to vector<16x512xf32>
    %444 = arith.addf %411, %443 : vector<16x512xf32>
    %cst_191 = arith.constant 0.000000e+00 : f32
    %445 = vector.broadcast %cst_191 : f32 to vector<16x512xf32>
    %446 = arith.maximumf %444, %445 : vector<16x512xf32>
    %c3_192 = arith.constant 3 : index
    %447 = memref.load %arg6[%c3_192] : memref<5xf32, #tpu.memory_space<smem>>
    %448 = vector.broadcast %447 : f32 to vector<16x512xf32>
    %449 = arith.mulf %446, %448 : vector<16x512xf32>
    %450 = arith.addf %441, %449 : vector<16x512xf32>
    %c4_193 = arith.constant 4 : index
    %451 = memref.load %arg5[%c4_193] : memref<5xf32, #tpu.memory_space<smem>>
    %452 = vector.broadcast %451 : f32 to vector<16x512xf32>
    %453 = arith.addf %415, %452 : vector<16x512xf32>
    %cst_194 = arith.constant 0.000000e+00 : f32
    %454 = vector.broadcast %cst_194 : f32 to vector<16x512xf32>
    %455 = arith.maximumf %453, %454 : vector<16x512xf32>
    %c4_195 = arith.constant 4 : index
    %456 = memref.load %arg6[%c4_195] : memref<5xf32, #tpu.memory_space<smem>>
    %457 = vector.broadcast %456 : f32 to vector<16x512xf32>
    %458 = arith.mulf %455, %457 : vector<16x512xf32>
    %459 = arith.addf %450, %458 : vector<16x512xf32>
    %c0_196 = arith.constant 0 : index
    %460 = memref.load %arg7[%c0_196] : memref<1xf32, #tpu.memory_space<smem>>
    %461 = vector.broadcast %460 : f32 to vector<16x512xf32>
    %462 = arith.addf %459, %461 : vector<16x512xf32>
    %c0_197 = arith.constant 0 : index
    %c0_198 = arith.constant 0 : index
    %463 = vector.load %arg8[%c0_197, %c0_198] : memref<16x512xf32, #tpu.memory_space<vmem>>, vector<16x512xf32>
    tpu.vector_store %arg8[%c0_197, %c0_198], %462 {strides = array<i32>} : memref<16x512xf32, #tpu.memory_space<vmem>>, vector<16x512xf32>,
    return
  }
  func.func @transform_0(%arg0: i32) -> (i32, i32) {
    %c0_i32 = arith.constant 0 : i32
    %c0_i32_0 = arith.constant 0 : i32
    return %arg0, %c0_i32 : i32, i32
  }
  func.func @transform_1(%arg0: i32) -> i32 {
    %c0_i32 = arith.constant 0 : i32
    %c0_i32_0 = arith.constant 0 : i32
    return %c0_i32 : i32
  }
  func.func @transform_2(%arg0: i32) -> i32 {
    %c0_i32 = arith.constant 0 : i32
    %c0_i32_0 = arith.constant 0 : i32
    return %c0_i32 : i32
  }
  func.func @transform_3(%arg0: i32) -> (i32, i32) {
    %c0_i32 = arith.constant 0 : i32
    %c0_i32_0 = arith.constant 0 : i32
    %c0_i32_1 = arith.constant 0 : i32
    return %c0_i32, %c0_i32_0 : i32, i32
  }
  func.func @transform_4(%arg0: i32) -> i32 {
    %c0_i32 = arith.constant 0 : i32
    %c0_i32_0 = arith.constant 0 : i32
    return %c0_i32 : i32
  }
  func.func @transform_5(%arg0: i32) -> i32 {
    %c0_i32 = arith.constant 0 : i32
    %c0_i32_0 = arith.constant 0 : i32
    return %c0_i32 : i32
  }
  func.func @transform_6(%arg0: i32) -> i32 {
    %c0_i32 = arith.constant 0 : i32
    %c0_i32_0 = arith.constant 0 : i32
    return %c0_i32 : i32
  }
  func.func @transform_7(%arg0: i32) -> (i32, i32) {
    %c0_i32 = arith.constant 0 : i32
    %c0_i32_0 = arith.constant 0 : i32
    return %arg0, %c0_i32 : i32, i32
  }
}

</mosaic_0001>

<bundles_post_ra>
// kernel: tpu_custom_call.1
= control target key start
LH: loop header
LB: loop body
LE: loop exit
PB: predicated region body
PF: predicated region fallthrough
CT: control target
= control target key end

     0   :  { %13 = vsyncpa [#allocation4], 0  ;;  %s5486_s0 = inlined_call_operand.hbm [shape: f32[16,512], index: 0, kind: input, shape index: {}]   ;;  %s5487_s1 = inlined_call_operand.vmem [shape: f32[15], index: 1, kind: input, shape index: {}]   ;;  %s5488_s2 = inlined_call_operand.vmem [shape: f32[15], index: 2, kind: input, shape index: {}]   ;;  %s5489_s3 = inlined_call_operand.hbm [shape: f32[5,15], index: 3, kind: input, shape index: {}]   ;;  %s5490_s4 = inlined_call_operand.vmem [shape: f32[5], index: 4, kind: input, shape index: {}]   ;;  %s5491_s5 = inlined_call_operand.vmem [shape: f32[5], index: 5, kind: input, shape index: {}]   ;;  %s5492_s6 = inlined_call_operand.<no memory space> [shape: f32[1], index: 6, kind: input, shape index: {}]   ;;  %s5493_s7 = inlined_call_operand.hbm [shape: f32[16,512], index: 7, kind: output, shape index: {}]  }
   0x1   :  { %14 = vsyncpa [#allocation7], 0 }
   0x2   :  { %15 = vsyncpa [#allocation10], 0 }
   0x3   :  { %16 = vsyncpa [#allocation6], 0 }
   0x4   :  { %17 = vsyncpa [#allocation14], 0  ;;  %s46_s26 = sshll.u32 %s5488_s2, 4  ;;  %s47_s26 = int_to_ptr.vmem [resolvable:$true] %s46_s26 }
   0x5   :  { %18 = vsyncpa [#allocation5], 0  ;;  %s23_s29 = sshll.u32 %s5486_s0, 4  ;;  %s2312_s30 = smov [#allocation9]   ;;  %s24_s29 = int_to_ptr.hbm [resolvable:$true] %s23_s29 }
   0x6   :  { %49 = dma.vmem_to_smem %s47_s26, 16, %s2312_s30, [#allocation10]  }
   0x7   :  { %s2313_s8 = smov [#allocation3]   ;;  %s2314_s10 = smov 512  }
   0x8   :  { %s25_s9 = sshll.u32 %s2313_s8, 4  ;;  %s2315_s11 = smov 32   ;;  %s26_s9 = int_to_ptr.vmem [resolvable:$true] %s25_s9 }
   0x9   :  { %31 = dma.hbm_to_vmem [thread:$0]  %s24_s29, 1024, %s26_s9, [#allocation4], %s2314_s10, %s2314_s10, %s2315_s11  }
   0xa   :  { %s37_s13 = sshll.u32 %s5487_s1, 4  ;;  %s55_s0 = sshll.u32 %s5489_s3, 4  ;;  %s38_s13 = int_to_ptr.vmem [resolvable:$true] %s37_s13  ;;  %s56_s0 = int_to_ptr.hbm [resolvable:$true] %s55_s0 }
   0xb   :  { %s2316_s16 = smov [#allocation8]   ;;  %s2317_s17 = smov [#allocation11]  }
   0xc   :  { %40 = dma.vmem_to_smem %s38_s13, 16, %s2316_s16, [#allocation7]  }
   0xd   :  { %58 = dma.hbm_to_smem %s56_s0, 128, %s2317_s17, [#allocation6]  }
   0xe   :  { %s64_s20 = sshll.u32 %s5490_s4, 4  ;;  %s73_s23 = sshll.u32 %s5491_s5, 4  ;;  %s65_s20 = int_to_ptr.vmem [resolvable:$true] %s64_s20  ;;  %s74_s23 = int_to_ptr.vmem [resolvable:$true] %s73_s23 }
   0xf   :  { %s2318_s1 = smov [#allocation12]   ;;  %s2319_s24 = smov [#allocation13]  }
  0x10   :  { %67 = dma.vmem_to_smem %s65_s20, 16, %s2318_s1, [#allocation10]  }
  0x11   :  { %76 = dma.vmem_to_smem %s74_s23, 16, %s2319_s24, [#allocation14]  }
  0x12   :  { %2298 = dma.done.wait [#allocation4], 1024  }
  0x13   :  { %2299 = vsyncadd [#allocation4], 4294966272 }
  0x14   :  { %2300 = dma.done.wait [#allocation7], 16  }
  0x15   :  { %2301 = vsyncadd [#allocation7], 4294967280 }
  0x16   :  { %2302 = dma.done.wait [#allocation10], 16  }
  0x17   :  { %2303 = vsyncadd [#allocation10], 4294967280 }
  0x18   :  { %2304 = dma.done.wait [#allocation6], 128  }
  0x19   :  { %2305 = vsyncadd [#allocation6], 4294967168 }
  0x1a   :  { %2306 = dma.done.wait [#allocation10], 16  }
  0x1b   :  { %2307 = vsyncadd [#allocation10], 4294967280 }
  0x1c   :  { %2308 = dma.done.wait [#allocation14], 16  }
  0x1d   :  { %2309 = vsyncadd [#allocation14], 4294967280 }
  0x1e   :  { %103 = sfence }
  0x1f   :  { %s112_s3 = sld [smem:[#allocation8]]  ;;  %v2382_v0 = vld [vmem:[#allocation3] sm:$0xff]  ;;  %v2384_v1 = vld [vmem:[#allocation3 + $0x8] sm:$0xff]  ;;  %v2386_v2 = vld [vmem:[#allocation3 + $0x10] sm:$0xff] }
  0x20   :  { %s122_s4 = sld [smem:[#allocation9]]  ;;  %5544 = vst [vmem:[#allocation23_spill] sm:$0xff] %v2382_v0  ;;  %v2388_v3 = vld [vmem:[#allocation3 + $0x18] sm:$0xff]  ;;  %v2390_v4 = vld [vmem:[#allocation3 + $0x20] sm:$0xff]  ;;  %v2392_v5 = vld [vmem:[#allocation3 + $0x28] sm:$0xff] }
  0x21   :  { %s140_s5 = sld [smem:[#allocation11]]  ;;  %5545 = vst [vmem:[#allocation24_spill] sm:$0xff] %v2384_v1  ;;  %v2394_v6 = vld [vmem:[#allocation3 + $0x30] sm:$0xff]  ;;  %v2396_v7 = vld [vmem:[#allocation3 + $0x38] sm:$0xff] }
  0x22   :  { %s2055_s25 = sld [smem:[#allocation11 + $0x80]]  ;;  %5546 = vst [vmem:[#allocation25_spill] sm:$0xff] %v2386_v2 }
  0x23   :  { %5547 = vst [vmem:[#allocation26_spill] sm:$0xff] %v2388_v3  ;;  %s2402_s26 = sld [smem:[#allocation11 + $0x100]] }
  0x24   :  { %5548 = vst [vmem:[#allocation27_spill] sm:$0xff] %v2390_v4  ;;  %s2408_s27 = sld [smem:[#allocation11 + $0x180]] }
  0x25   :  { %5549 = vst [vmem:[#allocation28_spill] sm:$0xff] %v2392_v5  ;;  %v113_v8 = vstv %s112_s3  ;;  %s2410_s28 = sld [smem:[#allocation11 + $0x200]] }
  0x26   :  { %5550 = vst [vmem:[#allocation29_spill] sm:$0xff] %v2394_v6  ;;  %v114_v9 = vmul.f32 %v113_v8, %v2382_v0  ;;  %v115_v10 = vmul.f32 %v113_v8, %v2384_v1  ;;  %v116_v11 = vmul.f32 %v113_v8, %v2386_v2  ;;  %v117_v12 = vmul.f32 %v113_v8, %v2388_v3  ;;  %s2412_s29 = sld [smem:[#allocation8 + $0x1]] }
  0x27   :  { %5551 = vst [vmem:[#allocation30_spill] sm:$0xff] %v2396_v7  ;;  %v118_v13 = vmul.f32 %v113_v8, %v2390_v4  ;;  %v119_v14 = vmul.f32 %v113_v8, %v2392_v5  ;;  %v120_v15 = vmul.f32 %v113_v8, %v2394_v6  ;;  %v121_v16 = vmul.f32 %v113_v8, %v2396_v7  ;;  %s2438_s30 = sld [smem:[#allocation9 + $0x1]] }
  0x28   :  { %v123_v17 = vstv %s122_s4  ;;  %v141_v18 = vstv %s140_s5  ;;  %v151_v19 = vstv %s2055_s25  ;;  %s2448_s8 = sld [smem:[#allocation11 + $0x1]] }
  0x29   :  { %v124_v20 = vadd.f32 %v123_v17, %v114_v9  ;;  %v125_v21 = vadd.f32 %v123_v17, %v115_v10  ;;  %v126_v22 = vadd.f32 %v123_v17, %v116_v11  ;;  %v127_v23 = vadd.f32 %v123_v17, %v117_v12  ;;  %s2454_s9 = sld [smem:[#allocation11 + $0x81]] }
  0x2a   :  { %v128_v24 = vadd.f32 %v123_v17, %v118_v13  ;;  %v129_v25 = vadd.f32 %v123_v17, %v119_v14  ;;  %v130_v26 = vadd.f32 %v123_v17, %v120_v15  ;;  %v131_v27 = vadd.f32 %v123_v17, %v121_v16  ;;  %s2464_s12 = sld [smem:[#allocation11 + $0x101]] }
  0x2b   :  { %v132_v28 = vmax.f32 %v124_v20, 0.0  ;;  %v133_v29 = vmax.f32 %v125_v21, 0.0  ;;  %v134_v30 = vmax.f32 %v126_v22, 0.0  ;;  %v135_v31 = vmax.f32 %v127_v23, 0.0  ;;  %s2542_s2 = sld [smem:[#allocation11 + $0x181]] }
  0x2c   :  { %v136_v32 = vmax.f32 %v128_v24, 0.0  ;;  %v137_v33 = vmax.f32 %v129_v25, 0.0  ;;  %v138_v34 = vmax.f32 %v130_v26, 0.0  ;;  %v139_v35 = vmax.f32 %v131_v27, 0.0  ;;  %s2556_s13 = sld [smem:[#allocation11 + $0x201]] }
  0x2d   :  { %v2414_v36 = vmul.f32 %v141_v18, %v132_v28  ;;  %v2416_v37 = vmul.f32 %v141_v18, %v133_v29  ;;  %v2418_v38 = vmul.f32 %v141_v18, %v134_v30  ;;  %v2420_v39 = vmul.f32 %v141_v18, %v135_v31  ;;  %s2570_s14 = sld [smem:[#allocation8 + $0x2]] }
  0x2e   :  { %v2422_v40 = vmul.f32 %v141_v18, %v136_v32  ;;  %v2424_v41 = vmul.f32 %v141_v18, %v137_v33  ;;  %v2426_v42 = vmul.f32 %v141_v18, %v138_v34  ;;  %v2428_v43 = vmul.f32 %v141_v18, %v139_v35  ;;  %s2576_s15 = sld [smem:[#allocation9 + $0x2]] }
  0x2f   :  { %v2430_v44 = vmul.f32 %v151_v19, %v132_v28  ;;  %v2432_v45 = vmul.f32 %v151_v19, %v133_v29  ;;  %v2434_v46 = vmul.f32 %v151_v19, %v134_v30  ;;  %v2436_v47 = vmul.f32 %v151_v19, %v135_v31  ;;  %s2674_s0 = sld [smem:[#allocation11 + $0x2]] }
  0x30   :  { %v2440_v48 = vmul.f32 %v151_v19, %v136_v32  ;;  %v2442_v49 = vmul.f32 %v151_v19, %v137_v33  ;;  %v2444_v50 = vmul.f32 %v151_v19, %v138_v34  ;;  %v2446_v51 = vmul.f32 %v151_v19, %v139_v35  ;;  %s2680_s16 = sld [smem:[#allocation11 + $0x82]] }
  0x31   :  { %v161_v52 = vstv %s2402_s26  ;;  %v171_v53 = vstv %s2408_s27  ;;  %v181_v54 = vstv %s2410_s28  ;;  %v191_v55 = vstv %s2412_s29  ;;  %s2686_s17 = sld [smem:[#allocation11 + $0x102]] }
  0x32   :  { %v2456_v56 = vmul.f32 %v161_v52, %v132_v28  ;;  %v2458_v57 = vmul.f32 %v161_v52, %v133_v29  ;;  %v2460_v58 = vmul.f32 %v161_v52, %v134_v30  ;;  %v2462_v59 = vmul.f32 %v161_v52, %v135_v31  ;;  %s2700_s18 = sld [smem:[#allocation11 + $0x182]] }
  0x33   :  { %v2466_v60 = vmul.f32 %v161_v52, %v136_v32  ;;  %v2468_v61 = vmul.f32 %v161_v52, %v137_v33  ;;  %v2470_v62 = vmul.f32 %v161_v52, %v138_v34  ;;  %v2472_v63 = vmul.f32 %v161_v52, %v139_v35  ;;  %s2782_s19 = sld [smem:[#allocation11 + $0x202]] }
  0x34   :  { %v2474_v8 = vmul.f32 %v171_v53, %v132_v28  ;;  %v2476_v9 = vmul.f32 %v171_v53, %v133_v29  ;;  %v2478_v10 = vmul.f32 %v171_v53, %v134_v30  ;;  %v2480_v11 = vmul.f32 %v171_v53, %v135_v31  ;;  %s2796_s20 = sld [smem:[#allocation8 + $0x3]] }
  0x35   :  { %v2482_v12 = vmul.f32 %v171_v53, %v136_v32  ;;  %v2484_v13 = vmul.f32 %v171_v53, %v137_v33  ;;  %v2486_v14 = vmul.f32 %v171_v53, %v138_v34  ;;  %v2488_v15 = vmul.f32 %v171_v53, %v139_v35  ;;  %s2810_s21 = sld [smem:[#allocation9 + $0x3]] }
  0x36   :  { %v2490_v16 = vmul.f32 %v181_v54, %v132_v28  ;;  %v2492_v17 = vmul.f32 %v181_v54, %v133_v29  ;;  %v2494_v18 = vmul.f32 %v181_v54, %v134_v30  ;;  %v2496_v19 = vmul.f32 %v181_v54, %v135_v31  ;;  %s2816_s22 = sld [smem:[#allocation11 + $0x3]] }
  0x37   :  { %v2498_v20 = vmul.f32 %v181_v54, %v136_v32  ;;  %v2500_v21 = vmul.f32 %v181_v54, %v137_v33  ;;  %v2502_v22 = vmul.f32 %v181_v54, %v138_v34  ;;  %v2504_v23 = vmul.f32 %v181_v54, %v139_v35  ;;  %s2914_s23 = sld [smem:[#allocation11 + $0x83]] }
  0x38   :  { %v192_v24 = vmul.f32 %v191_v55, %v2382_v0  ;;  %v193_v25 = vmul.f32 %v191_v55, %v2384_v1  ;;  %v194_v26 = vmul.f32 %v191_v55, %v2386_v2  ;;  %v195_v27 = vmul.f32 %v191_v55, %v2388_v3  ;;  %s2920_s1 = sld [smem:[#allocation11 + $0x103]] }
  0x39   :  { %5552 = vst [vmem:[#allocation31_spill] sm:$0xff] %v2502_v22  ;;  %v196_v28 = vmul.f32 %v191_v55, %v2390_v4  ;;  %v197_v29 = vmul.f32 %v191_v55, %v2392_v5  ;;  %v198_v30 = vmul.f32 %v191_v55, %v2394_v6  ;;  %v199_v31 = vmul.f32 %v191_v55, %v2396_v7  ;;  %s2926_s24 = sld [smem:[#allocation11 + $0x183]] }
  0x3a   :  { %5553 = vst [vmem:[#allocation32_spill] sm:$0xff] %v2504_v23  ;;  %v201_v32 = vstv %s2438_s30  ;;  %v219_v33 = vstv %s2448_s8  ;;  %v237_v34 = vstv %s2454_s9  ;;  %v255_v35 = vstv %s2464_s12  ;;  %s2928_s3 = sld [smem:[#allocation11 + $0x203]] }
  0x3b   :  { %v202_v52 = vadd.f32 %v201_v32, %v192_v24  ;;  %v203_v53 = vadd.f32 %v201_v32, %v193_v25  ;;  %v204_v54 = vadd.f32 %v201_v32, %v194_v26  ;;  %v205_v1 = vadd.f32 %v201_v32, %v195_v27  ;;  %s3022_s4 = sld [smem:[#allocation8 + $0x4]] }
  0x3c   :  { %v206_v0 = vadd.f32 %v201_v32, %v196_v28  ;;  %v207_v2 = vadd.f32 %v201_v32, %v197_v29  ;;  %v208_v23 = vadd.f32 %v201_v32, %v198_v30  ;;  %v209_v3 = vadd.f32 %v201_v32, %v199_v31  ;;  %s3036_s5 = sld [smem:[#allocation9 + $0x4]] }
  0x3d   :  { %v2518_v22 = vmax.f32 %v202_v52, 0.0  ;;  %v2520_v4 = vmax.f32 %v203_v53, 0.0  ;;  %v2522_v5 = vmax.f32 %v204_v54, 0.0  ;;  %v2524_v6 = vmax.f32 %v205_v1, 0.0  ;;  %s3050_s25 = sld [smem:[#allocation11 + $0x4]] }
  0x3e   :  { %v2526_v55 = vmax.f32 %v206_v0, 0.0  ;;  %v2528_v7 = vmax.f32 %v207_v2, 0.0  ;;  %v2530_v24 = vmax.f32 %v208_v23, 0.0  ;;  %v2532_v25 = vmax.f32 %v209_v3, 0.0  ;;  %s3056_s26 = sld [smem:[#allocation11 + $0x84]] }
  0x3f   :  { %v220_v26 = vmul.f32 %v219_v33, %v2518_v22  ;;  %v221_v27 = vmul.f32 %v219_v33, %v2520_v4  ;;  %v222_v28 = vmul.f32 %v219_v33, %v2522_v5  ;;  %v223_v29 = vmul.f32 %v219_v33, %v2524_v6  ;;  %s3130_s27 = sld [smem:[#allocation11 + $0x104]] }
  0x40   :  { %v224_v30 = vmul.f32 %v219_v33, %v2526_v55  ;;  %v225_v1 = vmul.f32 %v219_v33, %v2528_v7  ;;  %v226_v0 = vmul.f32 %v219_v33, %v2530_v24  ;;  %v227_v2 = vmul.f32 %v219_v33, %v2532_v25  ;;  %s3140_s28 = sld [smem:[#allocation11 + $0x184]] }
  0x41   :  { %v2545_v3 = vadd.f32 %v220_v26, %v2414_v36  ;;  %v2548_v23 = vadd.f32 %v221_v27, %v2416_v37  ;;  %v2551_v31 = vadd.f32 %v222_v28, %v2418_v38  ;;  %v2554_v32 = vadd.f32 %v223_v29, %v2420_v39  ;;  %s3150_s29 = sld [smem:[#allocation11 + $0x204]] }
  0x42   :  { %v2559_v52 = vadd.f32 %v224_v30, %v2422_v40  ;;  %v2562_v33 = vadd.f32 %v225_v1, %v2424_v41  ;;  %v2565_v36 = vadd.f32 %v226_v0, %v2426_v42  ;;  %v2568_v37 = vadd.f32 %v227_v2, %v2428_v43  ;;  %s3156_s30 = sld [smem:[#allocation8 + $0x5]] }
  0x43   :  { %v238_v38 = vmul.f32 %v237_v34, %v2518_v22  ;;  %v239_v39 = vmul.f32 %v237_v34, %v2520_v4  ;;  %v240_v53 = vmul.f32 %v237_v34, %v2522_v5  ;;  %v241_v40 = vmul.f32 %v237_v34, %v2524_v6  ;;  %s3256_s8 = sld [smem:[#allocation9 + $0x5]] }
  0x44   :  { %v242_v41 = vmul.f32 %v237_v34, %v2526_v55  ;;  %v243_v42 = vmul.f32 %v237_v34, %v2528_v7  ;;  %v244_v54 = vmul.f32 %v237_v34, %v2530_v24  ;;  %v245_v43 = vmul.f32 %v237_v34, %v2532_v25  ;;  %s3262_s9 = sld [smem:[#allocation11 + $0x5]] }
  0x45   :  { %v2583_v26 = vadd.f32 %v238_v38, %v2430_v44  ;;  %v2586_v27 = vadd.f32 %v239_v39, %v2432_v45  ;;  %v2589_v28 = vadd.f32 %v240_v53, %v2434_v46  ;;  %v2592_v29 = vadd.f32 %v241_v40, %v2436_v47  ;;  %s3268_s12 = sld [smem:[#allocation11 + $0x85]] }
  0x46   :  { %v2595_v30 = vadd.f32 %v242_v41, %v2440_v48  ;;  %v2598_v1 = vadd.f32 %v243_v42, %v2442_v49  ;;  %v2601_v34 = vadd.f32 %v244_v54, %v2444_v50  ;;  %v2604_v44 = vadd.f32 %v245_v43, %v2446_v51 }
  0x47   :  { %v256_v45 = vmul.f32 %v255_v35, %v2518_v22  ;;  %v257_v46 = vmul.f32 %v255_v35, %v2520_v4  ;;  %v258_v47 = vmul.f32 %v255_v35, %v2522_v5  ;;  %v259_v48 = vmul.f32 %v255_v35, %v2524_v6 }
  0x48   :  { %v260_v49 = vmul.f32 %v255_v35, %v2526_v55  ;;  %v261_v50 = vmul.f32 %v255_v35, %v2528_v7  ;;  %v262_v0 = vmul.f32 %v255_v35, %v2530_v24  ;;  %v263_v51 = vmul.f32 %v255_v35, %v2532_v25 }
  0x49   :  { %v2615_v2 = vadd.f32 %v256_v45, %v2456_v56  ;;  %v2618_v38 = vadd.f32 %v257_v46, %v2458_v57  ;;  %v2621_v39 = vadd.f32 %v258_v47, %v2460_v58  ;;  %v2624_v53 = vadd.f32 %v259_v48, %v2462_v59 }
  0x4a   :  { %v2627_v40 = vadd.f32 %v260_v49, %v2466_v60  ;;  %v2630_v41 = vadd.f32 %v261_v50, %v2468_v61  ;;  %v2633_v35 = vadd.f32 %v262_v0, %v2470_v62  ;;  %v2636_v56 = vadd.f32 %v263_v51, %v2472_v63 }
  0x4b   :  { %v273_v57 = vstv %s2542_s2  ;;  %v291_v42 = vstv %s2556_s13  ;;  %v309_v54 = vstv %s2570_s14  ;;  %v319_v58 = vstv %s2576_s15  ;;  %s3282_s2 = sld [smem:[#allocation11 + $0x105]] }
  0x4c   :  { %v274_v43 = vmul.f32 %v273_v57, %v2518_v22  ;;  %v275_v59 = vmul.f32 %v273_v57, %v2520_v4  ;;  %v276_v60 = vmul.f32 %v273_v57, %v2522_v5  ;;  %v277_v45 = vmul.f32 %v273_v57, %v2524_v6  ;;  %s3388_s13 = sld [smem:[#allocation11 + $0x185]] }
  0x4d   :  { %v278_v61 = vmul.f32 %v273_v57, %v2526_v55  ;;  %v279_v62 = vmul.f32 %v273_v57, %v2528_v7  ;;  %v280_v46 = vmul.f32 %v273_v57, %v2530_v24  ;;  %v281_v63 = vmul.f32 %v273_v57, %v2532_v25  ;;  %s3402_s14 = sld [smem:[#allocation11 + $0x205]] }
  0x4e   :  { %v2651_v47 = vadd.f32 %v274_v43, %v2474_v8  ;;  %v2654_v48 = vadd.f32 %v275_v59, %v2476_v9  ;;  %v2657_v49 = vadd.f32 %v276_v60, %v2478_v10  ;;  %v2660_v50 = vadd.f32 %v277_v45, %v2480_v11  ;;  %v5559_v59 = vld [vmem:[#allocation24_spill] sm:$0xff]  ;;  %s3416_s15 = sld [smem:[#allocation8 + $0x6]] }
  0x4f   :  { %v2663_v0 = vadd.f32 %v278_v61, %v2482_v12  ;;  %v2666_v51 = vadd.f32 %v279_v62, %v2484_v13  ;;  %v2669_v57 = vadd.f32 %v280_v46, %v2486_v14  ;;  %v2672_v8 = vadd.f32 %v281_v63, %v2488_v15  ;;  %v5561_v61 = vld [vmem:[#allocation26_spill] sm:$0xff]  ;;  %v5562_v46 = vld [vmem:[#allocation27_spill] sm:$0xff]  ;;  %v5563_v63 = vld [vmem:[#allocation28_spill] sm:$0xff] }
  0x50   :  { %v292_v9 = vmul.f32 %v291_v42, %v2518_v22  ;;  %v293_v10 = vmul.f32 %v291_v42, %v2520_v4  ;;  %v294_v11 = vmul.f32 %v291_v42, %v2522_v5  ;;  %v295_v12 = vmul.f32 %v291_v42, %v2524_v6 }
  0x51   :  { %v296_v13 = vmul.f32 %v291_v42, %v2526_v55  ;;  %v297_v14 = vmul.f32 %v291_v42, %v2528_v7  ;;  %v298_v43 = vmul.f32 %v291_v42, %v2530_v24  ;;  %v299_v15 = vmul.f32 %v291_v42, %v2532_v25  ;;  %v5554_v24 = vld [vmem:[#allocation31_spill] sm:$0xff]  ;;  %v5556_v25 = vld [vmem:[#allocation32_spill] sm:$0xff] }
  0x52   :  { %v2689_v22 = vadd.f32 %v292_v9, %v2490_v16  ;;  %v2692_v4 = vadd.f32 %v293_v10, %v2492_v17  ;;  %v2695_v5 = vadd.f32 %v294_v11, %v2494_v18  ;;  %v2698_v6 = vadd.f32 %v295_v12, %v2496_v19  ;;  %v5558_v42 = vld [vmem:[#allocation23_spill] sm:$0xff]  ;;  %v5560_v19 = vld [vmem:[#allocation25_spill] sm:$0xff]  ;;  %v5565_v11 = vld [vmem:[#allocation30_spill] sm:$0xff] }
  0x53   :  { %v2703_v7 = vadd.f32 %v296_v13, %v2498_v20  ;;  %v2706_v55 = vadd.f32 %v297_v14, %v2500_v21  ;;  %v2709_v16 = vadd.f32 %v298_v43, %v5554_v24  ;;  %v2712_v17 = vadd.f32 %v299_v15, %v5556_v25  ;;  %v5564_v21 = vld [vmem:[#allocation29_spill] sm:$0xff] }
  0x54   :  { %v310_v18 = vmul.f32 %v309_v54, %v5558_v42  ;;  %v311_v60 = vmul.f32 %v309_v54, %v5559_v59  ;;  %v312_v45 = vmul.f32 %v309_v54, %v5560_v19  ;;  %v313_v62 = vmul.f32 %v309_v54, %v5561_v61 }
  0x55   :  { %5555 = vst [vmem:[#allocation31_spill] sm:$0xff] %v2709_v16  ;;  %v314_v20 = vmul.f32 %v309_v54, %v5562_v46  ;;  %v315_v9 = vmul.f32 %v309_v54, %v5563_v63  ;;  %v316_v10 = vmul.f32 %v309_v54, %v5564_v21  ;;  %v317_v12 = vmul.f32 %v309_v54, %v5565_v11 }
  0x56   :  { %5557 = vst [vmem:[#allocation32_spill] sm:$0xff] %v2712_v17  ;;  %v320_v13 = vadd.f32 %v319_v58, %v310_v18  ;;  %v321_v14 = vadd.f32 %v319_v58, %v311_v60  ;;  %v322_v43 = vadd.f32 %v319_v58, %v312_v45  ;;  %v323_v15 = vadd.f32 %v319_v58, %v313_v62 }
  0x57   :  { %v324_v24 = vadd.f32 %v319_v58, %v314_v20  ;;  %v325_v25 = vadd.f32 %v319_v58, %v315_v9  ;;  %v326_v19 = vadd.f32 %v319_v58, %v316_v10  ;;  %v327_v61 = vadd.f32 %v319_v58, %v317_v12 }
  0x58   :  { %v2722_v59 = vmax.f32 %v320_v13, 0.0  ;;  %v2724_v46 = vmax.f32 %v321_v14, 0.0  ;;  %v2726_v63 = vmax.f32 %v322_v43, 0.0  ;;  %v2728_v21 = vmax.f32 %v323_v15, 0.0 }
  0x59   :  { %v2730_v54 = vmax.f32 %v324_v24, 0.0  ;;  %v2732_v18 = vmax.f32 %v325_v25, 0.0  ;;  %v2734_v60 = vmax.f32 %v326_v19, 0.0  ;;  %v2736_v45 = vmax.f32 %v327_v61, 0.0 }
  0x5a   :  { %v337_v62 = vstv %s2674_s0  ;;  %v355_v20 = vstv %s2680_s16  ;;  %v373_v9 = vstv %s2686_s17  ;;  %v391_v58 = vstv %s2700_s18  ;;  %s3422_s0 = sld [smem:[#allocation9 + $0x6]] }
  0x5b   :  { %v338_v10 = vmul.f32 %v337_v62, %v2722_v59  ;;  %v339_v12 = vmul.f32 %v337_v62, %v2724_v46  ;;  %v340_v13 = vmul.f32 %v337_v62, %v2726_v63  ;;  %v341_v14 = vmul.f32 %v337_v62, %v2728_v21  ;;  %s3520_s16 = sld [smem:[#allocation11 + $0x6]] }
  0x5c   :  { %v342_v43 = vmul.f32 %v337_v62, %v2730_v54  ;;  %v343_v15 = vmul.f32 %v337_v62, %v2732_v18  ;;  %v344_v19 = vmul.f32 %v337_v62, %v2734_v60  ;;  %v345_v61 = vmul.f32 %v337_v62, %v2736_v45  ;;  %s3526_s17 = sld [smem:[#allocation11 + $0x86]] }
  0x5d   :  { %v2751_v24 = vadd.f32 %v338_v10, %v2545_v3  ;;  %v2754_v25 = vadd.f32 %v339_v12, %v2548_v23  ;;  %v2757_v11 = vadd.f32 %v340_v13, %v2551_v31  ;;  %v2760_v42 = vadd.f32 %v341_v14, %v2554_v32  ;;  %s3532_s18 = sld [smem:[#allocation11 + $0x106]] }
  0x5e   :  { %v2763_v17 = vadd.f32 %v342_v43, %v2559_v52  ;;  %v2766_v16 = vadd.f32 %v343_v15, %v2562_v33  ;;  %v2769_v62 = vadd.f32 %v344_v19, %v2565_v36  ;;  %v2772_v3 = vadd.f32 %v345_v61, %v2568_v37 }
  0x5f   :  { %v356_v23 = vmul.f32 %v355_v20, %v2722_v59  ;;  %v357_v31 = vmul.f32 %v355_v20, %v2724_v46  ;;  %v358_v10 = vmul.f32 %v355_v20, %v2726_v63  ;;  %v359_v32 = vmul.f32 %v355_v20, %v2728_v21 }
  0x60   :  { %v360_v52 = vmul.f32 %v355_v20, %v2730_v54  ;;  %v361_v12 = vmul.f32 %v355_v20, %v2732_v18  ;;  %v362_v33 = vmul.f32 %v355_v20, %v2734_v60  ;;  %v363_v36 = vmul.f32 %v355_v20, %v2736_v45 }
  0x61   :  { %v2785_v37 = vadd.f32 %v356_v23, %v2583_v26  ;;  %v2788_v13 = vadd.f32 %v357_v31, %v2586_v27  ;;  %v2791_v14 = vadd.f32 %v358_v10, %v2589_v28  ;;  %v2794_v43 = vadd.f32 %v359_v32, %v2592_v29 }
  0x62   :  { %v2799_v15 = vadd.f32 %v360_v52, %v2595_v30  ;;  %v2802_v20 = vadd.f32 %v361_v12, %v2598_v1  ;;  %v2805_v26 = vadd.f32 %v362_v33, %v2601_v34  ;;  %v2808_v27 = vadd.f32 %v363_v36, %v2604_v44 }
  0x63   :  { %v374_v28 = vmul.f32 %v373_v9, %v2722_v59  ;;  %v375_v29 = vmul.f32 %v373_v9, %v2724_v46  ;;  %v376_v19 = vmul.f32 %v373_v9, %v2726_v63  ;;  %v377_v30 = vmul.f32 %v373_v9, %v2728_v21 }
  0x64   :  { %v378_v1 = vmul.f32 %v373_v9, %v2730_v54  ;;  %v379_v34 = vmul.f32 %v373_v9, %v2732_v18  ;;  %v380_v61 = vmul.f32 %v373_v9, %v2734_v60  ;;  %v381_v44 = vmul.f32 %v373_v9, %v2736_v45 }
  0x65   :  { %v2823_v23 = vadd.f32 %v374_v28, %v2615_v2  ;;  %v2826_v31 = vadd.f32 %v375_v29, %v2618_v38  ;;  %v2829_v10 = vadd.f32 %v376_v19, %v2621_v39  ;;  %v2832_v32 = vadd.f32 %v377_v30, %v2624_v53 }
  0x66   :  { %v2835_v52 = vadd.f32 %v378_v1, %v2627_v40  ;;  %v2838_v12 = vadd.f32 %v379_v34, %v2630_v41  ;;  %v2841_v9 = vadd.f32 %v380_v61, %v2633_v35  ;;  %v2844_v2 = vadd.f32 %v381_v44, %v2636_v56 }
  0x67   :  { %v392_v38 = vmul.f32 %v391_v58, %v2722_v59  ;;  %v393_v39 = vmul.f32 %v391_v58, %v2724_v46  ;;  %v394_v53 = vmul.f32 %v391_v58, %v2726_v63  ;;  %v395_v40 = vmul.f32 %v391_v58, %v2728_v21 }
  0x68   :  { %v396_v41 = vmul.f32 %v391_v58, %v2730_v54  ;;  %v397_v35 = vmul.f32 %v391_v58, %v2732_v18  ;;  %v398_v33 = vmul.f32 %v391_v58, %v2734_v60  ;;  %v399_v56 = vmul.f32 %v391_v58, %v2736_v45 }
  0x69   :  { %v2855_v36 = vadd.f32 %v392_v38, %v2651_v47  ;;  %v2858_v28 = vadd.f32 %v393_v39, %v2654_v48  ;;  %v2861_v29 = vadd.f32 %v394_v53, %v2657_v49  ;;  %v2864_v19 = vadd.f32 %v395_v40, %v2660_v50 }
  0x6a   :  { %v2867_v30 = vadd.f32 %v396_v41, %v2663_v0  ;;  %v2870_v1 = vadd.f32 %v397_v35, %v2666_v51  ;;  %v2873_v58 = vadd.f32 %v398_v33, %v2669_v57  ;;  %v2876_v47 = vadd.f32 %v399_v56, %v2672_v8  ;;  %v5571_v33 = vld [vmem:[#allocation26_spill] sm:$0xff] }
  0x6b   :  { %v409_v48 = vstv %s2782_s19  ;;  %v427_v34 = vstv %s2796_s20  ;;  %v437_v61 = vstv %s2810_s21  ;;  %v455_v49 = vstv %s2816_s22  ;;  %s3546_s19 = sld [smem:[#allocation11 + $0x186]] }
  0x6c   :  { %v410_v44 = vmul.f32 %v409_v48, %v2722_v59  ;;  %v411_v50 = vmul.f32 %v409_v48, %v2724_v46  ;;  %v412_v0 = vmul.f32 %v409_v48, %v2726_v63  ;;  %v413_v38 = vmul.f32 %v409_v48, %v2728_v21  ;;  %s3628_s20 = sld [smem:[#allocation8 + $0x7]] }
  0x6d   :  { %v414_v51 = vmul.f32 %v409_v48, %v2730_v54  ;;  %v415_v57 = vmul.f32 %v409_v48, %v2732_v18  ;;  %v416_v39 = vmul.f32 %v409_v48, %v2734_v60  ;;  %v417_v8 = vmul.f32 %v409_v48, %v2736_v45  ;;  %v5566_v54 = vld [vmem:[#allocation31_spill] sm:$0xff]  ;;  %v5569_v45 = vld [vmem:[#allocation24_spill] sm:$0xff]  ;;  %s3642_s21 = sld [smem:[#allocation11 + $0x206]] }
  0x6e   :  { %v2891_v53 = vadd.f32 %v410_v44, %v2689_v22  ;;  %v2894_v40 = vadd.f32 %v411_v50, %v2692_v4  ;;  %v2897_v59 = vadd.f32 %v412_v0, %v2695_v5  ;;  %v2900_v46 = vadd.f32 %v413_v38, %v2698_v6  ;;  %v5567_v22 = vld [vmem:[#allocation32_spill] sm:$0xff]  ;;  %v5568_v4 = vld [vmem:[#allocation23_spill] sm:$0xff]  ;;  %v5570_v6 = vld [vmem:[#allocation25_spill] sm:$0xff]  ;;  %s3656_s22 = sld [smem:[#allocation9 + $0x7]] }
  0x6f   :  { %v2903_v63 = vadd.f32 %v414_v51, %v2703_v7  ;;  %v2906_v21 = vadd.f32 %v415_v57, %v2706_v55  ;;  %v2909_v18 = vadd.f32 %v416_v39, %v5566_v54  ;;  %v2912_v60 = vadd.f32 %v417_v8, %v5567_v22  ;;  %v5572_v55 = vld [vmem:[#allocation27_spill] sm:$0xff]  ;;  %v5573_v48 = vld [vmem:[#allocation28_spill] sm:$0xff]  ;;  %v5574_v50 = vld [vmem:[#allocation29_spill] sm:$0xff] }
  0x70   :  { %v428_v5 = vmul.f32 %v427_v34, %v5568_v4  ;;  %v429_v41 = vmul.f32 %v427_v34, %v5569_v45  ;;  %v430_v35 = vmul.f32 %v427_v34, %v5570_v6  ;;  %v431_v7 = vmul.f32 %v427_v34, %v5571_v33  ;;  %v5575_v38 = vld [vmem:[#allocation30_spill] sm:$0xff] }
  0x71   :  { %v432_v56 = vmul.f32 %v427_v34, %v5572_v55  ;;  %v433_v44 = vmul.f32 %v427_v34, %v5573_v48  ;;  %v434_v0 = vmul.f32 %v427_v34, %v5574_v50  ;;  %v435_v51 = vmul.f32 %v427_v34, %v5575_v38 }
  0x72   :  { %v438_v57 = vadd.f32 %v437_v61, %v428_v5  ;;  %v439_v39 = vadd.f32 %v437_v61, %v429_v41  ;;  %v440_v8 = vadd.f32 %v437_v61, %v430_v35  ;;  %v441_v54 = vadd.f32 %v437_v61, %v431_v7 }
  0x73   :  { %v442_v22 = vadd.f32 %v437_v61, %v432_v56  ;;  %v443_v33 = vadd.f32 %v437_v61, %v433_v44  ;;  %v444_v6 = vadd.f32 %v437_v61, %v434_v0  ;;  %v445_v45 = vadd.f32 %v437_v61, %v435_v51 }
  0x74   :  { %v2930_v4 = vmax.f32 %v438_v57, 0.0  ;;  %v2932_v55 = vmax.f32 %v439_v39, 0.0  ;;  %v2934_v48 = vmax.f32 %v440_v8, 0.0  ;;  %v2936_v50 = vmax.f32 %v441_v54, 0.0 }
  0x75   :  { %v2938_v34 = vmax.f32 %v442_v22, 0.0  ;;  %v2940_v5 = vmax.f32 %v443_v33, 0.0  ;;  %v2942_v41 = vmax.f32 %v444_v6, 0.0  ;;  %v2944_v35 = vmax.f32 %v445_v45, 0.0 }
  0x76   :  { %v456_v7 = vmul.f32 %v455_v49, %v2930_v4  ;;  %v457_v61 = vmul.f32 %v455_v49, %v2932_v55  ;;  %v458_v56 = vmul.f32 %v455_v49, %v2934_v48  ;;  %v459_v44 = vmul.f32 %v455_v49, %v2936_v50 }
  0x77   :  { %v460_v0 = vmul.f32 %v455_v49, %v2938_v34  ;;  %v461_v33 = vmul.f32 %v455_v49, %v2940_v5  ;;  %v462_v6 = vmul.f32 %v455_v49, %v2942_v41  ;;  %v463_v45 = vmul.f32 %v455_v49, %v2944_v35 }
  0x78   :  { %v2955_v51 = vadd.f32 %v456_v7, %v2751_v24  ;;  %v2958_v57 = vadd.f32 %v457_v61, %v2754_v25  ;;  %v2961_v39 = vadd.f32 %v458_v56, %v2757_v11  ;;  %v2964_v8 = vadd.f32 %v459_v44, %v2760_v42 }
  0x79   :  { %v2967_v54 = vadd.f32 %v460_v0, %v2763_v17  ;;  %v2970_v22 = vadd.f32 %v461_v33, %v2766_v16  ;;  %v2973_v49 = vadd.f32 %v462_v6, %v2769_v62  ;;  %v2976_v24 = vadd.f32 %v463_v45, %v2772_v3 }
  0x7a   :  { %v473_v25 = vstv %s2914_s23  ;;  %v491_v7 = vstv %s2920_s1  ;;  %v509_v61 = vstv %s2926_s24  ;;  %v527_v11 = vstv %s2928_s3  ;;  %s3662_s23 = sld [smem:[#allocation11 + $0x7]] }
  0x7b   :  { %5576 = vst [vmem:[#allocation31_spill] sm:$0xff] %v2970_v22  ;;  %v474_v56 = vmul.f32 %v473_v25, %v2930_v4  ;;  %v475_v42 = vmul.f32 %v473_v25, %v2932_v55  ;;  %v476_v17 = vmul.f32 %v473_v25, %v2934_v48  ;;  %v477_v44 = vmul.f32 %v473_v25, %v2936_v50  ;;  %s3760_s1 = sld [smem:[#allocation11 + $0x87]] }
  0x7c   :  { %5577 = vst [vmem:[#allocation32_spill] sm:$0xff] %v2973_v49  ;;  %v478_v16 = vmul.f32 %v473_v25, %v2938_v34  ;;  %v479_v62 = vmul.f32 %v473_v25, %v2940_v5  ;;  %v480_v0 = vmul.f32 %v473_v25, %v2942_v41  ;;  %v481_v3 = vmul.f32 %v473_v25, %v2944_v35  ;;  %s3766_s24 = sld [smem:[#allocation11 + $0x107]] }
  0x7d   :  { %5578 = vst [vmem:[#allocation30_spill] sm:$0xff] %v2976_v24  ;;  %v2991_v33 = vadd.f32 %v474_v56, %v2785_v37  ;;  %v2994_v6 = vadd.f32 %v475_v42, %v2788_v13  ;;  %v2997_v45 = vadd.f32 %v476_v17, %v2791_v14  ;;  %v3000_v24 = vadd.f32 %v477_v44, %v2794_v43  ;;  %s3772_s3 = sld [smem:[#allocation11 + $0x187]] }
  0x7e   :  { %v3003_v49 = vadd.f32 %v478_v16, %v2799_v15  ;;  %v3006_v22 = vadd.f32 %v479_v62, %v2802_v20  ;;  %v3009_v25 = vadd.f32 %v480_v0, %v2805_v26  ;;  %v3012_v37 = vadd.f32 %v481_v3, %v2808_v27 }
  0x7f   :  { %v492_v13 = vmul.f32 %v491_v7, %v2930_v4  ;;  %v493_v14 = vmul.f32 %v491_v7, %v2932_v55  ;;  %v494_v56 = vmul.f32 %v491_v7, %v2934_v48  ;;  %v495_v43 = vmul.f32 %v491_v7, %v2936_v50 }
  0x80   :  { %v496_v15 = vmul.f32 %v491_v7, %v2938_v34  ;;  %v497_v42 = vmul.f32 %v491_v7, %v2940_v5  ;;  %v498_v20 = vmul.f32 %v491_v7, %v2942_v41  ;;  %v499_v26 = vmul.f32 %v491_v7, %v2944_v35 }
  0x81   :  { %v3025_v27 = vadd.f32 %v492_v13, %v2823_v23  ;;  %v3028_v17 = vadd.f32 %v493_v14, %v2826_v31  ;;  %v3031_v44 = vadd.f32 %v494_v56, %v2829_v10  ;;  %v3034_v16 = vadd.f32 %v495_v43, %v2832_v32 }
  0x82   :  { %v3039_v62 = vadd.f32 %v496_v15, %v2835_v52  ;;  %v3042_v7 = vadd.f32 %v497_v42, %v2838_v12  ;;  %v3045_v23 = vadd.f32 %v498_v20, %v2841_v9  ;;  %v3048_v31 = vadd.f32 %v499_v26, %v2844_v2  ;;  %v5579_v26 = vld [vmem:[#allocation23_spill] sm:$0xff] }
  0x83   :  { %v510_v10 = vmul.f32 %v509_v61, %v2930_v4  ;;  %v511_v32 = vmul.f32 %v509_v61, %v2932_v55  ;;  %v512_v0 = vmul.f32 %v509_v61, %v2934_v48  ;;  %v513_v52 = vmul.f32 %v509_v61, %v2936_v50 }
  0x84   :  { %v514_v12 = vmul.f32 %v509_v61, %v2938_v34  ;;  %v515_v9 = vmul.f32 %v509_v61, %v2940_v5  ;;  %v516_v3 = vmul.f32 %v509_v61, %v2942_v41  ;;  %v517_v2 = vmul.f32 %v509_v61, %v2944_v35 }
  0x85   :  { %v3063_v13 = vadd.f32 %v510_v10, %v2855_v36  ;;  %v3066_v14 = vadd.f32 %v511_v32, %v2858_v28  ;;  %v3069_v56 = vadd.f32 %v512_v0, %v2861_v29  ;;  %v3072_v43 = vadd.f32 %v513_v52, %v2864_v19  ;;  %v5581_v0 = vld [vmem:[#allocation25_spill] sm:$0xff]  ;;  %v5582_v52 = vld [vmem:[#allocation26_spill] sm:$0xff] }
  0x86   :  { %v3075_v15 = vadd.f32 %v514_v12, %v2867_v30  ;;  %v3078_v42 = vadd.f32 %v515_v9, %v2870_v1  ;;  %v3081_v61 = vadd.f32 %v516_v3, %v2873_v58  ;;  %v3084_v36 = vadd.f32 %v517_v2, %v2876_v47  ;;  %v5584_v3 = vld [vmem:[#allocation28_spill] sm:$0xff]  ;;  %v5585_v2 = vld [vmem:[#allocation29_spill] sm:$0xff] }
  0x87   :  { %v528_v28 = vmul.f32 %v527_v11, %v2930_v4  ;;  %v529_v29 = vmul.f32 %v527_v11, %v2932_v55  ;;  %v530_v19 = vmul.f32 %v527_v11, %v2934_v48  ;;  %v531_v30 = vmul.f32 %v527_v11, %v2936_v50 }
  0x88   :  { %v532_v1 = vmul.f32 %v527_v11, %v2938_v34  ;;  %v533_v58 = vmul.f32 %v527_v11, %v2940_v5  ;;  %v534_v20 = vmul.f32 %v527_v11, %v2942_v41  ;;  %v535_v47 = vmul.f32 %v527_v11, %v2944_v35 }
  0x89   :  { %v3095_v4 = vadd.f32 %v528_v28, %v2891_v53  ;;  %v3098_v55 = vadd.f32 %v529_v29, %v2894_v40  ;;  %v3101_v48 = vadd.f32 %v530_v19, %v2897_v59  ;;  %v3104_v50 = vadd.f32 %v531_v30, %v2900_v46  ;;  %v5580_v46 = vld [vmem:[#allocation24_spill] sm:$0xff] }
  0x8a   :  { %v3107_v34 = vadd.f32 %v532_v1, %v2903_v63  ;;  %v3110_v5 = vadd.f32 %v533_v58, %v2906_v21  ;;  %v3113_v41 = vadd.f32 %v534_v20, %v2909_v18  ;;  %v3116_v53 = vadd.f32 %v535_v47, %v2912_v60  ;;  %v5583_v21 = vld [vmem:[#allocation27_spill] sm:$0xff] }
  0x8b   :  { %v545_v40 = vstv %s3022_s4  ;;  %v555_v35 = vstv %s3036_s5  ;;  %v573_v11 = vstv %s3050_s25  ;;  %v591_v59 = vstv %s3056_s26  ;;  %s3774_s4 = sld [smem:[#allocation11 + $0x207]] }
  0x8c   :  { %v546_v10 = vmul.f32 %v545_v40, %v5579_v26  ;;  %v547_v32 = vmul.f32 %v545_v40, %v5580_v46  ;;  %v548_v63 = vmul.f32 %v545_v40, %v5581_v0  ;;  %v549_v12 = vmul.f32 %v545_v40, %v5582_v52  ;;  %s3868_s5 = sld [smem:[#allocation8 + $0x8]] }
  0x8d   :  { %v550_v9 = vmul.f32 %v545_v40, %v5583_v21  ;;  %v551_v18 = vmul.f32 %v545_v40, %v5584_v3  ;;  %v552_v28 = vmul.f32 %v545_v40, %v5585_v2  ;;  %v553_v60 = vmul.f32 %v545_v40, %v5575_v38  ;;  %s3882_s25 = sld [smem:[#allocation9 + $0x8]] }
  0x8e   :  { %v556_v29 = vadd.f32 %v555_v35, %v546_v10  ;;  %v557_v19 = vadd.f32 %v555_v35, %v547_v32  ;;  %v558_v30 = vadd.f32 %v555_v35, %v548_v63  ;;  %v559_v1 = vadd.f32 %v555_v35, %v549_v12  ;;  %s3896_s26 = sld [smem:[#allocation11 + $0x8]] }
  0x8f   :  { %v560_v58 = vadd.f32 %v555_v35, %v550_v9  ;;  %v561_v20 = vadd.f32 %v555_v35, %v551_v18  ;;  %v562_v47 = vadd.f32 %v555_v35, %v552_v28  ;;  %v563_v26 = vadd.f32 %v555_v35, %v553_v60 }
  0x90   :  { %v3132_v46 = vmax.f32 %v556_v29, 0.0  ;;  %v3134_v0 = vmax.f32 %v557_v19, 0.0  ;;  %v3136_v52 = vmax.f32 %v558_v30, 0.0  ;;  %v3138_v21 = vmax.f32 %v559_v1, 0.0 }
  0x91   :  { %v3142_v38 = vmax.f32 %v560_v58, 0.0  ;;  %v3144_v40 = vmax.f32 %v561_v20, 0.0  ;;  %v3146_v10 = vmax.f32 %v562_v47, 0.0  ;;  %v3148_v32 = vmax.f32 %v563_v26, 0.0  ;;  %v5586_v58 = vld [vmem:[#allocation31_spill] sm:$0xff]  ;;  %v5587_v47 = vld [vmem:[#allocation32_spill] sm:$0xff] }
  0x92   :  { %v574_v35 = vmul.f32 %v573_v11, %v3132_v46  ;;  %v575_v63 = vmul.f32 %v573_v11, %v3134_v0  ;;  %v576_v12 = vmul.f32 %v573_v11, %v3136_v52  ;;  %v577_v9 = vmul.f32 %v573_v11, %v3138_v21 }
  0x93   :  { %v578_v3 = vmul.f32 %v573_v11, %v3142_v38  ;;  %v579_v18 = vmul.f32 %v573_v11, %v3144_v40  ;;  %v580_v2 = vmul.f32 %v573_v11, %v3146_v10  ;;  %v581_v28 = vmul.f32 %v573_v11, %v3148_v32 }
  0x94   :  { %v3163_v60 = vadd.f32 %v574_v35, %v2955_v51  ;;  %v3166_v29 = vadd.f32 %v575_v63, %v2958_v57  ;;  %v3169_v19 = vadd.f32 %v576_v12, %v2961_v39  ;;  %v3172_v30 = vadd.f32 %v577_v9, %v2964_v8  ;;  %v5588_v51 = vld [vmem:[#allocation30_spill] sm:$0xff] }
  0x95   :  { %v3175_v1 = vadd.f32 %v578_v3, %v2967_v54  ;;  %v3178_v20 = vadd.f32 %v579_v18, %v5586_v58  ;;  %v3181_v11 = vadd.f32 %v580_v2, %v5587_v47  ;;  %v3184_v26 = vadd.f32 %v581_v28, %v5588_v51 }
  0x96   :  { %v592_v57 = vmul.f32 %v591_v59, %v3132_v46  ;;  %v593_v39 = vmul.f32 %v591_v59, %v3134_v0  ;;  %v594_v8 = vmul.f32 %v591_v59, %v3136_v52  ;;  %v595_v54 = vmul.f32 %v591_v59, %v3138_v21 }
  0x97   :  { %v596_v35 = vmul.f32 %v591_v59, %v3142_v38  ;;  %v597_v63 = vmul.f32 %v591_v59, %v3144_v40  ;;  %v598_v12 = vmul.f32 %v591_v59, %v3146_v10  ;;  %v599_v9 = vmul.f32 %v591_v59, %v3148_v32 }
  0x98   :  { %v3195_v3 = vadd.f32 %v592_v57, %v2991_v33  ;;  %v3198_v18 = vadd.f32 %v593_v39, %v2994_v6  ;;  %v3201_v2 = vadd.f32 %v594_v8, %v2997_v45  ;;  %v3204_v28 = vadd.f32 %v595_v54, %v3000_v24 }
  0x99   :  { %v3207_v58 = vadd.f32 %v596_v35, %v3003_v49  ;;  %v3210_v47 = vadd.f32 %v597_v63, %v3006_v22  ;;  %v3213_v59 = vadd.f32 %v598_v12, %v3009_v25  ;;  %v3216_v33 = vadd.f32 %v599_v9, %v3012_v37 }
  0x9a   :  { %v609_v6 = vstv %s3130_s27  ;;  %v627_v51 = vstv %s3140_s28  ;;  %v645_v57 = vstv %s3150_s29  ;;  %v3222_v45 = vstv %s3156_s30  ;;  %s3902_s27 = sld [smem:[#allocation11 + $0x88]] }
  0x9b   :  { %5589 = vst [vmem:[#allocation23_spill] sm:$0xff] %v3213_v59  ;;  %v610_v24 = vmul.f32 %v609_v6, %v3132_v46  ;;  %v611_v39 = vmul.f32 %v609_v6, %v3134_v0  ;;  %v612_v49 = vmul.f32 %v609_v6, %v3136_v52  ;;  %v613_v22 = vmul.f32 %v609_v6, %v3138_v21  ;;  %s3976_s28 = sld [smem:[#allocation11 + $0x108]] }
  0x9c   :  { %5590 = vst [vmem:[#allocation24_spill] sm:$0xff] %v3216_v33  ;;  %v614_v8 = vmul.f32 %v609_v6, %v3142_v38  ;;  %v615_v25 = vmul.f32 %v609_v6, %v3144_v40  ;;  %v616_v37 = vmul.f32 %v609_v6, %v3146_v10  ;;  %v617_v54 = vmul.f32 %v609_v6, %v3148_v32  ;;  %s3986_s29 = sld [smem:[#allocation8 + $0x9]] }
  0x9d   :  { %v3233_v35 = vadd.f32 %v610_v24, %v3025_v27  ;;  %v3236_v63 = vadd.f32 %v611_v39, %v3028_v17  ;;  %v3239_v12 = vadd.f32 %v612_v49, %v3031_v44  ;;  %v3242_v9 = vadd.f32 %v613_v22, %v3034_v16  ;;  %s3996_s30 = sld [smem:[#allocation11 + $0x188]] }
  0x9e   :  { %v3245_v33 = vadd.f32 %v614_v8, %v3039_v62  ;;  %v3248_v59 = vadd.f32 %v615_v25, %v3042_v7  ;;  %v3251_v6 = vadd.f32 %v616_v37, %v3045_v23  ;;  %v3254_v27 = vadd.f32 %v617_v54, %v3048_v31 }
  0x9f   :  { %v628_v17 = vmul.f32 %v627_v51, %v3132_v46  ;;  %v629_v44 = vmul.f32 %v627_v51, %v3134_v0  ;;  %v630_v16 = vmul.f32 %v627_v51, %v3136_v52  ;;  %v631_v62 = vmul.f32 %v627_v51, %v3138_v21 }
  0xa0   :  { %v632_v7 = vmul.f32 %v627_v51, %v3142_v38  ;;  %v633_v23 = vmul.f32 %v627_v51, %v3144_v40  ;;  %v634_v24 = vmul.f32 %v627_v51, %v3146_v10  ;;  %v635_v31 = vmul.f32 %v627_v51, %v3148_v32 }
  0xa1   :  { %v3271_v39 = vadd.f32 %v628_v17, %v3063_v13  ;;  %v3274_v49 = vadd.f32 %v629_v44, %v3066_v14  ;;  %v3277_v22 = vadd.f32 %v630_v16, %v3069_v56  ;;  %v3280_v8 = vadd.f32 %v631_v62, %v3072_v43  ;;  %v3352_v62 = vld [vmem:[#allocation3 + $0x30] sm:$0xff] }
  0xa2   :  { %v3285_v25 = vadd.f32 %v632_v7, %v3075_v15  ;;  %v3288_v51 = vadd.f32 %v633_v23, %v3078_v42  ;;  %v3291_v13 = vadd.f32 %v634_v24, %v3081_v61  ;;  %v3294_v14 = vadd.f32 %v635_v31, %v3084_v36  ;;  %5597 = vst [vmem:[#allocation32_spill] sm:$0xff] %v3352_v62  ;;  %v3356_v23 = vld [vmem:[#allocation3 + $0x38] sm:$0xff] }
  0xa3   :  { %v646_v56 = vmul.f32 %v645_v57, %v3132_v46  ;;  %v647_v37 = vmul.f32 %v645_v57, %v3134_v0  ;;  %v648_v43 = vmul.f32 %v645_v57, %v3136_v52  ;;  %v649_v54 = vmul.f32 %v645_v57, %v3138_v21  ;;  %5598 = vst [vmem:[#allocation30_spill] sm:$0xff] %v3356_v23 }
  0xa4   :  { %v650_v15 = vmul.f32 %v645_v57, %v3142_v38  ;;  %v651_v17 = vmul.f32 %v645_v57, %v3144_v40  ;;  %v652_v42 = vmul.f32 %v645_v57, %v3146_v10  ;;  %v653_v61 = vmul.f32 %v645_v57, %v3148_v32  ;;  %v3344_v10 = vld [vmem:[#allocation3 + $0x20] sm:$0xff]  ;;  %v3348_v57 = vld [vmem:[#allocation3 + $0x28] sm:$0xff] }
  0xa5   :  { %v3305_v44 = vadd.f32 %v646_v56, %v3095_v4  ;;  %v3308_v36 = vadd.f32 %v647_v37, %v3098_v55  ;;  %v3311_v46 = vadd.f32 %v648_v43, %v3101_v48  ;;  %v3314_v0 = vadd.f32 %v649_v54, %v3104_v50  ;;  %v3328_v55 = vld [vmem:[#allocation3] sm:$0xff]  ;;  %v3332_v50 = vld [vmem:[#allocation3 + $0x8] sm:$0xff]  ;;  %5595 = vst [vmem:[#allocation29_spill] sm:$0xff] %v3344_v10 }
  0xa6   :  { %v3317_v52 = vadd.f32 %v650_v15, %v3107_v34  ;;  %v3320_v21 = vadd.f32 %v651_v17, %v3110_v5  ;;  %v3323_v38 = vadd.f32 %v652_v42, %v3113_v41  ;;  %v3326_v4 = vadd.f32 %v653_v61, %v3116_v53  ;;  %5591 = vst [vmem:[#allocation25_spill] sm:$0xff] %v3328_v55  ;;  %v3336_v5 = vld [vmem:[#allocation3 + $0x10] sm:$0xff]  ;;  %v3340_v53 = vld [vmem:[#allocation3 + $0x18] sm:$0xff] }
  0xa7   :  { %v664_v48 = vmul.f32 %v3328_v55, %v3222_v45  ;;  %5592 = vst [vmem:[#allocation26_spill] sm:$0xff] %v3332_v50  ;;  %v665_v34 = vmul.f32 %v3332_v50, %v3222_v45  ;;  %v666_v41 = vmul.f32 %v3336_v5, %v3222_v45  ;;  %v667_v40 = vmul.f32 %v3340_v53, %v3222_v45 }
  0xa8   :  { %5593 = vst [vmem:[#allocation27_spill] sm:$0xff] %v3336_v5  ;;  %v668_v32 = vmul.f32 %v3344_v10, %v3222_v45  ;;  %v669_v16 = vmul.f32 %v3348_v57, %v3222_v45  ;;  %v670_v7 = vmul.f32 %v3352_v62, %v3222_v45  ;;  %v671_v24 = vmul.f32 %v3356_v23, %v3222_v45 }
  0xa9   :  { %5594 = vst [vmem:[#allocation28_spill] sm:$0xff] %v3340_v53  ;;  %v673_v31 = vstv %s3256_s8  ;;  %v691_v56 = vstv %s3262_s9  ;;  %v709_v37 = vstv %s3268_s12  ;;  %v727_v43 = vstv %s3282_s2  ;;  %s4002_s8 = sld [smem:[#allocation11 + $0x208]] }
  0xaa   :  { %5596 = vst [vmem:[#allocation31_spill] sm:$0xff] %v3348_v57  ;;  %v674_v54 = vadd.f32 %v673_v31, %v664_v48  ;;  %v675_v15 = vadd.f32 %v673_v31, %v665_v34  ;;  %v676_v17 = vadd.f32 %v673_v31, %v666_v41  ;;  %v677_v42 = vadd.f32 %v673_v31, %v667_v40  ;;  %s4100_s9 = sld [smem:[#allocation9 + $0x9]] }
  0xab   :  { %v678_v61 = vadd.f32 %v673_v31, %v668_v32  ;;  %v679_v57 = vadd.f32 %v673_v31, %v669_v16  ;;  %v680_v10 = vadd.f32 %v673_v31, %v670_v7  ;;  %v681_v53 = vadd.f32 %v673_v31, %v671_v24  ;;  %s4106_s12 = sld [smem:[#allocation11 + $0x9]] }
  0xac   :  { %v3364_v5 = vmax.f32 %v674_v54, 0.0  ;;  %v3366_v62 = vmax.f32 %v675_v15, 0.0  ;;  %v3368_v50 = vmax.f32 %v676_v17, 0.0  ;;  %v3370_v55 = vmax.f32 %v677_v42, 0.0  ;;  %s4112_s2 = sld [smem:[#allocation11 + $0x89]] }
  0xad   :  { %v3372_v45 = vmax.f32 %v678_v61, 0.0  ;;  %v3374_v23 = vmax.f32 %v679_v57, 0.0  ;;  %v3376_v48 = vmax.f32 %v680_v10, 0.0  ;;  %v3378_v34 = vmax.f32 %v681_v53, 0.0 }
  0xae   :  { %v692_v41 = vmul.f32 %v691_v56, %v3364_v5  ;;  %v693_v40 = vmul.f32 %v691_v56, %v3366_v62  ;;  %v694_v32 = vmul.f32 %v691_v56, %v3368_v50  ;;  %v695_v16 = vmul.f32 %v691_v56, %v3370_v55 }
  0xaf   :  { %v696_v7 = vmul.f32 %v691_v56, %v3372_v45  ;;  %v697_v24 = vmul.f32 %v691_v56, %v3374_v23  ;;  %v698_v31 = vmul.f32 %v691_v56, %v3376_v48  ;;  %v699_v57 = vmul.f32 %v691_v56, %v3378_v34 }
  0xb0   :  { %v3391_v53 = vadd.f32 %v692_v41, %v3163_v60  ;;  %v3394_v10 = vadd.f32 %v693_v40, %v3166_v29  ;;  %v3397_v54 = vadd.f32 %v694_v32, %v3169_v19  ;;  %v3400_v15 = vadd.f32 %v695_v16, %v3172_v30 }
  0xb1   :  { %v3405_v17 = vadd.f32 %v696_v7, %v3175_v1  ;;  %v3408_v56 = vadd.f32 %v697_v24, %v3178_v20  ;;  %v3411_v60 = vadd.f32 %v698_v31, %v3181_v11  ;;  %v3414_v29 = vadd.f32 %v699_v57, %v3184_v26  ;;  %v5599_v31 = vld [vmem:[#allocation23_spill] sm:$0xff] }
  0xb2   :  { %v710_v19 = vmul.f32 %v709_v37, %v3364_v5  ;;  %v711_v30 = vmul.f32 %v709_v37, %v3366_v62  ;;  %v712_v42 = vmul.f32 %v709_v37, %v3368_v50  ;;  %v713_v1 = vmul.f32 %v709_v37, %v3370_v55 }
  0xb3   :  { %v714_v20 = vmul.f32 %v709_v37, %v3372_v45  ;;  %v715_v11 = vmul.f32 %v709_v37, %v3374_v23  ;;  %v716_v61 = vmul.f32 %v709_v37, %v3376_v48  ;;  %v717_v26 = vmul.f32 %v709_v37, %v3378_v34 }
  0xb4   :  { %v3429_v41 = vadd.f32 %v710_v19, %v3195_v3  ;;  %v3432_v40 = vadd.f32 %v711_v30, %v3198_v18  ;;  %v3435_v32 = vadd.f32 %v712_v42, %v3201_v2  ;;  %v3438_v16 = vadd.f32 %v713_v1, %v3204_v28  ;;  %v5600_v3 = vld [vmem:[#allocation24_spill] sm:$0xff] }
  0xb5   :  { %v3441_v7 = vadd.f32 %v714_v20, %v3207_v58  ;;  %v3444_v24 = vadd.f32 %v715_v11, %v3210_v47  ;;  %v3447_v37 = vadd.f32 %v716_v61, %v5599_v31  ;;  %v3450_v57 = vadd.f32 %v717_v26, %v5600_v3 }
  0xb6   :  { %v728_v18 = vmul.f32 %v727_v43, %v3364_v5  ;;  %v729_v2 = vmul.f32 %v727_v43, %v3366_v62  ;;  %v730_v28 = vmul.f32 %v727_v43, %v3368_v50  ;;  %v731_v58 = vmul.f32 %v727_v43, %v3370_v55 }
  0xb7   :  { %v732_v47 = vmul.f32 %v727_v43, %v3372_v45  ;;  %v733_v19 = vmul.f32 %v727_v43, %v3374_v23  ;;  %v734_v30 = vmul.f32 %v727_v43, %v3376_v48  ;;  %v735_v42 = vmul.f32 %v727_v43, %v3378_v34 }
  0xb8   :  { %v3461_v1 = vadd.f32 %v728_v18, %v3233_v35  ;;  %v3464_v20 = vadd.f32 %v729_v2, %v3236_v63  ;;  %v3467_v11 = vadd.f32 %v730_v28, %v3239_v12  ;;  %v3470_v61 = vadd.f32 %v731_v58, %v3242_v9 }
  0xb9   :  { %v3473_v26 = vadd.f32 %v732_v47, %v3245_v33  ;;  %v3476_v31 = vadd.f32 %v733_v19, %v3248_v59  ;;  %v3479_v43 = vadd.f32 %v734_v30, %v3251_v6  ;;  %v3482_v35 = vadd.f32 %v735_v42, %v3254_v27 }
  0xba   :  { %v745_v63 = vstv %s3388_s13  ;;  %v763_v3 = vstv %s3402_s14  ;;  %v781_v18 = vstv %s3416_s15  ;;  %v791_v12 = vstv %s3422_s0  ;;  %s4126_s13 = sld [smem:[#allocation11 + $0x109]] }
  0xbb   :  { %5601 = vst [vmem:[#allocation23_spill] sm:$0xff] %v3479_v43  ;;  %v746_v2 = vmul.f32 %v745_v63, %v3364_v5  ;;  %v747_v9 = vmul.f32 %v745_v63, %v3366_v62  ;;  %v748_v33 = vmul.f32 %v745_v63, %v3368_v50  ;;  %v749_v28 = vmul.f32 %v745_v63, %v3370_v55  ;;  %s4208_s14 = sld [smem:[#allocation8 + $0xa]] }
  0xbc   :  { %5602 = vst [vmem:[#allocation24_spill] sm:$0xff] %v3482_v35  ;;  %v750_v59 = vmul.f32 %v745_v63, %v3372_v45  ;;  %v751_v6 = vmul.f32 %v745_v63, %v3374_v23  ;;  %v752_v58 = vmul.f32 %v745_v63, %v3376_v48  ;;  %v753_v27 = vmul.f32 %v745_v63, %v3378_v34  ;;  %s4222_s15 = sld [smem:[#allocation11 + $0x189]] }
  0xbd   :  { %v3497_v47 = vadd.f32 %v746_v2, %v3271_v39  ;;  %v3500_v19 = vadd.f32 %v747_v9, %v3274_v49  ;;  %v3503_v30 = vadd.f32 %v748_v33, %v3277_v22  ;;  %v3506_v42 = vadd.f32 %v749_v28, %v3280_v8  ;;  %v5606_v33 = vld [vmem:[#allocation28_spill] sm:$0xff]  ;;  %s4236_s0 = sld [smem:[#allocation11 + $0x209]] }
  0xbe   :  { %v3509_v35 = vadd.f32 %v750_v59, %v3285_v25  ;;  %v3512_v43 = vadd.f32 %v751_v6, %v3288_v51  ;;  %v3515_v63 = vadd.f32 %v752_v58, %v3291_v13  ;;  %v3518_v39 = vadd.f32 %v753_v27, %v3294_v14  ;;  %v5607_v59 = vld [vmem:[#allocation29_spill] sm:$0xff]  ;;  %v5608_v6 = vld [vmem:[#allocation31_spill] sm:$0xff] }
  0xbf   :  { %v764_v49 = vmul.f32 %v763_v3, %v3364_v5  ;;  %v765_v22 = vmul.f32 %v763_v3, %v3366_v62  ;;  %v766_v8 = vmul.f32 %v763_v3, %v3368_v50  ;;  %v767_v25 = vmul.f32 %v763_v3, %v3370_v55 }
  0xc0   :  { %v768_v51 = vmul.f32 %v763_v3, %v3372_v45  ;;  %v769_v13 = vmul.f32 %v763_v3, %v3374_v23  ;;  %v770_v2 = vmul.f32 %v763_v3, %v3376_v48  ;;  %v771_v14 = vmul.f32 %v763_v3, %v3378_v34  ;;  %v5603_v48 = vld [vmem:[#allocation25_spill] sm:$0xff]  ;;  %v5604_v34 = vld [vmem:[#allocation26_spill] sm:$0xff] }
  0xc1   :  { %v3535_v5 = vadd.f32 %v764_v49, %v3305_v44  ;;  %v3538_v62 = vadd.f32 %v765_v22, %v3308_v36  ;;  %v3541_v55 = vadd.f32 %v766_v8, %v3311_v46  ;;  %v3544_v50 = vadd.f32 %v767_v25, %v3314_v0  ;;  %v5605_v0 = vld [vmem:[#allocation27_spill] sm:$0xff]  ;;  %v5610_v49 = vld [vmem:[#allocation30_spill] sm:$0xff] }
  0xc2   :  { %v3549_v23 = vadd.f32 %v768_v51, %v3317_v52  ;;  %v3552_v45 = vadd.f32 %v769_v13, %v3320_v21  ;;  %v3555_v44 = vadd.f32 %v770_v2, %v3323_v38  ;;  %v3558_v36 = vadd.f32 %v771_v14, %v3326_v4  ;;  %v5609_v21 = vld [vmem:[#allocation32_spill] sm:$0xff] }
  0xc3   :  { %v782_v46 = vmul.f32 %v5603_v48, %v781_v18  ;;  %v783_v3 = vmul.f32 %v5604_v34, %v781_v18  ;;  %v784_v9 = vmul.f32 %v5605_v0, %v781_v18  ;;  %v785_v28 = vmul.f32 %v5606_v33, %v781_v18 }
  0xc4   :  { %v786_v52 = vmul.f32 %v5607_v59, %v781_v18  ;;  %v787_v58 = vmul.f32 %v5608_v6, %v781_v18  ;;  %v788_v27 = vmul.f32 %v5609_v21, %v781_v18  ;;  %v789_v38 = vmul.f32 %v5610_v49, %v781_v18 }
  0xc5   :  { %v792_v22 = vadd.f32 %v791_v12, %v782_v46  ;;  %v793_v4 = vadd.f32 %v791_v12, %v783_v3  ;;  %v794_v8 = vadd.f32 %v791_v12, %v784_v9  ;;  %v795_v25 = vadd.f32 %v791_v12, %v785_v28 }
  0xc6   :  { %v796_v51 = vadd.f32 %v791_v12, %v786_v52  ;;  %v797_v13 = vadd.f32 %v791_v12, %v787_v58  ;;  %v798_v2 = vadd.f32 %v791_v12, %v788_v27  ;;  %v799_v14 = vadd.f32 %v791_v12, %v789_v38 }
  0xc7   :  { %v3568_v33 = vmax.f32 %v792_v22, 0.0  ;;  %v3570_v59 = vmax.f32 %v793_v4, 0.0  ;;  %v3572_v6 = vmax.f32 %v794_v8, 0.0  ;;  %v3574_v21 = vmax.f32 %v795_v25, 0.0 }
  0xc8   :  { %v3576_v18 = vmax.f32 %v796_v51, 0.0  ;;  %v3578_v46 = vmax.f32 %v797_v13, 0.0  ;;  %v3580_v3 = vmax.f32 %v798_v2, 0.0  ;;  %v3582_v9 = vmax.f32 %v799_v14, 0.0 }
  0xc9   :  { %v809_v28 = vstv %s3520_s16  ;;  %v827_v52 = vstv %s3526_s17  ;;  %v845_v58 = vstv %s3532_s18  ;;  %v863_v12 = vstv %s3546_s19  ;;  %s4242_s16 = sld [smem:[#allocation9 + $0xa]] }
  0xca   :  { %v810_v27 = vmul.f32 %v809_v28, %v3568_v33  ;;  %v811_v38 = vmul.f32 %v809_v28, %v3570_v59  ;;  %v812_v22 = vmul.f32 %v809_v28, %v3572_v6  ;;  %v813_v4 = vmul.f32 %v809_v28, %v3574_v21  ;;  %s4340_s17 = sld [smem:[#allocation11 + $0xa]] }
  0xcb   :  { %v814_v8 = vmul.f32 %v809_v28, %v3576_v18  ;;  %v815_v25 = vmul.f32 %v809_v28, %v3578_v46  ;;  %v816_v51 = vmul.f32 %v809_v28, %v3580_v3  ;;  %v817_v13 = vmul.f32 %v809_v28, %v3582_v9  ;;  %s4346_s18 = sld [smem:[#allocation11 + $0x8a]] }
  0xcc   :  { %v3597_v2 = vadd.f32 %v810_v27, %v3391_v53  ;;  %v3600_v14 = vadd.f32 %v811_v38, %v3394_v10  ;;  %v3603_v49 = vadd.f32 %v812_v22, %v3397_v54  ;;  %v3606_v0 = vadd.f32 %v813_v4, %v3400_v15  ;;  %s4352_s19 = sld [smem:[#allocation11 + $0x10a]] }
  0xcd   :  { %v3609_v34 = vadd.f32 %v814_v8, %v3405_v17  ;;  %v3612_v48 = vadd.f32 %v815_v25, %v3408_v56  ;;  %v3615_v28 = vadd.f32 %v816_v51, %v3411_v60  ;;  %v3618_v53 = vadd.f32 %v817_v13, %v3414_v29 }
  0xce   :  { %v828_v10 = vmul.f32 %v827_v52, %v3568_v33  ;;  %v829_v54 = vmul.f32 %v827_v52, %v3570_v59  ;;  %v830_v27 = vmul.f32 %v827_v52, %v3572_v6  ;;  %v831_v15 = vmul.f32 %v827_v52, %v3574_v21 }
  0xcf   :  { %v832_v17 = vmul.f32 %v827_v52, %v3576_v18  ;;  %v833_v38 = vmul.f32 %v827_v52, %v3578_v46  ;;  %v834_v56 = vmul.f32 %v827_v52, %v3580_v3  ;;  %v835_v60 = vmul.f32 %v827_v52, %v3582_v9 }
  0xd0   :  { %v3631_v29 = vadd.f32 %v828_v10, %v3429_v41  ;;  %v3634_v22 = vadd.f32 %v829_v54, %v3432_v40  ;;  %v3637_v4 = vadd.f32 %v830_v27, %v3435_v32  ;;  %v3640_v8 = vadd.f32 %v831_v15, %v3438_v16 }
  0xd1   :  { %v3645_v25 = vadd.f32 %v832_v17, %v3441_v7  ;;  %v3648_v52 = vadd.f32 %v833_v38, %v3444_v24  ;;  %v3651_v41 = vadd.f32 %v834_v56, %v3447_v37  ;;  %v3654_v40 = vadd.f32 %v835_v60, %v3450_v57  ;;  %v5611_v56 = vld [vmem:[#allocation23_spill] sm:$0xff] }
  0xd2   :  { %v846_v32 = vmul.f32 %v845_v58, %v3568_v33  ;;  %v847_v16 = vmul.f32 %v845_v58, %v3570_v59  ;;  %v848_v51 = vmul.f32 %v845_v58, %v3572_v6  ;;  %v849_v7 = vmul.f32 %v845_v58, %v3574_v21 }
  0xd3   :  { %v850_v24 = vmul.f32 %v845_v58, %v3576_v18  ;;  %v851_v37 = vmul.f32 %v845_v58, %v3578_v46  ;;  %v852_v13 = vmul.f32 %v845_v58, %v3580_v3  ;;  %v853_v57 = vmul.f32 %v845_v58, %v3582_v9 }
  0xd4   :  { %v3669_v10 = vadd.f32 %v846_v32, %v3461_v1  ;;  %v3672_v54 = vadd.f32 %v847_v16, %v3464_v20  ;;  %v3675_v27 = vadd.f32 %v848_v51, %v3467_v11  ;;  %v3678_v15 = vadd.f32 %v849_v7, %v3470_v61  ;;  %v5612_v1 = vld [vmem:[#allocation24_spill] sm:$0xff] }
  0xd5   :  { %v3681_v17 = vadd.f32 %v850_v24, %v3473_v26  ;;  %v3684_v38 = vadd.f32 %v851_v37, %v3476_v31  ;;  %v3687_v58 = vadd.f32 %v852_v13, %v5611_v56  ;;  %v3690_v60 = vadd.f32 %v853_v57, %v5612_v1 }
  0xd6   :  { %v864_v20 = vmul.f32 %v863_v12, %v3568_v33  ;;  %v865_v11 = vmul.f32 %v863_v12, %v3570_v59  ;;  %v866_v61 = vmul.f32 %v863_v12, %v3572_v6  ;;  %v867_v26 = vmul.f32 %v863_v12, %v3574_v21 }
  0xd7   :  { %v868_v31 = vmul.f32 %v863_v12, %v3576_v18  ;;  %v869_v32 = vmul.f32 %v863_v12, %v3578_v46  ;;  %v870_v16 = vmul.f32 %v863_v12, %v3580_v3  ;;  %v871_v51 = vmul.f32 %v863_v12, %v3582_v9 }
  0xd8   :  { %v3701_v7 = vadd.f32 %v864_v20, %v3497_v47  ;;  %v3704_v24 = vadd.f32 %v865_v11, %v3500_v19  ;;  %v3707_v37 = vadd.f32 %v866_v61, %v3503_v30  ;;  %v3710_v13 = vadd.f32 %v867_v26, %v3506_v42 }
  0xd9   :  { %v3713_v57 = vadd.f32 %v868_v31, %v3509_v35  ;;  %v3716_v56 = vadd.f32 %v869_v32, %v3512_v43  ;;  %v3719_v12 = vadd.f32 %v870_v16, %v3515_v63  ;;  %v3722_v47 = vadd.f32 %v871_v51, %v3518_v39  ;;  %v5616_v16 = vld [vmem:[#allocation28_spill] sm:$0xff] }
  0xda   :  { %v881_v19 = vstv %s3642_s21  ;;  %v899_v1 = vstv %s3628_s20  ;;  %v909_v20 = vstv %s3656_s22  ;;  %v927_v30 = vstv %s3662_s23  ;;  %s4366_s20 = sld [smem:[#allocation11 + $0x18a]] }
  0xdb   :  { %v882_v11 = vmul.f32 %v881_v19, %v3568_v33  ;;  %v883_v42 = vmul.f32 %v881_v19, %v3570_v59  ;;  %v884_v35 = vmul.f32 %v881_v19, %v3572_v6  ;;  %v885_v61 = vmul.f32 %v881_v19, %v3574_v21  ;;  %s4464_s21 = sld [smem:[#allocation8 + $0xb]] }
  0xdc   :  { %v886_v43 = vmul.f32 %v881_v19, %v3576_v18  ;;  %v887_v63 = vmul.f32 %v881_v19, %v3578_v46  ;;  %v888_v26 = vmul.f32 %v881_v19, %v3580_v3  ;;  %v889_v39 = vmul.f32 %v881_v19, %v3582_v9  ;;  %v5614_v46 = vld [vmem:[#allocation26_spill] sm:$0xff]  ;;  %v5618_v19 = vld [vmem:[#allocation31_spill] sm:$0xff]  ;;  %s4478_s22 = sld [smem:[#allocation11 + $0x20a]] }
  0xdd   :  { %v3737_v31 = vadd.f32 %v882_v11, %v3535_v5  ;;  %v3740_v32 = vadd.f32 %v883_v42, %v3538_v62  ;;  %v3743_v33 = vadd.f32 %v884_v35, %v3541_v55  ;;  %v3746_v59 = vadd.f32 %v885_v61, %v3544_v50  ;;  %v5613_v62 = vld [vmem:[#allocation25_spill] sm:$0xff]  ;;  %v5615_v50 = vld [vmem:[#allocation27_spill] sm:$0xff]  ;;  %v5619_v11 = vld [vmem:[#allocation32_spill] sm:$0xff]  ;;  %s4492_s23 = sld [smem:[#allocation9 + $0xb]] }
  0xde   :  { %v3749_v6 = vadd.f32 %v886_v43, %v3549_v23  ;;  %v3752_v21 = vadd.f32 %v887_v63, %v3552_v45  ;;  %v3755_v18 = vadd.f32 %v888_v26, %v3555_v44  ;;  %v3758_v5 = vadd.f32 %v889_v39, %v3558_v36  ;;  %v5617_v45 = vld [vmem:[#allocation29_spill] sm:$0xff]  ;;  %v5620_v36 = vld [vmem:[#allocation30_spill] sm:$0xff] }
  0xdf   :  { %v900_v55 = vmul.f32 %v5613_v62, %v899_v1  ;;  %v901_v3 = vmul.f32 %v5614_v46, %v899_v1  ;;  %v902_v9 = vmul.f32 %v5615_v50, %v899_v1  ;;  %v903_v23 = vmul.f32 %v5616_v16, %v899_v1 }
  0xe0   :  { %v904_v51 = vmul.f32 %v5617_v45, %v899_v1  ;;  %v905_v44 = vmul.f32 %v5618_v19, %v899_v1  ;;  %v906_v42 = vmul.f32 %v5619_v11, %v899_v1  ;;  %v907_v35 = vmul.f32 %v5620_v36, %v899_v1 }
  0xe1   :  { %v910_v61 = vadd.f32 %v909_v20, %v900_v55  ;;  %v911_v43 = vadd.f32 %v909_v20, %v901_v3  ;;  %v912_v63 = vadd.f32 %v909_v20, %v902_v9  ;;  %v913_v26 = vadd.f32 %v909_v20, %v903_v23 }
  0xe2   :  { %v914_v39 = vadd.f32 %v909_v20, %v904_v51  ;;  %v915_v16 = vadd.f32 %v909_v20, %v905_v44  ;;  %v916_v50 = vadd.f32 %v909_v20, %v906_v42  ;;  %v917_v46 = vadd.f32 %v909_v20, %v907_v35 }
  0xe3   :  { %v3776_v62 = vmax.f32 %v910_v61, 0.0  ;;  %v3778_v45 = vmax.f32 %v911_v43, 0.0  ;;  %v3780_v19 = vmax.f32 %v912_v63, 0.0  ;;  %v3782_v11 = vmax.f32 %v913_v26, 0.0 }
  0xe4   :  { %v3784_v1 = vmax.f32 %v914_v39, 0.0  ;;  %v3786_v55 = vmax.f32 %v915_v16, 0.0  ;;  %v3788_v3 = vmax.f32 %v916_v50, 0.0  ;;  %v3790_v9 = vmax.f32 %v917_v46, 0.0 }
  0xe5   :  { %v928_v23 = vmul.f32 %v927_v30, %v3776_v62  ;;  %v929_v20 = vmul.f32 %v927_v30, %v3778_v45  ;;  %v930_v51 = vmul.f32 %v927_v30, %v3780_v19  ;;  %v931_v44 = vmul.f32 %v927_v30, %v3782_v11 }
  0xe6   :  { %v932_v42 = vmul.f32 %v927_v30, %v3784_v1  ;;  %v933_v16 = vmul.f32 %v927_v30, %v3786_v55  ;;  %v934_v50 = vmul.f32 %v927_v30, %v3788_v3  ;;  %v935_v46 = vmul.f32 %v927_v30, %v3790_v9 }
  0xe7   :  { %v3801_v35 = vadd.f32 %v928_v23, %v3597_v2  ;;  %v3804_v61 = vadd.f32 %v929_v20, %v3600_v14  ;;  %v3807_v43 = vadd.f32 %v930_v51, %v3603_v49  ;;  %v3810_v63 = vadd.f32 %v931_v44, %v3606_v0 }
  0xe8   :  { %v3813_v26 = vadd.f32 %v932_v42, %v3609_v34  ;;  %v3816_v39 = vadd.f32 %v933_v16, %v3612_v48  ;;  %v3819_v30 = vadd.f32 %v934_v50, %v3615_v28  ;;  %v3822_v2 = vadd.f32 %v935_v46, %v3618_v53 }
  0xe9   :  { %v945_v14 = vstv %s3760_s1  ;;  %v963_v23 = vstv %s3766_s24  ;;  %v981_v20 = vstv %s3772_s3  ;;  %v999_v49 = vstv %s3774_s4  ;;  %s4498_s1 = sld [smem:[#allocation11 + $0xb]] }
  0xea   :  { %5621 = vst [vmem:[#allocation23_spill] sm:$0xff] %v3816_v39  ;;  %v946_v51 = vmul.f32 %v945_v14, %v3776_v62  ;;  %v947_v0 = vmul.f32 %v945_v14, %v3778_v45  ;;  %v948_v34 = vmul.f32 %v945_v14, %v3780_v19  ;;  %v949_v44 = vmul.f32 %v945_v14, %v3782_v11  ;;  %s4596_s24 = sld [smem:[#allocation11 + $0x8b]] }
  0xeb   :  { %5622 = vst [vmem:[#allocation24_spill] sm:$0xff] %v3819_v30  ;;  %v950_v48 = vmul.f32 %v945_v14, %v3784_v1  ;;  %v951_v28 = vmul.f32 %v945_v14, %v3786_v55  ;;  %v952_v42 = vmul.f32 %v945_v14, %v3788_v3  ;;  %v953_v53 = vmul.f32 %v945_v14, %v3790_v9  ;;  %s4602_s3 = sld [smem:[#allocation11 + $0x10b]] }
  0xec   :  { %5623 = vst [vmem:[#allocation33_spill] sm:$0xff] %v3822_v2  ;;  %v3837_v16 = vadd.f32 %v946_v51, %v3631_v29  ;;  %v3840_v50 = vadd.f32 %v947_v0, %v3634_v22  ;;  %v3843_v46 = vadd.f32 %v948_v34, %v3637_v4  ;;  %v3846_v2 = vadd.f32 %v949_v44, %v3640_v8  ;;  %s4608_s4 = sld [smem:[#allocation11 + $0x18b]] }
  0xed   :  { %v3849_v30 = vadd.f32 %v950_v48, %v3645_v25  ;;  %v3852_v39 = vadd.f32 %v951_v28, %v3648_v52  ;;  %v3855_v14 = vadd.f32 %v952_v42, %v3651_v41  ;;  %v3858_v29 = vadd.f32 %v953_v53, %v3654_v40 }
  0xee   :  { %v964_v22 = vmul.f32 %v963_v23, %v3776_v62  ;;  %v965_v4 = vmul.f32 %v963_v23, %v3778_v45  ;;  %v966_v51 = vmul.f32 %v963_v23, %v3780_v19  ;;  %v967_v8 = vmul.f32 %v963_v23, %v3782_v11 }
  0xef   :  { %v968_v25 = vmul.f32 %v963_v23, %v3784_v1  ;;  %v969_v0 = vmul.f32 %v963_v23, %v3786_v55  ;;  %v970_v52 = vmul.f32 %v963_v23, %v3788_v3  ;;  %v971_v41 = vmul.f32 %v963_v23, %v3790_v9 }
  0xf0   :  { %v3871_v40 = vadd.f32 %v964_v22, %v3669_v10  ;;  %v3874_v34 = vadd.f32 %v965_v4, %v3672_v54  ;;  %v3877_v44 = vadd.f32 %v966_v51, %v3675_v27  ;;  %v3880_v48 = vadd.f32 %v967_v8, %v3678_v15 }
  0xf1   :  { %v3885_v28 = vadd.f32 %v968_v25, %v3681_v17  ;;  %v3888_v23 = vadd.f32 %v969_v0, %v3684_v38  ;;  %v3891_v10 = vadd.f32 %v970_v52, %v3687_v58  ;;  %v3894_v54 = vadd.f32 %v971_v41, %v3690_v60  ;;  %v5624_v41 = vld [vmem:[#allocation25_spill] sm:$0xff] }
  0xf2   :  { %v982_v27 = vmul.f32 %v981_v20, %v3776_v62  ;;  %v983_v15 = vmul.f32 %v981_v20, %v3778_v45  ;;  %v984_v42 = vmul.f32 %v981_v20, %v3780_v19  ;;  %v985_v17 = vmul.f32 %v981_v20, %v3782_v11 }
  0xf3   :  { %v986_v38 = vmul.f32 %v981_v20, %v3784_v1  ;;  %v987_v58 = vmul.f32 %v981_v20, %v3786_v55  ;;  %v988_v53 = vmul.f32 %v981_v20, %v3788_v3  ;;  %v989_v60 = vmul.f32 %v981_v20, %v3790_v9 }
  0xf4   :  { %v3909_v22 = vadd.f32 %v982_v27, %v3701_v7  ;;  %v3912_v4 = vadd.f32 %v983_v15, %v3704_v24  ;;  %v3915_v51 = vadd.f32 %v984_v42, %v3707_v37  ;;  %v3918_v8 = vadd.f32 %v985_v17, %v3710_v13  ;;  %v5626_v42 = vld [vmem:[#allocation27_spill] sm:$0xff]  ;;  %v5627_v17 = vld [vmem:[#allocation28_spill] sm:$0xff] }
  0xf5   :  { %v3921_v25 = vadd.f32 %v986_v38, %v3713_v57  ;;  %v3924_v0 = vadd.f32 %v987_v58, %v3716_v56  ;;  %v3927_v20 = vadd.f32 %v988_v53, %v3719_v12  ;;  %v3930_v7 = vadd.f32 %v989_v60, %v3722_v47  ;;  %v5629_v53 = vld [vmem:[#allocation31_spill] sm:$0xff]  ;;  %v5630_v60 = vld [vmem:[#allocation32_spill] sm:$0xff] }
  0xf6   :  { %v1000_v24 = vmul.f32 %v999_v49, %v3776_v62  ;;  %v1001_v37 = vmul.f32 %v999_v49, %v3778_v45  ;;  %v1002_v13 = vmul.f32 %v999_v49, %v3780_v19  ;;  %v1003_v57 = vmul.f32 %v999_v49, %v3782_v11 }
  0xf7   :  { %v1004_v56 = vmul.f32 %v999_v49, %v3784_v1  ;;  %v1005_v12 = vmul.f32 %v999_v49, %v3786_v55  ;;  %v1006_v52 = vmul.f32 %v999_v49, %v3788_v3  ;;  %v1007_v47 = vmul.f32 %v999_v49, %v3790_v9 }
  0xf8   :  { %v3941_v62 = vadd.f32 %v1000_v24, %v3737_v31  ;;  %v3944_v45 = vadd.f32 %v1001_v37, %v3740_v32  ;;  %v3947_v19 = vadd.f32 %v1002_v13, %v3743_v33  ;;  %v3950_v11 = vadd.f32 %v1003_v57, %v3746_v59  ;;  %v5625_v59 = vld [vmem:[#allocation26_spill] sm:$0xff] }
  0xf9   :  { %v3953_v1 = vadd.f32 %v1004_v56, %v3749_v6  ;;  %v3956_v55 = vadd.f32 %v1005_v12, %v3752_v21  ;;  %v3959_v3 = vadd.f32 %v1006_v52, %v3755_v18  ;;  %v3962_v31 = vadd.f32 %v1007_v47, %v3758_v5  ;;  %v5628_v21 = vld [vmem:[#allocation29_spill] sm:$0xff] }
  0xfa   :  { %v1017_v32 = vstv %s3868_s5  ;;  %v1027_v9 = vstv %s3882_s25  ;;  %v1045_v49 = vstv %s3896_s26  ;;  %v1063_v33 = vstv %s3902_s27  ;;  %s4610_s5 = sld [smem:[#allocation11 + $0x20b]] }
  0xfb   :  { %v1018_v27 = vmul.f32 %v5624_v41, %v1017_v32  ;;  %v1019_v15 = vmul.f32 %v5625_v59, %v1017_v32  ;;  %v1020_v6 = vmul.f32 %v5626_v42, %v1017_v32  ;;  %v1021_v38 = vmul.f32 %v5627_v17, %v1017_v32  ;;  %s4704_s25 = sld [smem:[#allocation8 + $0xc]] }
  0xfc   :  { %v1022_v58 = vmul.f32 %v5628_v21, %v1017_v32  ;;  %v1023_v18 = vmul.f32 %v5629_v53, %v1017_v32  ;;  %v1024_v24 = vmul.f32 %v5630_v60, %v1017_v32  ;;  %v1025_v5 = vmul.f32 %v5620_v36, %v1017_v32  ;;  %v5632_v60 = vld [vmem:[#allocation24_spill] sm:$0xff]  ;;  %s4718_s26 = sld [smem:[#allocation9 + $0xc]] }
  0xfd   :  { %v1028_v37 = vadd.f32 %v1027_v9, %v1018_v27  ;;  %v1029_v13 = vadd.f32 %v1027_v9, %v1019_v15  ;;  %v1030_v57 = vadd.f32 %v1027_v9, %v1020_v6  ;;  %v1031_v56 = vadd.f32 %v1027_v9, %v1021_v38  ;;  %s4732_s27 = sld [smem:[#allocation11 + $0xc]] }
  0xfe   :  { %v1032_v12 = vadd.f32 %v1027_v9, %v1022_v58  ;;  %v1033_v52 = vadd.f32 %v1027_v9, %v1023_v18  ;;  %v1034_v47 = vadd.f32 %v1027_v9, %v1024_v24  ;;  %v1035_v59 = vadd.f32 %v1027_v9, %v1025_v5 }
  0xff   :  { %v3978_v42 = vmax.f32 %v1028_v37, 0.0  ;;  %v3980_v17 = vmax.f32 %v1029_v13, 0.0  ;;  %v3982_v21 = vmax.f32 %v1030_v57, 0.0  ;;  %v3984_v53 = vmax.f32 %v1031_v56, 0.0 }
 0x100   :  { %v3988_v32 = vmax.f32 %v1032_v12, 0.0  ;;  %v3990_v27 = vmax.f32 %v1033_v52, 0.0  ;;  %v3992_v15 = vmax.f32 %v1034_v47, 0.0  ;;  %v3994_v6 = vmax.f32 %v1035_v59, 0.0  ;;  %v5631_v47 = vld [vmem:[#allocation23_spill] sm:$0xff] }
 0x101   :  { %v1046_v9 = vmul.f32 %v1045_v49, %v3978_v42  ;;  %v1047_v38 = vmul.f32 %v1045_v49, %v3980_v17  ;;  %v1048_v58 = vmul.f32 %v1045_v49, %v3982_v21  ;;  %v1049_v18 = vmul.f32 %v1045_v49, %v3984_v53 }
 0x102   :  { %v1050_v24 = vmul.f32 %v1045_v49, %v3988_v32  ;;  %v1051_v5 = vmul.f32 %v1045_v49, %v3990_v27  ;;  %v1052_v37 = vmul.f32 %v1045_v49, %v3992_v15  ;;  %v1053_v59 = vmul.f32 %v1045_v49, %v3994_v6 }
 0x103   :  { %v4009_v13 = vadd.f32 %v1046_v9, %v3801_v35  ;;  %v4012_v57 = vadd.f32 %v1047_v38, %v3804_v61  ;;  %v4015_v56 = vadd.f32 %v1048_v58, %v3807_v43  ;;  %v4018_v12 = vadd.f32 %v1049_v18, %v3810_v63  ;;  %v5633_v35 = vld [vmem:[#allocation33_spill] sm:$0xff] }
 0x104   :  { %v4021_v52 = vadd.f32 %v1050_v24, %v3813_v26  ;;  %v4024_v36 = vadd.f32 %v1051_v5, %v5631_v47  ;;  %v4027_v49 = vadd.f32 %v1052_v37, %v5632_v60  ;;  %v4030_v9 = vadd.f32 %v1053_v59, %v5633_v35 }
 0x105   :  { %v1064_v61 = vmul.f32 %v1063_v33, %v3978_v42  ;;  %v1065_v43 = vmul.f32 %v1063_v33, %v3980_v17  ;;  %v1066_v63 = vmul.f32 %v1063_v33, %v3982_v21  ;;  %v1067_v26 = vmul.f32 %v1063_v33, %v3984_v53 }
 0x106   :  { %v1068_v38 = vmul.f32 %v1063_v33, %v3988_v32  ;;  %v1069_v60 = vmul.f32 %v1063_v33, %v3990_v27  ;;  %v1070_v58 = vmul.f32 %v1063_v33, %v3992_v15  ;;  %v1071_v18 = vmul.f32 %v1063_v33, %v3994_v6 }
 0x107   :  { %v4041_v24 = vadd.f32 %v1064_v61, %v3837_v16  ;;  %v4044_v5 = vadd.f32 %v1065_v43, %v3840_v50  ;;  %v4047_v37 = vadd.f32 %v1066_v63, %v3843_v46  ;;  %v4050_v59 = vadd.f32 %v1067_v26, %v3846_v2 }
 0x108   :  { %v4053_v47 = vadd.f32 %v1068_v38, %v3849_v30  ;;  %v4056_v35 = vadd.f32 %v1069_v60, %v3852_v39  ;;  %v4059_v33 = vadd.f32 %v1070_v58, %v3855_v14  ;;  %v4062_v16 = vadd.f32 %v1071_v18, %v3858_v29 }
 0x109   :  { %v1081_v50 = vstv %s3976_s28  ;;  %v1099_v61 = vstv %s3996_s30  ;;  %v1117_v43 = vstv %s4002_s8  ;;  %v1135_v46 = vstv %s3986_s29  ;;  %s4738_s28 = sld [smem:[#allocation11 + $0x8c]] }
 0x10a   :  { %5634 = vst [vmem:[#allocation25_spill] sm:$0xff] %v4056_v35  ;;  %v1082_v63 = vmul.f32 %v1081_v50, %v3978_v42  ;;  %v1083_v2 = vmul.f32 %v1081_v50, %v3980_v17  ;;  %v1084_v30 = vmul.f32 %v1081_v50, %v3982_v21  ;;  %v1085_v26 = vmul.f32 %v1081_v50, %v3984_v53  ;;  %s4812_s29 = sld [smem:[#allocation11 + $0x10c]] }
 0x10b   :  { %5635 = vst [vmem:[#allocation23_spill] sm:$0xff] %v4059_v33  ;;  %v1086_v39 = vmul.f32 %v1081_v50, %v3988_v32  ;;  %v1087_v14 = vmul.f32 %v1081_v50, %v3990_v27  ;;  %v1088_v38 = vmul.f32 %v1081_v50, %v3992_v15  ;;  %v1089_v29 = vmul.f32 %v1081_v50, %v3994_v6  ;;  %s4822_s30 = sld [smem:[#allocation8 + $0xd]] }
 0x10c   :  { %5636 = vst [vmem:[#allocation24_spill] sm:$0xff] %v4062_v16  ;;  %v4077_v60 = vadd.f32 %v1082_v63, %v3871_v40  ;;  %v4080_v58 = vadd.f32 %v1083_v2, %v3874_v34  ;;  %v4083_v18 = vadd.f32 %v1084_v30, %v3877_v44  ;;  %v4086_v16 = vadd.f32 %v1085_v26, %v3880_v48  ;;  %s4832_s8 = sld [smem:[#allocation11 + $0x18c]] }
 0x10d   :  { %v4089_v33 = vadd.f32 %v1086_v39, %v3885_v28  ;;  %v4092_v35 = vadd.f32 %v1087_v14, %v3888_v23  ;;  %v4095_v50 = vadd.f32 %v1088_v38, %v3891_v10  ;;  %v4098_v40 = vadd.f32 %v1089_v29, %v3894_v54 }
 0x10e   :  { %v1100_v34 = vmul.f32 %v1099_v61, %v3978_v42  ;;  %v1101_v44 = vmul.f32 %v1099_v61, %v3980_v17  ;;  %v1102_v48 = vmul.f32 %v1099_v61, %v3982_v21  ;;  %v1103_v28 = vmul.f32 %v1099_v61, %v3984_v53 }
 0x10f   :  { %v1104_v23 = vmul.f32 %v1099_v61, %v3988_v32  ;;  %v1105_v10 = vmul.f32 %v1099_v61, %v3990_v27  ;;  %v1106_v63 = vmul.f32 %v1099_v61, %v3992_v15  ;;  %v1107_v54 = vmul.f32 %v1099_v61, %v3994_v6 }
 0x110   :  { %v4115_v2 = vadd.f32 %v1100_v34, %v3909_v22  ;;  %v4118_v30 = vadd.f32 %v1101_v44, %v3912_v4  ;;  %v4121_v26 = vadd.f32 %v1102_v48, %v3915_v51  ;;  %v4124_v39 = vadd.f32 %v1103_v28, %v3918_v8  ;;  %v5640_v48 = vld [vmem:[#allocation29_spill] sm:$0xff]  ;;  %v5641_v28 = vld [vmem:[#allocation31_spill] sm:$0xff] }
 0x111   :  { %v4129_v14 = vadd.f32 %v1104_v23, %v3921_v25  ;;  %v4132_v61 = vadd.f32 %v1105_v10, %v3924_v0  ;;  %v4135_v22 = vadd.f32 %v1106_v63, %v3927_v20  ;;  %v4138_v4 = vadd.f32 %v1107_v54, %v3930_v7  ;;  %v5643_v63 = vld [vmem:[#allocation30_spill] sm:$0xff] }
 0x112   :  { %v1118_v51 = vmul.f32 %v1117_v43, %v3978_v42  ;;  %v1119_v38 = vmul.f32 %v1117_v43, %v3980_v17  ;;  %v1120_v8 = vmul.f32 %v1117_v43, %v3982_v21  ;;  %v1121_v29 = vmul.f32 %v1117_v43, %v3984_v53 }
 0x113   :  { %v1122_v25 = vmul.f32 %v1117_v43, %v3988_v32  ;;  %v1123_v34 = vmul.f32 %v1117_v43, %v3990_v27  ;;  %v1124_v0 = vmul.f32 %v1117_v43, %v3992_v15  ;;  %v1125_v20 = vmul.f32 %v1117_v43, %v3994_v6  ;;  %v5637_v32 = vld [vmem:[#allocation26_spill] sm:$0xff]  ;;  %v5638_v15 = vld [vmem:[#allocation27_spill] sm:$0xff]  ;;  %v5639_v6 = vld [vmem:[#allocation28_spill] sm:$0xff] }
 0x114   :  { %v4149_v44 = vadd.f32 %v1118_v51, %v3941_v62  ;;  %v4152_v7 = vadd.f32 %v1119_v38, %v3944_v45  ;;  %v4155_v42 = vadd.f32 %v1120_v8, %v3947_v19  ;;  %v4158_v17 = vadd.f32 %v1121_v29, %v3950_v11 }
 0x115   :  { %v4161_v21 = vadd.f32 %v1122_v25, %v3953_v1  ;;  %v4164_v53 = vadd.f32 %v1123_v34, %v3956_v55  ;;  %v4167_v62 = vadd.f32 %v1124_v0, %v3959_v3  ;;  %v4170_v45 = vadd.f32 %v1125_v20, %v3962_v31  ;;  %v5642_v55 = vld [vmem:[#allocation32_spill] sm:$0xff] }
 0x116   :  { %v1136_v19 = vmul.f32 %v5624_v41, %v1135_v46  ;;  %v1137_v27 = vmul.f32 %v5637_v32, %v1135_v46  ;;  %v1138_v11 = vmul.f32 %v5638_v15, %v1135_v46  ;;  %v1139_v43 = vmul.f32 %v5639_v6, %v1135_v46 }
 0x117   :  { %v1140_v1 = vmul.f32 %v5640_v48, %v1135_v46  ;;  %v1141_v23 = vmul.f32 %v5641_v28, %v1135_v46  ;;  %v1142_v10 = vmul.f32 %v5642_v55, %v1135_v46  ;;  %v1143_v3 = vmul.f32 %v5643_v63, %v1135_v46 }
 0x118   :  { %v1145_v54 = vstv %s4100_s9  ;;  %v1163_v51 = vstv %s4106_s12  ;;  %v1181_v31 = vstv %s4112_s2  ;;  %v1199_v38 = vstv %s4126_s13  ;;  %s4838_s9 = sld [smem:[#allocation11 + $0x20c]] }
 0x119   :  { %v1146_v8 = vadd.f32 %v1145_v54, %v1136_v19  ;;  %v1147_v41 = vadd.f32 %v1145_v54, %v1137_v27  ;;  %v1148_v29 = vadd.f32 %v1145_v54, %v1138_v11  ;;  %v1149_v25 = vadd.f32 %v1145_v54, %v1139_v43  ;;  %s4936_s12 = sld [smem:[#allocation9 + $0xd]] }
 0x11a   :  { %v1150_v34 = vadd.f32 %v1145_v54, %v1140_v1  ;;  %v1151_v0 = vadd.f32 %v1145_v54, %v1141_v23  ;;  %v1152_v20 = vadd.f32 %v1145_v54, %v1142_v10  ;;  %v1153_v32 = vadd.f32 %v1145_v54, %v1143_v3  ;;  %s4942_s2 = sld [smem:[#allocation11 + $0xd]] }
 0x11b   :  { %v4184_v15 = vmax.f32 %v1146_v8, 0.0  ;;  %v4186_v6 = vmax.f32 %v1147_v41, 0.0  ;;  %v4188_v48 = vmax.f32 %v1148_v29, 0.0  ;;  %v4190_v28 = vmax.f32 %v1149_v25, 0.0  ;;  %s4948_s13 = sld [smem:[#allocation11 + $0x8d]] }
 0x11c   :  { %v4192_v46 = vmax.f32 %v1150_v34, 0.0  ;;  %v4194_v55 = vmax.f32 %v1151_v0, 0.0  ;;  %v4196_v19 = vmax.f32 %v1152_v20, 0.0  ;;  %v4198_v27 = vmax.f32 %v1153_v32, 0.0 }
 0x11d   :  { %v1164_v11 = vmul.f32 %v1163_v51, %v4184_v15  ;;  %v1165_v43 = vmul.f32 %v1163_v51, %v4186_v6  ;;  %v1166_v1 = vmul.f32 %v1163_v51, %v4188_v48  ;;  %v1167_v23 = vmul.f32 %v1163_v51, %v4190_v28 }
 0x11e   :  { %v1168_v10 = vmul.f32 %v1163_v51, %v4192_v46  ;;  %v1169_v63 = vmul.f32 %v1163_v51, %v4194_v55  ;;  %v1170_v3 = vmul.f32 %v1163_v51, %v4196_v19  ;;  %v1171_v54 = vmul.f32 %v1163_v51, %v4198_v27 }
 0x11f   :  { %v4211_v8 = vadd.f32 %v1164_v11, %v4009_v13  ;;  %v4214_v41 = vadd.f32 %v1165_v43, %v4012_v57  ;;  %v4217_v29 = vadd.f32 %v1166_v1, %v4015_v56  ;;  %v4220_v25 = vadd.f32 %v1167_v23, %v4018_v12 }
 0x120   :  { %v4225_v34 = vadd.f32 %v1168_v10, %v4021_v52  ;;  %v4228_v51 = vadd.f32 %v1169_v63, %v4024_v36  ;;  %v4231_v13 = vadd.f32 %v1170_v3, %v4027_v49  ;;  %v4234_v57 = vadd.f32 %v1171_v54, %v4030_v9  ;;  %v5644_v10 = vld [vmem:[#allocation25_spill] sm:$0xff]  ;;  %v5645_v3 = vld [vmem:[#allocation23_spill] sm:$0xff] }
 0x121   :  { %v1182_v56 = vmul.f32 %v1181_v31, %v4184_v15  ;;  %v1183_v12 = vmul.f32 %v1181_v31, %v4186_v6  ;;  %v1184_v0 = vmul.f32 %v1181_v31, %v4188_v48  ;;  %v1185_v52 = vmul.f32 %v1181_v31, %v4190_v28 }
 0x122   :  { %v1186_v36 = vmul.f32 %v1181_v31, %v4192_v46  ;;  %v1187_v49 = vmul.f32 %v1181_v31, %v4194_v55  ;;  %v1188_v20 = vmul.f32 %v1181_v31, %v4196_v19  ;;  %v1189_v9 = vmul.f32 %v1181_v31, %v4198_v27 }
 0x123   :  { %v4249_v32 = vadd.f32 %v1182_v56, %v4041_v24  ;;  %v4252_v11 = vadd.f32 %v1183_v12, %v4044_v5  ;;  %v4255_v43 = vadd.f32 %v1184_v0, %v4047_v37  ;;  %v4258_v1 = vadd.f32 %v1185_v52, %v4050_v59  ;;  %v5646_v24 = vld [vmem:[#allocation24_spill] sm:$0xff] }
 0x124   :  { %v4261_v23 = vadd.f32 %v1186_v36, %v4053_v47  ;;  %v4264_v63 = vadd.f32 %v1187_v49, %v5644_v10  ;;  %v4267_v31 = vadd.f32 %v1188_v20, %v5645_v3  ;;  %v4270_v54 = vadd.f32 %v1189_v9, %v5646_v24 }
 0x125   :  { %v1200_v5 = vmul.f32 %v1199_v38, %v4184_v15  ;;  %v1201_v37 = vmul.f32 %v1199_v38, %v4186_v6  ;;  %v1202_v59 = vmul.f32 %v1199_v38, %v4188_v48  ;;  %v1203_v47 = vmul.f32 %v1199_v38, %v4190_v28 }
 0x126   :  { %v1204_v56 = vmul.f32 %v1199_v38, %v4192_v46  ;;  %v1205_v12 = vmul.f32 %v1199_v38, %v4194_v55  ;;  %v1206_v0 = vmul.f32 %v1199_v38, %v4196_v19  ;;  %v1207_v52 = vmul.f32 %v1199_v38, %v4198_v27 }
 0x127   :  { %v4281_v36 = vadd.f32 %v1200_v5, %v4077_v60  ;;  %v4284_v49 = vadd.f32 %v1201_v37, %v4080_v58  ;;  %v4287_v20 = vadd.f32 %v1202_v59, %v4083_v18  ;;  %v4290_v9 = vadd.f32 %v1203_v47, %v4086_v16 }
 0x128   :  { %v4293_v10 = vadd.f32 %v1204_v56, %v4089_v33  ;;  %v4296_v3 = vadd.f32 %v1205_v12, %v4092_v35  ;;  %v4299_v38 = vadd.f32 %v1206_v0, %v4095_v50  ;;  %v4302_v60 = vadd.f32 %v1207_v52, %v4098_v40 }
 0x129   :  { %v1217_v58 = vstv %s4222_s15  ;;  %v1235_v24 = vstv %s4236_s0  ;;  %v1253_v5 = vstv %s4208_s14  ;;  %v1263_v18 = vstv %s4242_s16  ;;  %s4962_s14 = sld [smem:[#allocation11 + $0x10d]] }
 0x12a   :  { %5647 = vst [vmem:[#allocation33_spill] sm:$0xff] %v4299_v38  ;;  %v1218_v37 = vmul.f32 %v1217_v58, %v4184_v15  ;;  %v1219_v16 = vmul.f32 %v1217_v58, %v4186_v6  ;;  %v1220_v33 = vmul.f32 %v1217_v58, %v4188_v48  ;;  %v1221_v59 = vmul.f32 %v1217_v58, %v4190_v28  ;;  %s5044_s15 = sld [smem:[#allocation8 + $0xe]] }
 0x12b   :  { %5648 = vst [vmem:[#allocation26_spill] sm:$0xff] %v4302_v60  ;;  %v1222_v35 = vmul.f32 %v1217_v58, %v4192_v46  ;;  %v1223_v50 = vmul.f32 %v1217_v58, %v4194_v55  ;;  %v1224_v47 = vmul.f32 %v1217_v58, %v4196_v19  ;;  %v1225_v40 = vmul.f32 %v1217_v58, %v4198_v27  ;;  %s5058_s0 = sld [smem:[#allocation11 + $0x18d]] }
 0x12c   :  { %v4317_v56 = vadd.f32 %v1218_v37, %v4115_v2  ;;  %v4320_v12 = vadd.f32 %v1219_v16, %v4118_v30  ;;  %v4323_v0 = vadd.f32 %v1220_v33, %v4121_v26  ;;  %v4326_v52 = vadd.f32 %v1221_v59, %v4124_v39  ;;  %v4392_v16 = vld [vmem:[#allocation3 + $0x20] sm:$0xff]  ;;  %v4395_v33 = vld [vmem:[#allocation3 + $0x28] sm:$0xff]  ;;  %s5072_s16 = sld [smem:[#allocation11 + $0x20d]] }
 0x12d   :  { %v4329_v60 = vadd.f32 %v1222_v35, %v4129_v14  ;;  %v4332_v38 = vadd.f32 %v1223_v50, %v4132_v61  ;;  %v4335_v58 = vadd.f32 %v1224_v47, %v4135_v22  ;;  %v4338_v2 = vadd.f32 %v1225_v40, %v4138_v4  ;;  %5653 = vst [vmem:[#allocation32_spill] sm:$0xff] %v4392_v16  ;;  %v4398_v35 = vld [vmem:[#allocation3 + $0x30] sm:$0xff]  ;;  %v4401_v47 = vld [vmem:[#allocation3 + $0x38] sm:$0xff] }
 0x12e   :  { %v1236_v30 = vmul.f32 %v1235_v24, %v4184_v15  ;;  %v1237_v26 = vmul.f32 %v1235_v24, %v4186_v6  ;;  %v1238_v39 = vmul.f32 %v1235_v24, %v4188_v48  ;;  %v1239_v14 = vmul.f32 %v1235_v24, %v4190_v28  ;;  %5654 = vst [vmem:[#allocation30_spill] sm:$0xff] %v4395_v33 }
 0x12f   :  { %v1240_v61 = vmul.f32 %v1235_v24, %v4192_v46  ;;  %v1241_v22 = vmul.f32 %v1235_v24, %v4194_v55  ;;  %v1242_v37 = vmul.f32 %v1235_v24, %v4196_v19  ;;  %v1243_v4 = vmul.f32 %v1235_v24, %v4198_v27  ;;  %v4380_v19 = vld [vmem:[#allocation3] sm:$0xff]  ;;  %v4386_v24 = vld [vmem:[#allocation3 + $0x10] sm:$0xff]  ;;  %5655 = vst [vmem:[#allocation25_spill] sm:$0xff] %v4398_v35 }
 0x130   :  { %v4355_v15 = vadd.f32 %v1236_v30, %v4149_v44  ;;  %v4358_v6 = vadd.f32 %v1237_v26, %v4152_v7  ;;  %v4361_v48 = vadd.f32 %v1238_v39, %v4155_v42  ;;  %v4364_v28 = vadd.f32 %v1239_v14, %v4158_v17  ;;  %5649 = vst [vmem:[#allocation27_spill] sm:$0xff] %v4380_v19  ;;  %v4383_v17 = vld [vmem:[#allocation3 + $0x8] sm:$0xff] }
 0x131   :  { %v4369_v46 = vadd.f32 %v1240_v61, %v4161_v21  ;;  %v4372_v55 = vadd.f32 %v1241_v22, %v4164_v53  ;;  %v4375_v44 = vadd.f32 %v1242_v37, %v4167_v62  ;;  %v4378_v7 = vadd.f32 %v1243_v4, %v4170_v45  ;;  %5650 = vst [vmem:[#allocation28_spill] sm:$0xff] %v4383_v17  ;;  %v4389_v53 = vld [vmem:[#allocation3 + $0x18] sm:$0xff] }
 0x132   :  { %v1254_v42 = vmul.f32 %v4380_v19, %v1253_v5  ;;  %v1255_v27 = vmul.f32 %v4383_v17, %v1253_v5  ;;  %5651 = vst [vmem:[#allocation29_spill] sm:$0xff] %v4386_v24  ;;  %v1256_v21 = vmul.f32 %v4386_v24, %v1253_v5  ;;  %v1257_v62 = vmul.f32 %v4389_v53, %v1253_v5 }
 0x133   :  { %5652 = vst [vmem:[#allocation31_spill] sm:$0xff] %v4389_v53  ;;  %v1258_v45 = vmul.f32 %v4392_v16, %v1253_v5  ;;  %v1259_v59 = vmul.f32 %v4395_v33, %v1253_v5  ;;  %v1260_v50 = vmul.f32 %v4398_v35, %v1253_v5  ;;  %v1261_v40 = vmul.f32 %v4401_v47, %v1253_v5 }
 0x134   :  { %5656 = vst [vmem:[#allocation23_spill] sm:$0xff] %v4401_v47  ;;  %v1264_v30 = vadd.f32 %v1263_v18, %v1254_v42  ;;  %v1265_v26 = vadd.f32 %v1263_v18, %v1255_v27  ;;  %v1266_v39 = vadd.f32 %v1263_v18, %v1256_v21  ;;  %v1267_v14 = vadd.f32 %v1263_v18, %v1257_v62 }
 0x135   :  { %v1268_v61 = vadd.f32 %v1263_v18, %v1258_v45  ;;  %v1269_v22 = vadd.f32 %v1263_v18, %v1259_v59  ;;  %v1270_v37 = vadd.f32 %v1263_v18, %v1260_v50  ;;  %v1271_v4 = vadd.f32 %v1263_v18, %v1261_v40 }
 0x136   :  { %v4404_v33 = vmax.f32 %v1264_v30, 0.0  ;;  %v4406_v16 = vmax.f32 %v1265_v26, 0.0  ;;  %v4408_v35 = vmax.f32 %v1266_v39, 0.0  ;;  %v4410_v53 = vmax.f32 %v1267_v14, 0.0 }
 0x137   :  { %v4412_v5 = vmax.f32 %v1268_v61, 0.0  ;;  %v4414_v42 = vmax.f32 %v1269_v22, 0.0  ;;  %v4416_v27 = vmax.f32 %v1270_v37, 0.0  ;;  %v4418_v21 = vmax.f32 %v1271_v4, 0.0 }
 0x138   :  { %v1281_v62 = vstv %s4340_s17  ;;  %v1299_v45 = vstv %s4346_s18  ;;  %v1317_v59 = vstv %s4352_s19  ;;  %v1335_v18 = vstv %s4366_s20  ;;  %s5078_s17 = sld [smem:[#allocation9 + $0xe]] }
 0x139   :  { %v1282_v50 = vmul.f32 %v1281_v62, %v4404_v33  ;;  %v1283_v40 = vmul.f32 %v1281_v62, %v4406_v16  ;;  %v1284_v30 = vmul.f32 %v1281_v62, %v4408_v35  ;;  %v1285_v26 = vmul.f32 %v1281_v62, %v4410_v53  ;;  %s5176_s18 = sld [smem:[#allocation11 + $0xe]] }
 0x13a   :  { %v1286_v39 = vmul.f32 %v1281_v62, %v4412_v5  ;;  %v1287_v14 = vmul.f32 %v1281_v62, %v4414_v42  ;;  %v1288_v61 = vmul.f32 %v1281_v62, %v4416_v27  ;;  %v1289_v22 = vmul.f32 %v1281_v62, %v4418_v21  ;;  %s5182_s19 = sld [smem:[#allocation11 + $0x8e]] }
 0x13b   :  { %v4433_v37 = vadd.f32 %v1282_v50, %v4211_v8  ;;  %v4436_v4 = vadd.f32 %v1283_v40, %v4214_v41  ;;  %v4439_v47 = vadd.f32 %v1284_v30, %v4217_v29  ;;  %v4442_v24 = vadd.f32 %v1285_v26, %v4220_v25  ;;  %s5188_s20 = sld [smem:[#allocation11 + $0x10e]] }
 0x13c   :  { %v4445_v17 = vadd.f32 %v1286_v39, %v4225_v34  ;;  %v4448_v19 = vadd.f32 %v1287_v14, %v4228_v51  ;;  %v4451_v62 = vadd.f32 %v1288_v61, %v4231_v13  ;;  %v4454_v8 = vadd.f32 %v1289_v22, %v4234_v57 }
 0x13d   :  { %v1300_v41 = vmul.f32 %v1299_v45, %v4404_v33  ;;  %v1301_v29 = vmul.f32 %v1299_v45, %v4406_v16  ;;  %v1302_v50 = vmul.f32 %v1299_v45, %v4408_v35  ;;  %v1303_v25 = vmul.f32 %v1299_v45, %v4410_v53 }
 0x13e   :  { %v1304_v34 = vmul.f32 %v1299_v45, %v4412_v5  ;;  %v1305_v40 = vmul.f32 %v1299_v45, %v4414_v42  ;;  %v1306_v51 = vmul.f32 %v1299_v45, %v4416_v27  ;;  %v1307_v13 = vmul.f32 %v1299_v45, %v4418_v21 }
 0x13f   :  { %v4467_v57 = vadd.f32 %v1300_v41, %v4249_v32  ;;  %v4470_v30 = vadd.f32 %v1301_v29, %v4252_v11  ;;  %v4473_v26 = vadd.f32 %v1302_v50, %v4255_v43  ;;  %v4476_v39 = vadd.f32 %v1303_v25, %v4258_v1 }
 0x140   :  { %v4481_v14 = vadd.f32 %v1304_v34, %v4261_v23  ;;  %v4484_v45 = vadd.f32 %v1305_v40, %v4264_v63  ;;  %v4487_v32 = vadd.f32 %v1306_v51, %v4267_v31  ;;  %v4490_v11 = vadd.f32 %v1307_v13, %v4270_v54  ;;  %v5657_v51 = vld [vmem:[#allocation33_spill] sm:$0xff] }
 0x141   :  { %v1318_v43 = vmul.f32 %v1317_v59, %v4404_v33  ;;  %v1319_v1 = vmul.f32 %v1317_v59, %v4406_v16  ;;  %v1320_v61 = vmul.f32 %v1317_v59, %v4408_v35  ;;  %v1321_v23 = vmul.f32 %v1317_v59, %v4410_v53 }
 0x142   :  { %v1322_v63 = vmul.f32 %v1317_v59, %v4412_v5  ;;  %v1323_v31 = vmul.f32 %v1317_v59, %v4414_v42  ;;  %v1324_v22 = vmul.f32 %v1317_v59, %v4416_v27  ;;  %v1325_v54 = vmul.f32 %v1317_v59, %v4418_v21 }
 0x143   :  { %v4505_v41 = vadd.f32 %v1318_v43, %v4281_v36  ;;  %v4508_v29 = vadd.f32 %v1319_v1, %v4284_v49  ;;  %v4511_v50 = vadd.f32 %v1320_v61, %v4287_v20  ;;  %v4514_v25 = vadd.f32 %v1321_v23, %v4290_v9  ;;  %v5658_v36 = vld [vmem:[#allocation26_spill] sm:$0xff] }
 0x144   :  { %v4517_v34 = vadd.f32 %v1322_v63, %v4293_v10  ;;  %v4520_v40 = vadd.f32 %v1323_v31, %v4296_v3  ;;  %v4523_v59 = vadd.f32 %v1324_v22, %v5657_v51  ;;  %v4526_v13 = vadd.f32 %v1325_v54, %v5658_v36 }
 0x145   :  { %v1336_v49 = vmul.f32 %v1335_v18, %v4404_v33  ;;  %v1337_v20 = vmul.f32 %v1335_v18, %v4406_v16  ;;  %v1338_v9 = vmul.f32 %v1335_v18, %v4408_v35  ;;  %v1339_v10 = vmul.f32 %v1335_v18, %v4410_v53 }
 0x146   :  { %v1340_v3 = vmul.f32 %v1335_v18, %v4412_v5  ;;  %v1341_v43 = vmul.f32 %v1335_v18, %v4414_v42  ;;  %v1342_v1 = vmul.f32 %v1335_v18, %v4416_v27  ;;  %v1343_v61 = vmul.f32 %v1335_v18, %v4418_v21 }
 0x147   :  { %v4537_v23 = vadd.f32 %v1336_v49, %v4317_v56  ;;  %v4540_v63 = vadd.f32 %v1337_v20, %v4320_v12  ;;  %v4543_v31 = vadd.f32 %v1338_v9, %v4323_v0  ;;  %v4546_v22 = vadd.f32 %v1339_v10, %v4326_v52 }
 0x148   :  { %v4549_v54 = vadd.f32 %v1340_v3, %v4329_v60  ;;  %v4552_v51 = vadd.f32 %v1341_v43, %v4332_v38  ;;  %v4555_v18 = vadd.f32 %v1342_v1, %v4335_v58  ;;  %v4558_v56 = vadd.f32 %v1343_v61, %v4338_v2  ;;  %v5662_v1 = vld [vmem:[#allocation31_spill] sm:$0xff] }
 0x149   :  { %v1353_v12 = vstv %s4478_s22  ;;  %v1371_v36 = vstv %s4464_s21  ;;  %v1381_v49 = vstv %s4492_s23  ;;  %v1399_v0 = vstv %s4498_s1  ;;  %s5202_s21 = sld [smem:[#allocation11 + $0x18e]] }
 0x14a   :  { %v1354_v20 = vmul.f32 %v1353_v12, %v4404_v33  ;;  %v1355_v52 = vmul.f32 %v1353_v12, %v4406_v16  ;;  %v1356_v60 = vmul.f32 %v1353_v12, %v4408_v35  ;;  %v1357_v9 = vmul.f32 %v1353_v12, %v4410_v53  ;;  %s5284_s22 = sld [smem:[#allocation11 + $0x20e]] }
 0x14b   :  { %v1358_v38 = vmul.f32 %v1353_v12, %v4412_v5  ;;  %v1359_v58 = vmul.f32 %v1353_v12, %v4414_v42  ;;  %v1360_v10 = vmul.f32 %v1353_v12, %v4416_v27  ;;  %v1361_v2 = vmul.f32 %v1353_v12, %v4418_v21  ;;  %v5660_v42 = vld [vmem:[#allocation28_spill] sm:$0xff]  ;;  %v5664_v12 = vld [vmem:[#allocation30_spill] sm:$0xff]  ;;  %s5298_s23 = sld [smem:[#allocation12]] }
 0x14c   :  { %v4573_v3 = vadd.f32 %v1354_v20, %v4355_v15  ;;  %v4576_v43 = vadd.f32 %v1355_v52, %v4358_v6  ;;  %v4579_v16 = vadd.f32 %v1356_v60, %v4361_v48  ;;  %v4582_v33 = vadd.f32 %v1357_v9, %v4364_v28  ;;  %v5659_v6 = vld [vmem:[#allocation27_spill] sm:$0xff]  ;;  %v5661_v28 = vld [vmem:[#allocation29_spill] sm:$0xff]  ;;  %s5312_s1 = sld [smem:[#allocation12 + $0x1]] }
 0x14d   :  { %v4585_v53 = vadd.f32 %v1358_v38, %v4369_v46  ;;  %v4588_v35 = vadd.f32 %v1359_v58, %v4372_v55  ;;  %v4591_v5 = vadd.f32 %v1360_v10, %v4375_v44  ;;  %v4594_v15 = vadd.f32 %v1361_v2, %v4378_v7  ;;  %v5663_v55 = vld [vmem:[#allocation32_spill] sm:$0xff]  ;;  %v5665_v20 = vld [vmem:[#allocation25_spill] sm:$0xff]  ;;  %v5666_v7 = vld [vmem:[#allocation23_spill] sm:$0xff] }
 0x14e   :  { %v1372_v48 = vmul.f32 %v5659_v6, %v1371_v36  ;;  %v1373_v27 = vmul.f32 %v5660_v42, %v1371_v36  ;;  %v1374_v21 = vmul.f32 %v5661_v28, %v1371_v36  ;;  %v1375_v46 = vmul.f32 %v5662_v1, %v1371_v36 }
 0x14f   :  { %v1376_v61 = vmul.f32 %v5663_v55, %v1371_v36  ;;  %v1377_v44 = vmul.f32 %v5664_v12, %v1371_v36  ;;  %v1378_v52 = vmul.f32 %v5665_v20, %v1371_v36  ;;  %v1379_v60 = vmul.f32 %v5666_v7, %v1371_v36 }
 0x150   :  { %v1382_v9 = vadd.f32 %v1381_v49, %v1372_v48  ;;  %v1383_v38 = vadd.f32 %v1381_v49, %v1373_v27  ;;  %v1384_v58 = vadd.f32 %v1381_v49, %v1374_v21  ;;  %v1385_v10 = vadd.f32 %v1381_v49, %v1375_v46 }
 0x151   :  { %v1386_v2 = vadd.f32 %v1381_v49, %v1376_v61  ;;  %v1387_v1 = vadd.f32 %v1381_v49, %v1377_v44  ;;  %v1388_v28 = vadd.f32 %v1381_v49, %v1378_v52  ;;  %v1389_v42 = vadd.f32 %v1381_v49, %v1379_v60 }
 0x152   :  { %v4612_v6 = vmax.f32 %v1382_v9, 0.0  ;;  %v4614_v55 = vmax.f32 %v1383_v38, 0.0  ;;  %v4616_v12 = vmax.f32 %v1384_v58, 0.0  ;;  %v4618_v20 = vmax.f32 %v1385_v10, 0.0 }
 0x153   :  { %v4620_v36 = vmax.f32 %v1386_v2, 0.0  ;;  %v4622_v48 = vmax.f32 %v1387_v1, 0.0  ;;  %v4624_v27 = vmax.f32 %v1388_v28, 0.0  ;;  %v4626_v21 = vmax.f32 %v1389_v42, 0.0 }
 0x154   :  { %v1400_v46 = vmul.f32 %v1399_v0, %v4612_v6  ;;  %v1401_v49 = vmul.f32 %v1399_v0, %v4614_v55  ;;  %v1402_v61 = vmul.f32 %v1399_v0, %v4616_v12  ;;  %v1403_v44 = vmul.f32 %v1399_v0, %v4618_v20 }
 0x155   :  { %v1404_v52 = vmul.f32 %v1399_v0, %v4620_v36  ;;  %v1405_v1 = vmul.f32 %v1399_v0, %v4622_v48  ;;  %v1406_v28 = vmul.f32 %v1399_v0, %v4624_v27  ;;  %v1407_v42 = vmul.f32 %v1399_v0, %v4626_v21 }
 0x156   :  { %v4637_v60 = vadd.f32 %v1400_v46, %v4433_v37  ;;  %v4640_v9 = vadd.f32 %v1401_v49, %v4436_v4  ;;  %v4643_v38 = vadd.f32 %v1402_v61, %v4439_v47  ;;  %v4646_v58 = vadd.f32 %v1403_v44, %v4442_v24 }
 0x157   :  { %v4649_v10 = vadd.f32 %v1404_v52, %v4445_v17  ;;  %v4652_v2 = vadd.f32 %v1405_v1, %v4448_v19  ;;  %v4655_v0 = vadd.f32 %v1406_v28, %v4451_v62  ;;  %v4658_v37 = vadd.f32 %v1407_v42, %v4454_v8 }
 0x158   :  { %v1417_v4 = vstv %s4596_s24  ;;  %v1435_v46 = vstv %s4602_s3  ;;  %v1453_v49 = vstv %s4608_s4  ;;  %v1471_v47 = vstv %s4610_s5  ;;  %s5318_s24 = sld [smem:[#allocation13]] }
 0x159   :  { %5667 = vst [vmem:[#allocation24_spill] sm:$0xff] %v4652_v2  ;;  %v1418_v61 = vmul.f32 %v1417_v4, %v4612_v6  ;;  %v1419_v24 = vmul.f32 %v1417_v4, %v4614_v55  ;;  %v1420_v17 = vmul.f32 %v1417_v4, %v4616_v12  ;;  %v1421_v44 = vmul.f32 %v1417_v4, %v4618_v20  ;;  %s5416_s3 = sld [smem:[#allocation12 + $0x2]] }
 0x15a   :  { %5668 = vst [vmem:[#allocation33_spill] sm:$0xff] %v4655_v0  ;;  %v1422_v19 = vmul.f32 %v1417_v4, %v4620_v36  ;;  %v1423_v62 = vmul.f32 %v1417_v4, %v4622_v48  ;;  %v1424_v52 = vmul.f32 %v1417_v4, %v4624_v27  ;;  %v1425_v8 = vmul.f32 %v1417_v4, %v4626_v21  ;;  %s5422_s4 = sld [smem:[#allocation13 + $0x1]] }
 0x15b   :  { %5669 = vst [vmem:[#allocation26_spill] sm:$0xff] %v4658_v37  ;;  %v4673_v1 = vadd.f32 %v1418_v61, %v4467_v57  ;;  %v4676_v28 = vadd.f32 %v1419_v24, %v4470_v30  ;;  %v4679_v42 = vadd.f32 %v1420_v17, %v4473_v26  ;;  %v4682_v37 = vadd.f32 %v1421_v44, %v4476_v39  ;;  %s5428_s5 = sld [smem:[#allocation12 + $0x3]] }
 0x15c   :  { %v4685_v0 = vadd.f32 %v1422_v19, %v4481_v14  ;;  %v4688_v2 = vadd.f32 %v1423_v62, %v4484_v45  ;;  %v4691_v4 = vadd.f32 %v1424_v52, %v4487_v32  ;;  %v4694_v57 = vadd.f32 %v1425_v8, %v4490_v11 }
 0x15d   :  { %v1436_v30 = vmul.f32 %v1435_v46, %v4612_v6  ;;  %v1437_v26 = vmul.f32 %v1435_v46, %v4614_v55  ;;  %v1438_v61 = vmul.f32 %v1435_v46, %v4616_v12  ;;  %v1439_v39 = vmul.f32 %v1435_v46, %v4618_v20 }
 0x15e   :  { %v1440_v14 = vmul.f32 %v1435_v46, %v4620_v36  ;;  %v1441_v24 = vmul.f32 %v1435_v46, %v4622_v48  ;;  %v1442_v45 = vmul.f32 %v1435_v46, %v4624_v27  ;;  %v1443_v32 = vmul.f32 %v1435_v46, %v4626_v21 }
 0x15f   :  { %v4707_v11 = vadd.f32 %v1436_v30, %v4505_v41  ;;  %v4710_v17 = vadd.f32 %v1437_v26, %v4508_v29  ;;  %v4713_v44 = vadd.f32 %v1438_v61, %v4511_v50  ;;  %v4716_v19 = vadd.f32 %v1439_v39, %v4514_v25 }
 0x160   :  { %v4721_v62 = vadd.f32 %v1440_v14, %v4517_v34  ;;  %v4724_v46 = vadd.f32 %v1441_v24, %v4520_v40  ;;  %v4727_v41 = vadd.f32 %v1442_v45, %v4523_v59  ;;  %v4730_v29 = vadd.f32 %v1443_v32, %v4526_v13  ;;  %v5670_v32 = vld [vmem:[#allocation27_spill] sm:$0xff] }
 0x161   :  { %v1454_v50 = vmul.f32 %v1453_v49, %v4612_v6  ;;  %v1455_v25 = vmul.f32 %v1453_v49, %v4614_v55  ;;  %v1456_v52 = vmul.f32 %v1453_v49, %v4616_v12  ;;  %v1457_v34 = vmul.f32 %v1453_v49, %v4618_v20 }
 0x162   :  { %v1458_v40 = vmul.f32 %v1453_v49, %v4620_v36  ;;  %v1459_v59 = vmul.f32 %v1453_v49, %v4622_v48  ;;  %v1460_v8 = vmul.f32 %v1453_v49, %v4624_v27  ;;  %v1461_v13 = vmul.f32 %v1453_v49, %v4626_v21 }
 0x163   :  { %v4745_v30 = vadd.f32 %v1454_v50, %v4537_v23  ;;  %v4748_v26 = vadd.f32 %v1455_v25, %v4540_v63  ;;  %v4751_v61 = vadd.f32 %v1456_v52, %v4543_v31  ;;  %v4754_v39 = vadd.f32 %v1457_v34, %v4546_v22  ;;  %v5672_v52 = vld [vmem:[#allocation29_spill] sm:$0xff]  ;;  %v5673_v34 = vld [vmem:[#allocation31_spill] sm:$0xff] }
 0x164   :  { %v4757_v14 = vadd.f32 %v1458_v40, %v4549_v54  ;;  %v4760_v24 = vadd.f32 %v1459_v59, %v4552_v51  ;;  %v4763_v49 = vadd.f32 %v1460_v8, %v4555_v18  ;;  %v4766_v23 = vadd.f32 %v1461_v13, %v4558_v56  ;;  %v5675_v8 = vld [vmem:[#allocation30_spill] sm:$0xff]  ;;  %v5676_v13 = vld [vmem:[#allocation25_spill] sm:$0xff] }
 0x165   :  { %v1472_v63 = vmul.f32 %v1471_v47, %v4612_v6  ;;  %v1473_v31 = vmul.f32 %v1471_v47, %v4614_v55  ;;  %v1474_v22 = vmul.f32 %v1471_v47, %v4616_v12  ;;  %v1475_v54 = vmul.f32 %v1471_v47, %v4618_v20 }
 0x166   :  { %v1476_v51 = vmul.f32 %v1471_v47, %v4620_v36  ;;  %v1477_v18 = vmul.f32 %v1471_v47, %v4622_v48  ;;  %v1478_v45 = vmul.f32 %v1471_v47, %v4624_v27  ;;  %v1479_v56 = vmul.f32 %v1471_v47, %v4626_v21 }
 0x167   :  { %v4777_v6 = vadd.f32 %v1472_v63, %v4573_v3  ;;  %v4780_v55 = vadd.f32 %v1473_v31, %v4576_v43  ;;  %v4783_v12 = vadd.f32 %v1474_v22, %v4579_v16  ;;  %v4786_v20 = vadd.f32 %v1475_v54, %v4582_v33  ;;  %v5671_v33 = vld [vmem:[#allocation28_spill] sm:$0xff] }
 0x168   :  { %v4789_v36 = vadd.f32 %v1476_v51, %v4585_v53  ;;  %v4792_v48 = vadd.f32 %v1477_v18, %v4588_v35  ;;  %v4795_v27 = vadd.f32 %v1478_v45, %v4591_v5  ;;  %v4798_v3 = vadd.f32 %v1479_v56, %v4594_v15  ;;  %v5674_v35 = vld [vmem:[#allocation32_spill] sm:$0xff] }
 0x169   :  { %v1489_v43 = vstv %s4704_s25  ;;  %v1499_v21 = vstv %s4718_s26  ;;  %v1517_v47 = vstv %s4732_s27  ;;  %v1535_v16 = vstv %s4738_s28  ;;  %s5430_s25 = sld [smem:[#allocation13 + $0x2]] }
 0x16a   :  { %v1490_v50 = vmul.f32 %v5670_v32, %v1489_v43  ;;  %v1491_v25 = vmul.f32 %v5671_v33, %v1489_v43  ;;  %v1492_v53 = vmul.f32 %v5672_v52, %v1489_v43  ;;  %v1493_v40 = vmul.f32 %v5673_v34, %v1489_v43  ;;  %s5452_s26 = sld [smem:[#allocation12 + $0x4]] }
 0x16b   :  { %v1494_v59 = vmul.f32 %v5674_v35, %v1489_v43  ;;  %v1495_v5 = vmul.f32 %v5675_v8, %v1489_v43  ;;  %v1496_v63 = vmul.f32 %v5676_v13, %v1489_v43  ;;  %v1497_v15 = vmul.f32 %v5666_v7, %v1489_v43  ;;  %v5678_v13 = vld [vmem:[#allocation33_spill] sm:$0xff]  ;;  %s5454_s27 = sld [smem:[#allocation13 + $0x3]] }
 0x16c   :  { %v1500_v31 = vadd.f32 %v1499_v21, %v1490_v50  ;;  %v1501_v22 = vadd.f32 %v1499_v21, %v1491_v25  ;;  %v1502_v54 = vadd.f32 %v1499_v21, %v1492_v53  ;;  %v1503_v51 = vadd.f32 %v1499_v21, %v1493_v40  ;;  %s5456_s28 = sld [smem:[#allocation13 + $0x4]] }
 0x16d   :  { %v1504_v18 = vadd.f32 %v1499_v21, %v1494_v59  ;;  %v1505_v45 = vadd.f32 %v1499_v21, %v1495_v5  ;;  %v1506_v56 = vadd.f32 %v1499_v21, %v1496_v63  ;;  %v1507_v33 = vadd.f32 %v1499_v21, %v1497_v15 }
 0x16e   :  { %v4814_v52 = vmax.f32 %v1500_v31, 0.0  ;;  %v4816_v34 = vmax.f32 %v1501_v22, 0.0  ;;  %v4818_v35 = vmax.f32 %v1502_v54, 0.0  ;;  %v4820_v8 = vmax.f32 %v1503_v51, 0.0 }
 0x16f   :  { %v4824_v43 = vmax.f32 %v1504_v18, 0.0  ;;  %v4826_v50 = vmax.f32 %v1505_v45, 0.0  ;;  %v4828_v25 = vmax.f32 %v1506_v56, 0.0  ;;  %v4830_v53 = vmax.f32 %v1507_v33, 0.0  ;;  %v5677_v56 = vld [vmem:[#allocation24_spill] sm:$0xff] }
 0x170   :  { %v1518_v21 = vmul.f32 %v1517_v47, %v4814_v52  ;;  %v1519_v40 = vmul.f32 %v1517_v47, %v4816_v34  ;;  %v1520_v59 = vmul.f32 %v1517_v47, %v4818_v35  ;;  %v1521_v5 = vmul.f32 %v1517_v47, %v4820_v8 }
 0x171   :  { %v1522_v63 = vmul.f32 %v1517_v47, %v4824_v43  ;;  %v1523_v15 = vmul.f32 %v1517_v47, %v4826_v50  ;;  %v1524_v31 = vmul.f32 %v1517_v47, %v4828_v25  ;;  %v1525_v33 = vmul.f32 %v1517_v47, %v4830_v53 }
 0x172   :  { %v4845_v22 = vadd.f32 %v1518_v21, %v4637_v60  ;;  %v4848_v54 = vadd.f32 %v1519_v40, %v4640_v9  ;;  %v4851_v51 = vadd.f32 %v1520_v59, %v4643_v38  ;;  %v4854_v18 = vadd.f32 %v1521_v5, %v4646_v58  ;;  %v5679_v60 = vld [vmem:[#allocation26_spill] sm:$0xff] }
 0x173   :  { %v4857_v45 = vadd.f32 %v1522_v63, %v4649_v10  ;;  %v4860_v7 = vadd.f32 %v1523_v15, %v5677_v56  ;;  %v4863_v47 = vadd.f32 %v1524_v31, %v5678_v13  ;;  %v4866_v21 = vadd.f32 %v1525_v33, %v5679_v60 }
 0x174   :  { %v1536_v9 = vmul.f32 %v1535_v16, %v4814_v52  ;;  %v1537_v38 = vmul.f32 %v1535_v16, %v4816_v34  ;;  %v1538_v58 = vmul.f32 %v1535_v16, %v4818_v35  ;;  %v1539_v10 = vmul.f32 %v1535_v16, %v4820_v8 }
 0x175   :  { %v1540_v40 = vmul.f32 %v1535_v16, %v4824_v43  ;;  %v1541_v13 = vmul.f32 %v1535_v16, %v4826_v50  ;;  %v1542_v59 = vmul.f32 %v1535_v16, %v4828_v25  ;;  %v1543_v5 = vmul.f32 %v1535_v16, %v4830_v53 }
 0x176   :  { %v4877_v63 = vadd.f32 %v1536_v9, %v4673_v1  ;;  %v4880_v15 = vadd.f32 %v1537_v38, %v4676_v28  ;;  %v4883_v31 = vadd.f32 %v1538_v58, %v4679_v42  ;;  %v4886_v33 = vadd.f32 %v1539_v10, %v4682_v37 }
 0x177   :  { %v4889_v56 = vadd.f32 %v1540_v40, %v4685_v0  ;;  %v4892_v60 = vadd.f32 %v1541_v13, %v4688_v2  ;;  %v4895_v16 = vadd.f32 %v1542_v59, %v4691_v4  ;;  %v4898_v1 = vadd.f32 %v1543_v5, %v4694_v57 }
 0x178   :  { %v1553_v28 = vstv %s4812_s29  ;;  %v1571_v9 = vstv %s4832_s8  ;;  %v1589_v38 = vstv %s4838_s9  ;;  %v1607_v42 = vstv %s4822_s30 }
 0x179   :  { %5680 = vst [vmem:[#allocation27_spill] sm:$0xff] %v4892_v60  ;;  %v1554_v58 = vmul.f32 %v1553_v28, %v4814_v52  ;;  %v1555_v37 = vmul.f32 %v1553_v28, %v4816_v34  ;;  %v1556_v0 = vmul.f32 %v1553_v28, %v4818_v35  ;;  %v1557_v10 = vmul.f32 %v1553_v28, %v4820_v8 }
 0x17a   :  { %5681 = vst [vmem:[#allocation24_spill] sm:$0xff] %v4895_v16  ;;  %v1558_v2 = vmul.f32 %v1553_v28, %v4824_v43  ;;  %v1559_v4 = vmul.f32 %v1553_v28, %v4826_v50  ;;  %v1560_v40 = vmul.f32 %v1553_v28, %v4828_v25  ;;  %v1561_v57 = vmul.f32 %v1553_v28, %v4830_v53 }
 0x17b   :  { %5682 = vst [vmem:[#allocation33_spill] sm:$0xff] %v4898_v1  ;;  %v4913_v13 = vadd.f32 %v1554_v58, %v4707_v11  ;;  %v4916_v59 = vadd.f32 %v1555_v37, %v4710_v17  ;;  %v4919_v5 = vadd.f32 %v1556_v0, %v4713_v44  ;;  %v4922_v1 = vadd.f32 %v1557_v10, %v4716_v19 }
 0x17c   :  { %v4925_v16 = vadd.f32 %v1558_v2, %v4721_v62  ;;  %v4928_v60 = vadd.f32 %v1559_v4, %v4724_v46  ;;  %v4931_v28 = vadd.f32 %v1560_v40, %v4727_v41  ;;  %v4934_v11 = vadd.f32 %v1561_v57, %v4730_v29 }
 0x17d   :  { %v1572_v17 = vmul.f32 %v1571_v9, %v4814_v52  ;;  %v1573_v44 = vmul.f32 %v1571_v9, %v4816_v34  ;;  %v1574_v19 = vmul.f32 %v1571_v9, %v4818_v35  ;;  %v1575_v62 = vmul.f32 %v1571_v9, %v4820_v8 }
 0x17e   :  { %v1576_v46 = vmul.f32 %v1571_v9, %v4824_v43  ;;  %v1577_v41 = vmul.f32 %v1571_v9, %v4826_v50  ;;  %v1578_v58 = vmul.f32 %v1571_v9, %v4828_v25  ;;  %v1579_v29 = vmul.f32 %v1571_v9, %v4830_v53 }
 0x17f   :  { %v4951_v37 = vadd.f32 %v1572_v17, %v4745_v30  ;;  %v4954_v0 = vadd.f32 %v1573_v44, %v4748_v26  ;;  %v4957_v10 = vadd.f32 %v1574_v19, %v4751_v61  ;;  %v4960_v2 = vadd.f32 %v1575_v62, %v4754_v39  ;;  %v5686_v19 = vld [vmem:[#allocation32_spill] sm:$0xff]  ;;  %v5687_v62 = vld [vmem:[#allocation30_spill] sm:$0xff] }
 0x180   :  { %v4965_v4 = vadd.f32 %v1576_v46, %v4757_v14  ;;  %v4968_v9 = vadd.f32 %v1577_v41, %v4760_v24  ;;  %v4971_v30 = vadd.f32 %v1578_v58, %v4763_v49  ;;  %v4974_v26 = vadd.f32 %v1579_v29, %v4766_v23  ;;  %v5689_v58 = vld [vmem:[#allocation23_spill] sm:$0xff] }
 0x181   :  { %v1590_v61 = vmul.f32 %v1589_v38, %v4814_v52  ;;  %v1591_v40 = vmul.f32 %v1589_v38, %v4816_v34  ;;  %v1592_v39 = vmul.f32 %v1589_v38, %v4818_v35  ;;  %v1593_v57 = vmul.f32 %v1589_v38, %v4820_v8 }
 0x182   :  { %v1594_v14 = vmul.f32 %v1589_v38, %v4824_v43  ;;  %v1595_v17 = vmul.f32 %v1589_v38, %v4826_v50  ;;  %v1596_v24 = vmul.f32 %v1589_v38, %v4828_v25  ;;  %v1597_v49 = vmul.f32 %v1589_v38, %v4830_v53  ;;  %v5683_v43 = vld [vmem:[#allocation28_spill] sm:$0xff]  ;;  %v5684_v25 = vld [vmem:[#allocation29_spill] sm:$0xff]  ;;  %v5685_v53 = vld [vmem:[#allocation31_spill] sm:$0xff] }
 0x183   :  { %v4985_v44 = vadd.f32 %v1590_v61, %v4777_v6  ;;  %v4988_v23 = vadd.f32 %v1591_v40, %v4780_v55  ;;  %v4991_v52 = vadd.f32 %v1592_v39, %v4783_v12  ;;  %v4994_v34 = vadd.f32 %v1593_v57, %v4786_v20 }
 0x184   :  { %v4997_v35 = vadd.f32 %v1594_v14, %v4789_v36  ;;  %v5000_v8 = vadd.f32 %v1595_v17, %v4792_v48  ;;  %v5003_v6 = vadd.f32 %v1596_v24, %v4795_v27  ;;  %v5006_v55 = vadd.f32 %v1597_v49, %v4798_v3  ;;  %v5688_v48 = vld [vmem:[#allocation25_spill] sm:$0xff] }
 0x185   :  { %v1608_v12 = vmul.f32 %v5670_v32, %v1607_v42  ;;  %v1609_v50 = vmul.f32 %v5683_v43, %v1607_v42  ;;  %v1610_v20 = vmul.f32 %v5684_v25, %v1607_v42  ;;  %v1611_v38 = vmul.f32 %v5685_v53, %v1607_v42 }
 0x186   :  { %v1612_v36 = vmul.f32 %v5686_v19, %v1607_v42  ;;  %v1613_v46 = vmul.f32 %v5687_v62, %v1607_v42  ;;  %v1614_v41 = vmul.f32 %v5688_v48, %v1607_v42  ;;  %v1615_v27 = vmul.f32 %v5689_v58, %v1607_v42 }
 0x187   :  { %v1617_v29 = vstv %s4936_s12  ;;  %v1635_v61 = vstv %s4942_s2  ;;  %v1653_v3 = vstv %s4948_s13  ;;  %v1671_v40 = vstv %s4962_s14  ;;  %s2038_s2 = sshll.u32 %s5493_s7, 4  ;;  %s2039_s2 = int_to_ptr.hbm [resolvable:$true] %s2038_s2 }
 0x188   :  { %v1618_v39 = vadd.f32 %v1617_v29, %v1608_v12  ;;  %v1619_v57 = vadd.f32 %v1617_v29, %v1609_v50  ;;  %v1620_v14 = vadd.f32 %v1617_v29, %v1610_v20  ;;  %v1621_v17 = vadd.f32 %v1617_v29, %v1611_v38 }
 0x189   :  { %v1622_v24 = vadd.f32 %v1617_v29, %v1612_v36  ;;  %v1623_v49 = vadd.f32 %v1617_v29, %v1613_v46  ;;  %v1624_v25 = vadd.f32 %v1617_v29, %v1614_v41  ;;  %v1625_v53 = vadd.f32 %v1617_v29, %v1615_v27 }
 0x18a   :  { %v5020_v43 = vmax.f32 %v1618_v39, 0.0  ;;  %v5022_v19 = vmax.f32 %v1619_v57, 0.0  ;;  %v5024_v62 = vmax.f32 %v1620_v14, 0.0  ;;  %v5026_v48 = vmax.f32 %v1621_v17, 0.0 }
 0x18b   :  { %v5028_v42 = vmax.f32 %v1622_v24, 0.0  ;;  %v5030_v58 = vmax.f32 %v1623_v49, 0.0  ;;  %v5032_v12 = vmax.f32 %v1624_v25, 0.0  ;;  %v5034_v50 = vmax.f32 %v1625_v53, 0.0 }
 0x18c   :  { %v1636_v20 = vmul.f32 %v1635_v61, %v5020_v43  ;;  %v1637_v38 = vmul.f32 %v1635_v61, %v5022_v19  ;;  %v1638_v36 = vmul.f32 %v1635_v61, %v5024_v62  ;;  %v1639_v46 = vmul.f32 %v1635_v61, %v5026_v48 }
 0x18d   :  { %v1640_v41 = vmul.f32 %v1635_v61, %v5028_v42  ;;  %v1641_v27 = vmul.f32 %v1635_v61, %v5030_v58  ;;  %v1642_v29 = vmul.f32 %v1635_v61, %v5032_v12  ;;  %v1643_v39 = vmul.f32 %v1635_v61, %v5034_v50 }
 0x18e   :  { %v5047_v25 = vadd.f32 %v1636_v20, %v4845_v22  ;;  %v5050_v53 = vadd.f32 %v1637_v38, %v4848_v54  ;;  %v5053_v57 = vadd.f32 %v1638_v36, %v4851_v51  ;;  %v5056_v14 = vadd.f32 %v1639_v46, %v4854_v18 }
 0x18f   :  { %v5061_v17 = vadd.f32 %v1640_v41, %v4857_v45  ;;  %v5064_v61 = vadd.f32 %v1641_v27, %v4860_v7  ;;  %v5067_v22 = vadd.f32 %v1642_v29, %v4863_v47  ;;  %v5070_v54 = vadd.f32 %v1643_v39, %v4866_v21  ;;  %v5690_v27 = vld [vmem:[#allocation27_spill] sm:$0xff]  ;;  %v5691_v39 = vld [vmem:[#allocation24_spill] sm:$0xff] }
 0x190   :  { %v1654_v51 = vmul.f32 %v1653_v3, %v5020_v43  ;;  %v1655_v18 = vmul.f32 %v1653_v3, %v5022_v19  ;;  %v1656_v24 = vmul.f32 %v1653_v3, %v5024_v62  ;;  %v1657_v45 = vmul.f32 %v1653_v3, %v5026_v48 }
 0x191   :  { %v1658_v7 = vmul.f32 %v1653_v3, %v5028_v42  ;;  %v1659_v47 = vmul.f32 %v1653_v3, %v5030_v58  ;;  %v1660_v49 = vmul.f32 %v1653_v3, %v5032_v12  ;;  %v1661_v21 = vmul.f32 %v1653_v3, %v5034_v50 }
 0x192   :  { %v5085_v20 = vadd.f32 %v1654_v51, %v4877_v63  ;;  %v5088_v38 = vadd.f32 %v1655_v18, %v4880_v15  ;;  %v5091_v36 = vadd.f32 %v1656_v24, %v4883_v31  ;;  %v5094_v46 = vadd.f32 %v1657_v45, %v4886_v33  ;;  %v5692_v63 = vld [vmem:[#allocation33_spill] sm:$0xff] }
 0x193   :  { %v5097_v41 = vadd.f32 %v1658_v7, %v4889_v56  ;;  %v5100_v29 = vadd.f32 %v1659_v47, %v5690_v27  ;;  %v5103_v3 = vadd.f32 %v1660_v49, %v5691_v39  ;;  %v5106_v51 = vadd.f32 %v1661_v21, %v5692_v63 }
 0x194   :  { %v1672_v15 = vmul.f32 %v1671_v40, %v5020_v43  ;;  %v1673_v31 = vmul.f32 %v1671_v40, %v5022_v19  ;;  %v1674_v33 = vmul.f32 %v1671_v40, %v5024_v62  ;;  %v1675_v56 = vmul.f32 %v1671_v40, %v5026_v48 }
 0x195   :  { %v1676_v18 = vmul.f32 %v1671_v40, %v5028_v42  ;;  %v1677_v24 = vmul.f32 %v1671_v40, %v5030_v58  ;;  %v1678_v45 = vmul.f32 %v1671_v40, %v5032_v12  ;;  %v1679_v7 = vmul.f32 %v1671_v40, %v5034_v50 }
 0x196   :  { %v5117_v47 = vadd.f32 %v1672_v15, %v4913_v13  ;;  %v5120_v49 = vadd.f32 %v1673_v31, %v4916_v59  ;;  %v5123_v21 = vadd.f32 %v1674_v33, %v4919_v5  ;;  %v5126_v27 = vadd.f32 %v1675_v56, %v4922_v1 }
 0x197   :  { %v5129_v39 = vadd.f32 %v1676_v18, %v4925_v16  ;;  %v5132_v63 = vadd.f32 %v1677_v24, %v4928_v60  ;;  %v5135_v40 = vadd.f32 %v1678_v45, %v4931_v28  ;;  %v5138_v13 = vadd.f32 %v1679_v7, %v4934_v11 }
 0x198   :  { %v1689_v59 = vstv %s5058_s0  ;;  %v1707_v15 = vstv %s5072_s16  ;;  %v1725_v31 = vstv %s5044_s15  ;;  %v1735_v5 = vstv %s5078_s17 }
 0x199   :  { %5693 = vst [vmem:[#allocation26_spill] sm:$0xff] %v5132_v63  ;;  %v1690_v33 = vmul.f32 %v1689_v59, %v5020_v43  ;;  %v1691_v1 = vmul.f32 %v1689_v59, %v5022_v19  ;;  %v1692_v16 = vmul.f32 %v1689_v59, %v5024_v62  ;;  %v1693_v56 = vmul.f32 %v1689_v59, %v5026_v48 }
 0x19a   :  { %5694 = vst [vmem:[#allocation27_spill] sm:$0xff] %v5135_v40  ;;  %v1694_v60 = vmul.f32 %v1689_v59, %v5028_v42  ;;  %v1695_v28 = vmul.f32 %v1689_v59, %v5030_v58  ;;  %v1696_v18 = vmul.f32 %v1689_v59, %v5032_v12  ;;  %v1697_v11 = vmul.f32 %v1689_v59, %v5034_v50 }
 0x19b   :  { %5695 = vst [vmem:[#allocation24_spill] sm:$0xff] %v5138_v13  ;;  %v5153_v24 = vadd.f32 %v1690_v33, %v4951_v37  ;;  %v5156_v45 = vadd.f32 %v1691_v1, %v4954_v0  ;;  %v5159_v7 = vadd.f32 %v1692_v16, %v4957_v10  ;;  %v5162_v13 = vadd.f32 %v1693_v56, %v4960_v2  ;;  %v5698_v1 = vld [vmem:[#allocation31_spill] sm:$0xff]  ;;  %v5699_v56 = vld [vmem:[#allocation32_spill] sm:$0xff] }
 0x19c   :  { %v5165_v40 = vadd.f32 %v1694_v60, %v4965_v4  ;;  %v5168_v63 = vadd.f32 %v1695_v28, %v4968_v9  ;;  %v5171_v59 = vadd.f32 %v1696_v18, %v4971_v30  ;;  %v5174_v37 = vadd.f32 %v1697_v11, %v4974_v26  ;;  %v5700_v60 = vld [vmem:[#allocation30_spill] sm:$0xff]  ;;  %v5702_v11 = vld [vmem:[#allocation23_spill] sm:$0xff] }
 0x19d   :  { %v1708_v0 = vmul.f32 %v1707_v15, %v5020_v43  ;;  %v1709_v10 = vmul.f32 %v1707_v15, %v5022_v19  ;;  %v1710_v2 = vmul.f32 %v1707_v15, %v5024_v62  ;;  %v1711_v4 = vmul.f32 %v1707_v15, %v5026_v48 }
 0x19e   :  { %v1712_v9 = vmul.f32 %v1707_v15, %v5028_v42  ;;  %v1713_v30 = vmul.f32 %v1707_v15, %v5030_v58  ;;  %v1714_v33 = vmul.f32 %v1707_v15, %v5032_v12  ;;  %v1715_v26 = vmul.f32 %v1707_v15, %v5034_v50  ;;  %v5696_v12 = vld [vmem:[#allocation28_spill] sm:$0xff] }
 0x19f   :  { %v5191_v43 = vadd.f32 %v1708_v0, %v4985_v44  ;;  %v5194_v19 = vadd.f32 %v1709_v10, %v4988_v23  ;;  %v5197_v62 = vadd.f32 %v1710_v2, %v4991_v52  ;;  %v5200_v48 = vadd.f32 %v1711_v4, %v4994_v34  ;;  %v5697_v34 = vld [vmem:[#allocation29_spill] sm:$0xff] }
 0x1a0   :  { %v5205_v58 = vadd.f32 %v1712_v9, %v4997_v35  ;;  %v5208_v42 = vadd.f32 %v1713_v30, %v5000_v8  ;;  %v5211_v44 = vadd.f32 %v1714_v33, %v5003_v6  ;;  %v5214_v23 = vadd.f32 %v1715_v26, %v5006_v55  ;;  %v5701_v8 = vld [vmem:[#allocation25_spill] sm:$0xff] }
 0x1a1   :  { %v1726_v52 = vmul.f32 %v5670_v32, %v1725_v31  ;;  %v1727_v50 = vmul.f32 %v5696_v12, %v1725_v31  ;;  %v1728_v15 = vmul.f32 %v5697_v34, %v1725_v31  ;;  %v1729_v16 = vmul.f32 %v5698_v1, %v1725_v31 }
 0x1a2   :  { %v1730_v35 = vmul.f32 %v5699_v56, %v1725_v31  ;;  %v1731_v28 = vmul.f32 %v5700_v60, %v1725_v31  ;;  %v1732_v18 = vmul.f32 %v5701_v8, %v1725_v31  ;;  %v1733_v6 = vmul.f32 %v5702_v11, %v1725_v31 }
 0x1a3   :  { %v1736_v0 = vadd.f32 %v1735_v5, %v1726_v52  ;;  %v1737_v55 = vadd.f32 %v1735_v5, %v1727_v50  ;;  %v1738_v10 = vadd.f32 %v1735_v5, %v1728_v15  ;;  %v1739_v32 = vadd.f32 %v1735_v5, %v1729_v16 }
 0x1a4   :  { %v1740_v2 = vadd.f32 %v1735_v5, %v1730_v35  ;;  %v1741_v4 = vadd.f32 %v1735_v5, %v1731_v28  ;;  %v1742_v9 = vadd.f32 %v1735_v5, %v1732_v18  ;;  %v1743_v30 = vadd.f32 %v1735_v5, %v1733_v6 }
 0x1a5   :  { %v5224_v33 = vmax.f32 %v1736_v0, 0.0  ;;  %v5226_v26 = vmax.f32 %v1737_v55, 0.0  ;;  %v5228_v12 = vmax.f32 %v1738_v10, 0.0  ;;  %v5230_v34 = vmax.f32 %v1739_v32, 0.0 }
 0x1a6   :  { %v5232_v31 = vmax.f32 %v1740_v2, 0.0  ;;  %v5234_v52 = vmax.f32 %v1741_v4, 0.0  ;;  %v5236_v50 = vmax.f32 %v1742_v9, 0.0  ;;  %v5238_v15 = vmax.f32 %v1743_v30, 0.0 }
 0x1a7   :  { %v1753_v1 = vstv %s5176_s18  ;;  %v1771_v16 = vstv %s5182_s19  ;;  %v1789_v56 = vstv %s5188_s20  ;;  %v1807_v5 = vstv %s5202_s21 }
 0x1a8   :  { %v1754_v35 = vmul.f32 %v1753_v1, %v5224_v33  ;;  %v1755_v60 = vmul.f32 %v1753_v1, %v5226_v26  ;;  %v1756_v28 = vmul.f32 %v1753_v1, %v5228_v12  ;;  %v1757_v8 = vmul.f32 %v1753_v1, %v5230_v34 }
 0x1a9   :  { %v1758_v18 = vmul.f32 %v1753_v1, %v5232_v31  ;;  %v1759_v11 = vmul.f32 %v1753_v1, %v5234_v52  ;;  %v1760_v6 = vmul.f32 %v1753_v1, %v5236_v50  ;;  %v1761_v0 = vmul.f32 %v1753_v1, %v5238_v15 }
 0x1aa   :  { %v5253_v55 = vadd.f32 %v1754_v35, %v5047_v25  ;;  %v5256_v10 = vadd.f32 %v1755_v60, %v5050_v53  ;;  %v5259_v32 = vadd.f32 %v1756_v28, %v5053_v57  ;;  %v5262_v2 = vadd.f32 %v1757_v8, %v5056_v14 }
 0x1ab   :  { %v5265_v4 = vadd.f32 %v1758_v18, %v5061_v17  ;;  %v5268_v9 = vadd.f32 %v1759_v11, %v5064_v61  ;;  %v5271_v30 = vadd.f32 %v1760_v6, %v5067_v22  ;;  %v5274_v25 = vadd.f32 %v1761_v0, %v5070_v54 }
 0x1ac   :  { %v1772_v53 = vmul.f32 %v1771_v16, %v5224_v33  ;;  %v1773_v57 = vmul.f32 %v1771_v16, %v5226_v26  ;;  %v1774_v1 = vmul.f32 %v1771_v16, %v5228_v12  ;;  %v1775_v14 = vmul.f32 %v1771_v16, %v5230_v34 }
 0x1ad   :  { %v1776_v17 = vmul.f32 %v1771_v16, %v5232_v31  ;;  %v1777_v35 = vmul.f32 %v1771_v16, %v5234_v52  ;;  %v1778_v61 = vmul.f32 %v1771_v16, %v5236_v50  ;;  %v1779_v22 = vmul.f32 %v1771_v16, %v5238_v15 }
 0x1ae   :  { %v5287_v54 = vadd.f32 %v1772_v53, %v5085_v20  ;;  %v5290_v60 = vadd.f32 %v1773_v57, %v5088_v38  ;;  %v5293_v28 = vadd.f32 %v1774_v1, %v5091_v36  ;;  %v5296_v8 = vadd.f32 %v1775_v14, %v5094_v46 }
 0x1af   :  { %v5301_v18 = vadd.f32 %v1776_v17, %v5097_v41  ;;  %v5304_v16 = vadd.f32 %v1777_v35, %v5100_v29  ;;  %v5307_v20 = vadd.f32 %v1778_v61, %v5103_v3  ;;  %v5310_v38 = vadd.f32 %v1779_v22, %v5106_v51  ;;  %v5703_v17 = vld [vmem:[#allocation26_spill] sm:$0xff]  ;;  %v5704_v61 = vld [vmem:[#allocation27_spill] sm:$0xff] }
 0x1b0   :  { %v1790_v36 = vmul.f32 %v1789_v56, %v5224_v33  ;;  %v1791_v46 = vmul.f32 %v1789_v56, %v5226_v26  ;;  %v1792_v11 = vmul.f32 %v1789_v56, %v5228_v12  ;;  %v1793_v41 = vmul.f32 %v1789_v56, %v5230_v34 }
 0x1b1   :  { %v1794_v29 = vmul.f32 %v1789_v56, %v5232_v31  ;;  %v1795_v3 = vmul.f32 %v1789_v56, %v5234_v52  ;;  %v1796_v6 = vmul.f32 %v1789_v56, %v5236_v50  ;;  %v1797_v51 = vmul.f32 %v1789_v56, %v5238_v15 }
 0x1b2   :  { %v5325_v0 = vadd.f32 %v1790_v36, %v5117_v47  ;;  %v5328_v53 = vadd.f32 %v1791_v46, %v5120_v49  ;;  %v5331_v57 = vadd.f32 %v1792_v11, %v5123_v21  ;;  %v5334_v1 = vadd.f32 %v1793_v41, %v5126_v27  ;;  %v5705_v47 = vld [vmem:[#allocation24_spill] sm:$0xff] }
 0x1b3   :  { %v5337_v14 = vadd.f32 %v1794_v29, %v5129_v39  ;;  %v5340_v35 = vadd.f32 %v1795_v3, %v5703_v17  ;;  %v5343_v56 = vadd.f32 %v1796_v6, %v5704_v61  ;;  %v5346_v22 = vadd.f32 %v1797_v51, %v5705_v47 }
 0x1b4   :  { %v1808_v49 = vmul.f32 %v1807_v5, %v5224_v33  ;;  %v1809_v21 = vmul.f32 %v1807_v5, %v5226_v26  ;;  %v1810_v27 = vmul.f32 %v1807_v5, %v5228_v12  ;;  %v1811_v39 = vmul.f32 %v1807_v5, %v5230_v34 }
 0x1b5   :  { %v1812_v36 = vmul.f32 %v1807_v5, %v5232_v31  ;;  %v1813_v46 = vmul.f32 %v1807_v5, %v5234_v52  ;;  %v1814_v11 = vmul.f32 %v1807_v5, %v5236_v50  ;;  %v1815_v41 = vmul.f32 %v1807_v5, %v5238_v15 }
 0x1b6   :  { %v5357_v29 = vadd.f32 %v1808_v49, %v5153_v24  ;;  %v5360_v3 = vadd.f32 %v1809_v21, %v5156_v45  ;;  %v5363_v6 = vadd.f32 %v1810_v27, %v5159_v7  ;;  %v5366_v51 = vadd.f32 %v1811_v39, %v5162_v13 }
 0x1b7   :  { %v5369_v17 = vadd.f32 %v1812_v36, %v5165_v40  ;;  %v5372_v61 = vadd.f32 %v1813_v46, %v5168_v63  ;;  %v5375_v5 = vadd.f32 %v1814_v11, %v5171_v59  ;;  %v5378_v24 = vadd.f32 %v1815_v41, %v5174_v37 }
 0x1b8   :  { %v1825_v45 = vstv %s5284_s22  ;;  %v1843_v47 = vstv %s5298_s23  ;;  %v1861_v49 = vstv %s5318_s24  ;;  %v1871_v7 = vstv %s5312_s1 }
 0x1b9   :  { %v1826_v21 = vmul.f32 %v1825_v45, %v5224_v33  ;;  %v1827_v13 = vmul.f32 %v1825_v45, %v5226_v26  ;;  %v1828_v40 = vmul.f32 %v1825_v45, %v5228_v12  ;;  %v1829_v27 = vmul.f32 %v1825_v45, %v5230_v34 }
 0x1ba   :  { %v1830_v63 = vmul.f32 %v1825_v45, %v5232_v31  ;;  %v1831_v59 = vmul.f32 %v1825_v45, %v5234_v52  ;;  %v1832_v39 = vmul.f32 %v1825_v45, %v5236_v50  ;;  %v1833_v37 = vmul.f32 %v1825_v45, %v5238_v15 }
 0x1bb   :  { %v5393_v36 = vadd.f32 %v1826_v21, %v5191_v43  ;;  %v5396_v46 = vadd.f32 %v1827_v13, %v5194_v19  ;;  %v5399_v33 = vadd.f32 %v1828_v40, %v5197_v62  ;;  %v5402_v26 = vadd.f32 %v1829_v27, %v5200_v48 }
 0x1bc   :  { %v5405_v12 = vadd.f32 %v1830_v63, %v5205_v58  ;;  %v5408_v34 = vadd.f32 %v1831_v59, %v5208_v42  ;;  %v5411_v31 = vadd.f32 %v1832_v39, %v5211_v44  ;;  %v5414_v43 = vadd.f32 %v1833_v37, %v5214_v23 }
 0x1bd   :  { %v1844_v19 = vadd.f32 %v1843_v47, %v5253_v55  ;;  %v1845_v62 = vadd.f32 %v1843_v47, %v5256_v10  ;;  %v1846_v48 = vadd.f32 %v1843_v47, %v5259_v32  ;;  %v1847_v58 = vadd.f32 %v1843_v47, %v5262_v2 }
 0x1be   :  { %v1848_v42 = vadd.f32 %v1843_v47, %v5265_v4  ;;  %v1849_v44 = vadd.f32 %v1843_v47, %v5268_v9  ;;  %v1850_v52 = vadd.f32 %v1843_v47, %v5271_v30  ;;  %v1851_v23 = vadd.f32 %v1843_v47, %v5274_v25 }
 0x1bf   :  { %v1852_v50 = vmax.f32 %v1844_v19, 0.0  ;;  %v1853_v15 = vmax.f32 %v1845_v62, 0.0  ;;  %v1854_v55 = vmax.f32 %v1846_v48, 0.0  ;;  %v1855_v10 = vmax.f32 %v1847_v58, 0.0 }
 0x1c0   :  { %v1856_v32 = vmax.f32 %v1848_v42, 0.0  ;;  %v1857_v2 = vmax.f32 %v1849_v44, 0.0  ;;  %v1858_v11 = vmax.f32 %v1850_v52, 0.0  ;;  %v1859_v41 = vmax.f32 %v1851_v23, 0.0 }
 0x1c1   :  { %v1862_v45 = vmul.f32 %v1861_v49, %v1852_v50  ;;  %v1863_v4 = vmul.f32 %v1861_v49, %v1853_v15  ;;  %v1864_v21 = vmul.f32 %v1861_v49, %v1854_v55  ;;  %v1865_v9 = vmul.f32 %v1861_v49, %v1855_v10 }
 0x1c2   :  { %v1866_v13 = vmul.f32 %v1861_v49, %v1856_v32  ;;  %v1867_v30 = vmul.f32 %v1861_v49, %v1857_v2  ;;  %v1868_v40 = vmul.f32 %v1861_v49, %v1858_v11  ;;  %v1869_v25 = vmul.f32 %v1861_v49, %v1859_v41 }
 0x1c3   :  { %v1872_v47 = vadd.f32 %v1871_v7, %v5287_v54  ;;  %v1873_v27 = vadd.f32 %v1871_v7, %v5290_v60  ;;  %v1874_v63 = vadd.f32 %v1871_v7, %v5293_v28  ;;  %v1875_v59 = vadd.f32 %v1871_v7, %v5296_v8 }
 0x1c4   :  { %v1876_v39 = vadd.f32 %v1871_v7, %v5301_v18  ;;  %v1877_v37 = vadd.f32 %v1871_v7, %v5304_v16  ;;  %v1878_v19 = vadd.f32 %v1871_v7, %v5307_v20  ;;  %v1879_v49 = vadd.f32 %v1871_v7, %v5310_v38 }
 0x1c5   :  { %v1880_v62 = vmax.f32 %v1872_v47, 0.0  ;;  %v1881_v54 = vmax.f32 %v1873_v27, 0.0  ;;  %v1882_v48 = vmax.f32 %v1874_v63, 0.0  ;;  %v1883_v58 = vmax.f32 %v1875_v59, 0.0 }
 0x1c6   :  { %v1884_v60 = vmax.f32 %v1876_v39, 0.0  ;;  %v1885_v42 = vmax.f32 %v1877_v37, 0.0  ;;  %v1886_v44 = vmax.f32 %v1878_v19, 0.0  ;;  %v1887_v28 = vmax.f32 %v1879_v49, 0.0 }
 0x1c7   :  { %v1889_v52 = vstv %s5422_s4  ;;  %v1907_v23 = vstv %s5416_s3  ;;  %v1925_v8 = vstv %s5430_s25  ;;  %v1943_v50 = vstv %s5428_s5 }
 0x1c8   :  { %v1890_v15 = vmul.f32 %v1889_v52, %v1880_v62  ;;  %v1891_v18 = vmul.f32 %v1889_v52, %v1881_v54  ;;  %v1892_v55 = vmul.f32 %v1889_v52, %v1882_v48  ;;  %v1893_v16 = vmul.f32 %v1889_v52, %v1883_v58 }
 0x1c9   :  { %v1894_v10 = vmul.f32 %v1889_v52, %v1884_v60  ;;  %v1895_v20 = vmul.f32 %v1889_v52, %v1885_v42  ;;  %v1896_v32 = vmul.f32 %v1889_v52, %v1886_v44  ;;  %v1897_v38 = vmul.f32 %v1889_v52, %v1887_v28 }
 0x1ca   :  { %v1898_v7 = vadd.f32 %v1890_v15, %v1862_v45  ;;  %v1899_v2 = vadd.f32 %v1891_v18, %v1863_v4  ;;  %v1900_v11 = vadd.f32 %v1892_v55, %v1864_v21  ;;  %v1901_v41 = vadd.f32 %v1893_v16, %v1865_v9 }
 0x1cb   :  { %v1902_v47 = vadd.f32 %v1894_v10, %v1866_v13  ;;  %v1903_v27 = vadd.f32 %v1895_v20, %v1867_v30  ;;  %v1904_v63 = vadd.f32 %v1896_v32, %v1868_v40  ;;  %v1905_v59 = vadd.f32 %v1897_v38, %v1869_v25 }
 0x1cc   :  { %v1908_v39 = vadd.f32 %v1907_v23, %v5325_v0  ;;  %v1909_v37 = vadd.f32 %v1907_v23, %v5328_v53  ;;  %v1910_v19 = vadd.f32 %v1907_v23, %v5331_v57  ;;  %v1911_v49 = vadd.f32 %v1907_v23, %v5334_v1 }
 0x1cd   :  { %v1912_v62 = vadd.f32 %v1907_v23, %v5337_v14  ;;  %v1913_v54 = vadd.f32 %v1907_v23, %v5340_v35  ;;  %v1914_v45 = vadd.f32 %v1907_v23, %v5343_v56  ;;  %v1915_v4 = vadd.f32 %v1907_v23, %v5346_v22 }
 0x1ce   :  { %v1916_v21 = vmax.f32 %v1908_v39, 0.0  ;;  %v1917_v9 = vmax.f32 %v1909_v37, 0.0  ;;  %v1918_v13 = vmax.f32 %v1910_v19, 0.0  ;;  %v1919_v30 = vmax.f32 %v1911_v49, 0.0 }
 0x1cf   :  { %v1920_v0 = vmax.f32 %v1912_v62, 0.0  ;;  %v1921_v53 = vmax.f32 %v1913_v54, 0.0  ;;  %v1922_v40 = vmax.f32 %v1914_v45, 0.0  ;;  %v1923_v57 = vmax.f32 %v1915_v4, 0.0 }
 0x1d0   :  { %v1926_v1 = vmul.f32 %v1925_v8, %v1916_v21  ;;  %v1927_v14 = vmul.f32 %v1925_v8, %v1917_v9  ;;  %v1928_v25 = vmul.f32 %v1925_v8, %v1918_v13  ;;  %v1929_v35 = vmul.f32 %v1925_v8, %v1919_v30 }
 0x1d1   :  { %v1930_v56 = vmul.f32 %v1925_v8, %v1920_v0  ;;  %v1931_v22 = vmul.f32 %v1925_v8, %v1921_v53  ;;  %v1932_v48 = vmul.f32 %v1925_v8, %v1922_v40  ;;  %v1933_v58 = vmul.f32 %v1925_v8, %v1923_v57 }
 0x1d2   :  { %v1934_v60 = vadd.f32 %v1926_v1, %v1898_v7  ;;  %v1935_v42 = vadd.f32 %v1927_v14, %v1899_v2  ;;  %v1936_v44 = vadd.f32 %v1928_v25, %v1900_v11  ;;  %v1937_v28 = vadd.f32 %v1929_v35, %v1901_v41 }
 0x1d3   :  { %v1938_v52 = vadd.f32 %v1930_v56, %v1902_v47  ;;  %v1939_v23 = vadd.f32 %v1931_v22, %v1903_v27  ;;  %v1940_v15 = vadd.f32 %v1932_v48, %v1904_v63  ;;  %v1941_v18 = vadd.f32 %v1933_v58, %v1905_v59 }
 0x1d4   :  { %v1944_v55 = vadd.f32 %v1943_v50, %v5357_v29  ;;  %v1945_v16 = vadd.f32 %v1943_v50, %v5360_v3  ;;  %v1946_v10 = vadd.f32 %v1943_v50, %v5363_v6  ;;  %v1947_v20 = vadd.f32 %v1943_v50, %v5366_v51 }
 0x1d5   :  { %v1948_v8 = vadd.f32 %v1943_v50, %v5369_v17  ;;  %v1949_v32 = vadd.f32 %v1943_v50, %v5372_v61  ;;  %v1950_v38 = vadd.f32 %v1943_v50, %v5375_v5  ;;  %v1951_v7 = vadd.f32 %v1943_v50, %v5378_v24 }
 0x1d6   :  { %v1952_v2 = vmax.f32 %v1944_v55, 0.0  ;;  %v1953_v11 = vmax.f32 %v1945_v16, 0.0  ;;  %v1954_v29 = vmax.f32 %v1946_v10, 0.0  ;;  %v1955_v41 = vmax.f32 %v1947_v20, 0.0 }
 0x1d7   :  { %v1956_v47 = vmax.f32 %v1948_v8, 0.0  ;;  %v1957_v3 = vmax.f32 %v1949_v32, 0.0  ;;  %v1958_v27 = vmax.f32 %v1950_v38, 0.0  ;;  %v1959_v63 = vmax.f32 %v1951_v7, 0.0 }
 0x1d8   :  { %v1961_v6 = vstv %s5454_s27  ;;  %v1979_v59 = vstv %s5452_s26  ;;  %v1997_v39 = vstv %s5456_s28  ;;  %v2015_v51 = vstv %s5492_s6  ;;  %s2320_s6 = smov [#allocation15]  }
 0x1d9   :  { %v1962_v17 = vmul.f32 %v1961_v6, %v1952_v2  ;;  %v1963_v61 = vmul.f32 %v1961_v6, %v1953_v11  ;;  %v1964_v5 = vmul.f32 %v1961_v6, %v1954_v29  ;;  %v1965_v37 = vmul.f32 %v1961_v6, %v1955_v41  ;;  %s2036_s8 = sshll.u32 %s2320_s6, 4  ;;  %s2037_s8 = int_to_ptr.vmem [resolvable:$true] %s2036_s8 }
 0x1da   :  { %v1966_v24 = vmul.f32 %v1961_v6, %v1956_v47  ;;  %v1967_v50 = vmul.f32 %v1961_v6, %v1957_v3  ;;  %v1968_v19 = vmul.f32 %v1961_v6, %v1958_v27  ;;  %v1969_v49 = vmul.f32 %v1961_v6, %v1959_v63 }
 0x1db   :  { %v1970_v62 = vadd.f32 %v1962_v17, %v1934_v60  ;;  %v1971_v54 = vadd.f32 %v1963_v61, %v1935_v42  ;;  %v1972_v45 = vadd.f32 %v1964_v5, %v1936_v44  ;;  %v1973_v4 = vadd.f32 %v1965_v37, %v1937_v28 }
 0x1dc   :  { %v1974_v21 = vadd.f32 %v1966_v24, %v1938_v52  ;;  %v1975_v9 = vadd.f32 %v1967_v50, %v1939_v23  ;;  %v1976_v13 = vadd.f32 %v1968_v19, %v1940_v15  ;;  %v1977_v30 = vadd.f32 %v1969_v49, %v1941_v18 }
 0x1dd   :  { %v1980_v0 = vadd.f32 %v1979_v59, %v5393_v36  ;;  %v1981_v53 = vadd.f32 %v1979_v59, %v5396_v46  ;;  %v1982_v40 = vadd.f32 %v1979_v59, %v5399_v33  ;;  %v1983_v57 = vadd.f32 %v1979_v59, %v5402_v26 }
 0x1de   :  { %v1984_v1 = vadd.f32 %v1979_v59, %v5405_v12  ;;  %v1985_v14 = vadd.f32 %v1979_v59, %v5408_v34  ;;  %v1986_v25 = vadd.f32 %v1979_v59, %v5411_v31  ;;  %v1987_v35 = vadd.f32 %v1979_v59, %v5414_v43 }
 0x1df   :  { %v1988_v56 = vmax.f32 %v1980_v0, 0.0  ;;  %v1989_v22 = vmax.f32 %v1981_v53, 0.0  ;;  %v1990_v48 = vmax.f32 %v1982_v40, 0.0  ;;  %v1991_v58 = vmax.f32 %v1983_v57, 0.0 }
 0x1e0   :  { %v1992_v60 = vmax.f32 %v1984_v1, 0.0  ;;  %v1993_v36 = vmax.f32 %v1985_v14, 0.0  ;;  %v1994_v42 = vmax.f32 %v1986_v25, 0.0  ;;  %v1995_v46 = vmax.f32 %v1987_v35, 0.0 }
 0x1e1   :  { %v1998_v44 = vmul.f32 %v1997_v39, %v1988_v56  ;;  %v1999_v33 = vmul.f32 %v1997_v39, %v1989_v22  ;;  %v2000_v28 = vmul.f32 %v1997_v39, %v1990_v48  ;;  %v2001_v26 = vmul.f32 %v1997_v39, %v1991_v58 }
 0x1e2   :  { %v2002_v52 = vmul.f32 %v1997_v39, %v1992_v60  ;;  %v2003_v12 = vmul.f32 %v1997_v39, %v1993_v36  ;;  %v2004_v23 = vmul.f32 %v1997_v39, %v1994_v42  ;;  %v2005_v34 = vmul.f32 %v1997_v39, %v1995_v46 }
 0x1e3   :  { %v2006_v15 = vadd.f32 %v1998_v44, %v1970_v62  ;;  %v2007_v31 = vadd.f32 %v1999_v33, %v1971_v54  ;;  %v2008_v18 = vadd.f32 %v2000_v28, %v1972_v45  ;;  %v2009_v43 = vadd.f32 %v2001_v26, %v1973_v4 }
 0x1e4   :  { %v2010_v55 = vadd.f32 %v2002_v52, %v1974_v21  ;;  %v2011_v16 = vadd.f32 %v2003_v12, %v1975_v9  ;;  %v2012_v10 = vadd.f32 %v2004_v23, %v1976_v13  ;;  %v2013_v38 = vadd.f32 %v2005_v34, %v1977_v30 }
 0x1e5   :  { %v2016_v20 = vadd.f32 %v2015_v51, %v2006_v15  ;;  %v2017_v8 = vadd.f32 %v2015_v51, %v2007_v31  ;;  %v2018_v32 = vadd.f32 %v2015_v51, %v2008_v18  ;;  %v2019_v7 = vadd.f32 %v2015_v51, %v2009_v43 }
 0x1e6   :  { %v2020_v2 = vadd.f32 %v2015_v51, %v2010_v55  ;;  %v2021_v11 = vadd.f32 %v2015_v51, %v2011_v16  ;;  %v2022_v29 = vadd.f32 %v2015_v51, %v2012_v10  ;;  %v2023_v41 = vadd.f32 %v2015_v51, %v2013_v38 }
 0x1e7   :  { %2024 = vst [vmem:[#allocation15] sm:$0xff] %v2016_v20 }
 0x1e8   :  { %2025 = vst [vmem:[#allocation15 + $0x8] sm:$0xff] %v2017_v8 }
 0x1e9   :  { %2026 = vst [vmem:[#allocation15 + $0x10] sm:$0xff] %v2018_v32 }
 0x1ea   :  { %2027 = vst [vmem:[#allocation15 + $0x18] sm:$0xff] %v2019_v7 }
 0x1eb   :  { %2028 = vst [vmem:[#allocation15 + $0x20] sm:$0xff] %v2020_v2 }
 0x1ec   :  { %2029 = vst [vmem:[#allocation15 + $0x28] sm:$0xff] %v2021_v11 }
 0x1ed   :  { %2030 = vst [vmem:[#allocation15 + $0x30] sm:$0xff] %v2022_v29 }
 0x1ee   :  { %2031 = vst [vmem:[#allocation15 + $0x38] sm:$0xff] %v2023_v41 }
 0x1ef   :  { %2044 = dma.vmem_to_hbm [thread:$0]  %s2037_s8, 1024, %s2039_s2, [#allocation5], %s2314_s10, %s2314_s10, %s2315_s11  }
 0x1f0   :  { %2310 = dma.done.wait [#allocation5], 1024  }
 0x1f1   :  { %2311 = vsyncadd [#allocation5], 4294966272 }
 0x1f2   :  { %2049 = vsyncpa [#allocation4], 1 }
 0x1f3   :  { %2050 = vsyncpa [#allocation5], 1 }
 0x1f4   :  { %2051 = vsyncpa [#allocation6], 1 }
 0x1f5   :  { %2052 = vsyncpa [#allocation7], 1 }
 0x1f6   :  { %2053 = vsyncpa [#allocation10], 1 }
 0x1f7   :  { %2054 = vsyncpa [#allocation14], 1 }

</bundles_post_ra>
